<compile_context>
chip_gen: v7x
topology: tpu7x:2x2x1
jax: 0.10.0
libtpu: 0.0.40
codegen_flags: <defaults>
</compile_context>

<pallas_src>
import functools
import math

import numpy as np
import jax
import jax.numpy as jnp
from jax.experimental import pallas as pl
from jax.experimental.pallas import tpu as pltpu


_EPS = 1e-5


# ----------------------------------------------------------------------------
# small in-kernel helpers (f32 math; bf16 only for MXU operands)
# ----------------------------------------------------------------------------

def _gelu(x):
    # TODO(synk): fairseq default is exact erf-GELU; tanh approximation kept
    # (EUP-friendly, small systematic numeric deviation).
    c = jnp.float32(math.sqrt(2.0 / math.pi))
    return 0.5 * x * (1.0 + jnp.tanh(c * (x + 0.044715 * x * x * x)))


def _layernorm(x, g, b, eps):
    mu = jnp.mean(x, axis=-1, keepdims=True)
    var = jnp.mean(jnp.square(x - mu), axis=-1, keepdims=True)
    return (x - mu) * jax.lax.rsqrt(var + eps) * g + b


def _mxu(a, b):
    # bf16 MXU inputs, f32 accumulation. Weights are pre-cast to bf16 on the
    # host, so their .astype is a trace-time no-op.
    return jnp.dot(a.astype(jnp.bfloat16), b.astype(jnp.bfloat16),
                   preferred_element_type=jnp.float32)


# ----------------------------------------------------------------------------
# Single fused kernel: conv stack -> LN -> proj -> LN -> MHA -> FFN -> features
# ----------------------------------------------------------------------------

def _wav2vec_fused_kernel(
        xh_ref,                                  # [T0, K0] im2col'd audio (bf16)
        w0_ref, b0_ref, gng_ref, gnb_ref,        # conv0 (+GroupNorm)
        sel1_ref, w1_ref, b1_ref,                # conv1 (strided, selection mats)
        sel2_ref, w2_ref, b2_ref,                # conv2
        lnfe_g_ref, lnfe_b_ref,                  # post-extractor LayerNorm
        pw_ref, pb_ref,                          # projection C -> d_model
        lnenc_g_ref, lnenc_b_ref,                # encoder LayerNorm
        wqkv_ref, bqkv_ref, wo_ref, wob_ref,     # attention
        lnsa_g_ref, lnsa_b_ref,                  # post-attention LayerNorm
        ff1_ref, ffb1_ref, ff2_ref, ffb2_ref,    # FFN
        lnff_g_ref, lnff_b_ref,                  # post-FFN LayerNorm
        o_ref,                                   # [T_feat, d_model]
        *, n_heads, eps):
    # ---- conv layer 0: single matmul (taps folded into contraction) --------
    h = _mxu(xh_ref[...], w0_ref[...]) + b0_ref[...]             # [T0, C] f32
    # GroupNorm(num_groups == C): per-channel stats over time, per sample.
    mu = jnp.mean(h, axis=0, keepdims=True)
    var = jnp.mean(jnp.square(h - mu), axis=0, keepdims=True)
    h = (h - mu) * jax.lax.rsqrt(var + eps) * gng_ref[...] + gnb_ref[...]
    h = _gelu(h)

    # ---- conv layers 1..2: strided conv as per-tap selection matmuls -------
    for sel_ref, w_ref, bias_ref in ((sel1_ref, w1_ref, b1_ref),
                                     (sel2_ref, w2_ref, b2_ref)):
        n_taps, t_out, _ = sel_ref.shape
        c_out = w_ref.shape[-1]
        hb = h.astype(jnp.bfloat16)
        acc = jnp.zeros((t_out, c_out), jnp.float32)
        for k in range(n_taps):                                  # taps unrolled
            xs = _mxu(sel_ref[k], hb)                            # strided rows
            acc = acc + _mxu(xs, w_ref[k])
        h = _gelu(acc + bias_ref[...])

    # ---- post-extractor LN -> projection -> encoder LN ----------------------
    x = _layernorm(h, lnfe_g_ref[...], lnfe_b_ref[...], eps)
    x = _mxu(x, pw_ref[...]) + pb_ref[...]
    # TODO(synk): wav2vec2 positional grouped conv (pos_conv) is omitted.
    x = _layernorm(x, lnenc_g_ref[...], lnenc_b_ref[...], eps)   # [T, D] f32

    # ---- self-attention (fused QKV, out-proj folded into head loop) --------
    seq, d_model = x.shape
    dh = d_model // n_heads
    scale = 1.0 / math.sqrt(dh)
    qkv = _mxu(x, wqkv_ref[...]) + bqkv_ref[...]                 # [T, 3D]
    wo = wo_ref[...]                                             # [D, D] bf16
    attn = jnp.zeros((seq, d_model), jnp.float32)
    for hd in range(n_heads):                                    # heads unrolled
        q = qkv[:, hd * dh:(hd + 1) * dh]
        k = qkv[:, d_model + hd * dh:d_model + (hd + 1) * dh]
        v = qkv[:, 2 * d_model + hd * dh:2 * d_model + (hd + 1) * dh]
        s = jax.lax.dot_general(
            q.astype(jnp.bfloat16), k.astype(jnp.bfloat16),
            (((1,), (1,)), ((), ())),
            preferred_element_type=jnp.float32) * scale          # [T, T]
        s = s - jnp.max(s, axis=-1, keepdims=True)
        p = jnp.exp(s)
        p = p * pl.reciprocal(jnp.sum(p, axis=-1, keepdims=True), approx=True)
        hv = _mxu(p, v)                                          # [T, dh]
        attn = attn + _mxu(hv, wo[hd * dh:(hd + 1) * dh, :])     # fold out-proj
    y = x + attn + wob_ref[...]                                  # residual
    y = _layernorm(y, lnsa_g_ref[...], lnsa_b_ref[...], eps)     # post-norm

    # ---- FFN + residual + LayerNorm -----------------------------------------
    hf = _gelu(_mxu(y, ff1_ref[...]) + ffb1_ref[...])            # [T, F]
    z = _mxu(hf, ff2_ref[...]) + ffb2_ref[...]                   # [T, D]
    out = _layernorm(y + z, lnff_g_ref[...], lnff_b_ref[...], eps)
    o_ref[...] = out.astype(o_ref.dtype)


# ----------------------------------------------------------------------------
# Host glue
# ----------------------------------------------------------------------------

def _full_spec(a):
    zeros = (0,) * a.ndim
    return pl.BlockSpec(a.shape, lambda i, _z=zeros: _z)


def _make_selection_matrices(t_in, kernel, stride, dtype=jnp.bfloat16):
    """0/1 matrices S_k [t_out, t_in] selecting rows k, k+s, k+2s, ..."""
    t_out = (t_in - kernel) // stride + 1
    sel = np.zeros((kernel, t_out, t_in), np.float32)
    rows = np.arange(t_out)
    for k in range(kernel):
        sel[k, rows, rows * stride + k] = 1.0
    return jnp.asarray(sel, dtype), t_out


def wav2vec2_forward(params, audio, *, conv_cfg, n_heads, eps=_EPS):
    """audio: [B, T_audio] float32 -> contextual features [B, T_feat, d_model]."""
    B, t_audio = audio.shape
    c0, k0, s0 = conv_cfg[0]
    assert k0 % s0 == 0, "layer-0 kernel assumed to be a multiple of its stride"
    q0 = k0 // s0
    t0 = (t_audio - k0) // s0 + 1
    need = (t0 + q0 - 1) * s0
    a = audio if need <= t_audio else jnp.pad(audio, ((0, 0), (0, need - t_audio)))
    # Host-side im2col for layer 0 only (C_in=1 raw audio; one reshape + concat,
    # done once per forward). Everything downstream stays inside the kernel.
    r = a[:, :need].reshape(B, t0 + q0 - 1, s0)
    xh0 = jnp.concatenate([r[:, q:q + t0, :] for q in range(q0)],
                          axis=-1).astype(jnp.bfloat16)          # [B, t0, k0]

    t_feat = params["sel2"].shape[1]
    d_model = params["proj_w"].shape[1]

    weight_args = (
        params["w0"], params["b0"], params["gn_g"], params["gn_b"],
        params["sel1"], params["w1"], params["b1"],
        params["sel2"], params["w2"], params["b2"],
        params["ln_fe_g"], params["ln_fe_b"],
        params["proj_w"], params["proj_b"],
        params["ln_enc_g"], params["ln_enc_b"],
        params["wqkv"], params["bqkv"], params["wo"], params["wo_b"],
        params["ln_sa_g"], params["ln_sa_b"],
        params["ffn_w1"], params["ffn_b1"], params["ffn_w2"], params["ffn_b2"],
        params["ln_ff_g"], params["ln_ff_b"],
    )
    weight_specs = [_full_spec(w) for w in weight_args]

    return pl.pallas_call(
        functools.partial(_wav2vec_fused_kernel, n_heads=n_heads, eps=eps),
        out_shape=jax.ShapeDtypeStruct((B, t_feat, d_model), jnp.float32),
        grid=(B,),
        in_specs=[pl.BlockSpec((None,) + xh0.shape[1:], lambda i: (i, 0, 0))]
                 + weight_specs,
        out_specs=pl.BlockSpec((None, t_feat, d_model), lambda i: (i, 0, 0)),
        compiler_params=pltpu.CompilerParams(
            dimension_semantics=("parallel",),     # one sample per TC on v7x
            vmem_limit_bytes=32 * 1024 * 1024,     # safe on v5e / v6e / v7x
        ),
    )(xh0, *weight_args)


# ----------------------------------------------------------------------------
# Parameters
# ----------------------------------------------------------------------------

def init_params(key, conv_layers, t_audio, d_model, n_heads, d_ff):
    # TODO(synk): checkpoint loading (torch.load + fairseq build_model) has no
    # Pallas equivalent; weights are deterministically random-initialized.
    keys = iter(jax.random.split(key, 16))
    p = {}
    # conv layer 0: taps folded into a single [K*C_in, C_out] matmul weight
    c0, k0, s0 = conv_layers[0]
    w0 = jax.random.normal(next(keys), (k0, 1, c0), jnp.float32) / math.sqrt(k0)
    p["w0"] = w0.reshape(k0, c0).astype(jnp.bfloat16)
    p["b0"] = jnp.zeros((1, c0), jnp.float32)
    p["gn_g"] = jnp.ones((1, c0), jnp.float32)
    p["gn_b"] = jnp.zeros((1, c0), jnp.float32)
    # conv layers 1..2: per-tap weights + precomputed row-selection matrices
    t_in, c_in = (t_audio - k0) // s0 + 1, c0
    for li, (c_out, k, s) in enumerate(conv_layers[1:], start=1):
        sel, t_out = _make_selection_matrices(t_in, k, s)
        w = jax.random.normal(next(keys), (k, c_in, c_out), jnp.float32) / math.sqrt(k * c_in)
        p[f"sel{li}"] = sel
        p[f"w{li}"] = w.astype(jnp.bfloat16)
        p[f"b{li}"] = jnp.zeros((1, c_out), jnp.float32)
        t_in, c_in = t_out, c_out
    C = c_in
    p["ln_fe_g"] = jnp.ones((1, C), jnp.float32)
    p["ln_fe_b"] = jnp.zeros((1, C), jnp.float32)
    p["proj_w"] = (jax.random.normal(next(keys), (C, d_model), jnp.float32)
                   / math.sqrt(C)).astype(jnp.bfloat16)
    p["proj_b"] = jnp.zeros((1, d_model), jnp.float32)
    p["ln_enc_g"] = jnp.ones((1, d_model), jnp.float32)
    p["ln_enc_b"] = jnp.zeros((1, d_model), jnp.float32)
    p["wqkv"] = (jax.random.normal(next(keys), (d_model, 3 * d_model), jnp.float32)
                 / math.sqrt(d_model)).astype(jnp.bfloat16)
    p["bqkv"] = jnp.zeros((1, 3 * d_model), jnp.float32)
    p["wo"] = (jax.random.normal(next(keys), (d_model, d_model), jnp.float32)
               / math.sqrt(d_model)).astype(jnp.bfloat16)
    p["wo_b"] = jnp.zeros((1, d_model), jnp.float32)
    p["ln_sa_g"] = jnp.ones((1, d_model), jnp.float32)
    p["ln_sa_b"] = jnp.zeros((1, d_model), jnp.float32)
    p["ffn_w1"] = (jax.random.normal(next(keys), (d_model, d_ff), jnp.float32)
                   / math.sqrt(d_model)).astype(jnp.bfloat16)
    p["ffn_b1"] = jnp.zeros((1, d_ff), jnp.float32)
    p["ffn_w2"] = (jax.random.normal(next(keys), (d_ff, d_model), jnp.float32)
                   / math.sqrt(d_ff)).astype(jnp.bfloat16)
    p["ffn_b2"] = jnp.zeros((1, d_model), jnp.float32)
    p["ln_ff_g"] = jnp.ones((1, d_model), jnp.float32)
    p["ln_ff_b"] = jnp.zeros((1, d_model), jnp.float32)
    return p


# ----------------------------------------------------------------------------
# main
# ----------------------------------------------------------------------------

if __name__ == "__main__":
    key = jax.random.PRNGKey(0)
    k_param, k_audio = jax.random.split(key)

    # small wav2vec2-style config: (dim, kernel, stride)
    conv_layers = ((32, 10, 5), (32, 3, 2), (32, 2, 2))
    d_model, n_heads, d_ff = 32, 2, 64
    B, t_audio = 2, 1024

    params = init_params(k_param, conv_layers, t_audio, d_model, n_heads, d_ff)
    audio = jax.random.normal(k_audio, (B, t_audio), jnp.float32)

    fwd = jax.jit(functools.partial(wav2vec2_forward,
                                    conv_cfg=conv_layers, n_heads=n_heads))
    feats = jax.block_until_ready(fwd(params, audio))

    assert feats.shape == (B, 50, d_model), feats.shape
    assert bool(jnp.all(jnp.isfinite(feats)))
    print("KERNEL_OK")
</pallas_src>

<mosaic_0001>
module attributes {stable_mosaic.version = 11 : i64} {
  func.func @_wav2vec_fused_kernel(%arg0: i32, %arg1: memref<1x203x10xbf16, #tpu.memory_space<vmem>>, %arg2: memref<10x32xbf16, #tpu.memory_space<vmem>>, %arg3: memref<1x32xf32, #tpu.memory_space<vmem>>, %arg4: memref<1x32xf32, #tpu.memory_space<vmem>>, %arg5: memref<1x32xf32, #tpu.memory_space<vmem>>, %arg6: memref<3x101x203xbf16, #tpu.memory_space<vmem>>, %arg7: memref<3x32x32xbf16, #tpu.memory_space<vmem>>, %arg8: memref<1x32xf32, #tpu.memory_space<vmem>>, %arg9: memref<2x50x101xbf16, #tpu.memory_space<vmem>>, %arg10: memref<2x32x32xbf16, #tpu.memory_space<vmem>>, %arg11: memref<1x32xf32, #tpu.memory_space<vmem>>, %arg12: memref<1x32xf32, #tpu.memory_space<vmem>>, %arg13: memref<1x32xf32, #tpu.memory_space<vmem>>, %arg14: memref<32x32xbf16, #tpu.memory_space<vmem>>, %arg15: memref<1x32xf32, #tpu.memory_space<vmem>>, %arg16: memref<1x32xf32, #tpu.memory_space<vmem>>, %arg17: memref<1x32xf32, #tpu.memory_space<vmem>>, %arg18: memref<32x96xbf16, #tpu.memory_space<vmem>>, %arg19: memref<1x96xf32, #tpu.memory_space<vmem>>, %arg20: memref<32x32xbf16, #tpu.memory_space<vmem>>, %arg21: memref<1x32xf32, #tpu.memory_space<vmem>>, %arg22: memref<1x32xf32, #tpu.memory_space<vmem>>, %arg23: memref<1x32xf32, #tpu.memory_space<vmem>>, %arg24: memref<32x64xbf16, #tpu.memory_space<vmem>>, %arg25: memref<1x64xf32, #tpu.memory_space<vmem>>, %arg26: memref<64x32xbf16, #tpu.memory_space<vmem>>, %arg27: memref<1x32xf32, #tpu.memory_space<vmem>>, %arg28: memref<1x32xf32, #tpu.memory_space<vmem>>, %arg29: memref<1x32xf32, #tpu.memory_space<vmem>>, %arg30: memref<1x50x32xf32, #tpu.memory_space<vmem>>) attributes {dimension_semantics = [#tpu.dimension_semantics<parallel>], iteration_bounds = array<i64: 2>, scalar_prefetch = 0 : i64, scratch_operands = 0 : i64, tpu.core_type = #tpu.core_type<tc>, window_params = [{transform_indices = @transform_0, window_bounds = array<i64: 1, 203, 10>}, {pipeline_mode = #tpu.pipeline_mode<synchronous>, transform_indices = @transform_1, window_bounds = array<i64: 10, 32>}, {pipeline_mode = #tpu.pipeline_mode<synchronous>, transform_indices = @transform_2, window_bounds = array<i64: 1, 32>}, {pipeline_mode = #tpu.pipeline_mode<synchronous>, transform_indices = @transform_3, window_bounds = array<i64: 1, 32>}, {pipeline_mode = #tpu.pipeline_mode<synchronous>, transform_indices = @transform_4, window_bounds = array<i64: 1, 32>}, {pipeline_mode = #tpu.pipeline_mode<synchronous>, transform_indices = @transform_5, window_bounds = array<i64: 3, 101, 203>}, {pipeline_mode = #tpu.pipeline_mode<synchronous>, transform_indices = @transform_6, window_bounds = array<i64: 3, 32, 32>}, {pipeline_mode = #tpu.pipeline_mode<synchronous>, transform_indices = @transform_7, window_bounds = array<i64: 1, 32>}, {pipeline_mode = #tpu.pipeline_mode<synchronous>, transform_indices = @transform_8, window_bounds = array<i64: 2, 50, 101>}, {pipeline_mode = #tpu.pipeline_mode<synchronous>, transform_indices = @transform_9, window_bounds = array<i64: 2, 32, 32>}, {pipeline_mode = #tpu.pipeline_mode<synchronous>, transform_indices = @transform_10, window_bounds = array<i64: 1, 32>}, {pipeline_mode = #tpu.pipeline_mode<synchronous>, transform_indices = @transform_11, window_bounds = array<i64: 1, 32>}, {pipeline_mode = #tpu.pipeline_mode<synchronous>, transform_indices = @transform_12, window_bounds = array<i64: 1, 32>}, {pipeline_mode = #tpu.pipeline_mode<synchronous>, transform_indices = @transform_13, window_bounds = array<i64: 32, 32>}, {pipeline_mode = #tpu.pipeline_mode<synchronous>, transform_indices = @transform_14, window_bounds = array<i64: 1, 32>}, {pipeline_mode = #tpu.pipeline_mode<synchronous>, transform_indices = @transform_15, window_bounds = array<i64: 1, 32>}, {pipeline_mode = #tpu.pipeline_mode<synchronous>, transform_indices = @transform_16, window_bounds = array<i64: 1, 32>}, {pipeline_mode = #tpu.pipeline_mode<synchronous>, transform_indices = @transform_17, window_bounds = array<i64: 32, 96>}, {pipeline_mode = #tpu.pipeline_mode<synchronous>, transform_indices = @transform_18, window_bounds = array<i64: 1, 96>}, {pipeline_mode = #tpu.pipeline_mode<synchronous>, transform_indices = @transform_19, window_bounds = array<i64: 32, 32>}, {pipeline_mode = #tpu.pipeline_mode<synchronous>, transform_indices = @transform_20, window_bounds = array<i64: 1, 32>}, {pipeline_mode = #tpu.pipeline_mode<synchronous>, transform_indices = @transform_21, window_bounds = array<i64: 1, 32>}, {pipeline_mode = #tpu.pipeline_mode<synchronous>, transform_indices = @transform_22, window_bounds = array<i64: 1, 32>}, {pipeline_mode = #tpu.pipeline_mode<synchronous>, transform_indices = @transform_23, window_bounds = array<i64: 32, 64>}, {pipeline_mode = #tpu.pipeline_mode<synchronous>, transform_indices = @transform_24, window_bounds = array<i64: 1, 64>}, {pipeline_mode = #tpu.pipeline_mode<synchronous>, transform_indices = @transform_25, window_bounds = array<i64: 64, 32>}, {pipeline_mode = #tpu.pipeline_mode<synchronous>, transform_indices = @transform_26, window_bounds = array<i64: 1, 32>}, {pipeline_mode = #tpu.pipeline_mode<synchronous>, transform_indices = @transform_27, window_bounds = array<i64: 1, 32>}, {pipeline_mode = #tpu.pipeline_mode<synchronous>, transform_indices = @transform_28, window_bounds = array<i64: 1, 32>}, {transform_indices = @transform_29, window_bounds = array<i64: 1, 50, 32>}]} {
    %c0 = arith.constant 0 : index
    %c0_0 = arith.constant 0 : index
    %c0_1 = arith.constant 0 : index
    %0 = vector.load %arg1[%c0, %c0_0, %c0_1] : memref<1x203x10xbf16, #tpu.memory_space<vmem>>, vector<1x203x10xbf16>
    %1 = vector.shape_cast %0 : vector<1x203x10xbf16> to vector<203x10xbf16>
    %c0_2 = arith.constant 0 : index
    %c0_3 = arith.constant 0 : index
    %2 = vector.load %arg2[%c0_2, %c0_3] : memref<10x32xbf16, #tpu.memory_space<vmem>>, vector<10x32xbf16>
    %cst = arith.constant dense<0.000000e+00> : vector<203x32xf32>
    %3 = tpu.matmul %1, %2, %cst {dimension_numbers = #tpu.dot_dimension_numbers<[1], [0], [0], [1], [0, 0, 1, 1], [], []>} : vector<203x10xbf16>, vector<10x32xbf16>, vector<203x32xf32> -> vector<203x32xf32>
    %c0_4 = arith.constant 0 : index
    %c0_5 = arith.constant 0 : index
    %4 = vector.load %arg3[%c0_4, %c0_5] : memref<1x32xf32, #tpu.memory_space<vmem>>, vector<1x32xf32>
    %5 = vector.broadcast %4 : vector<1x32xf32> to vector<203x32xf32>
    %6 = arith.addf %3, %5 : vector<203x32xf32>
    %cst_6 = arith.constant dense<0.000000e+00> : vector<32xf32>
    %7 = vector.multi_reduction <add>, %6, %cst_6 [0] : vector<203x32xf32> to vector<32xf32>
    %8 = vector.shape_cast %7 : vector<32xf32> to vector<1x32xf32>
    %cst_7 = arith.constant 2.030000e+02 : f32
    %9 = vector.broadcast %cst_7 : f32 to vector<1x32xf32>
    %10 = arith.divf %8, %9 : vector<1x32xf32>
    %11 = vector.broadcast %10 : vector<1x32xf32> to vector<203x32xf32>
    %12 = arith.subf %6, %11 : vector<203x32xf32>
    %13 = arith.mulf %12, %12 : vector<203x32xf32>
    %cst_8 = arith.constant dense<0.000000e+00> : vector<32xf32>
    %14 = vector.multi_reduction <add>, %13, %cst_8 [0] : vector<203x32xf32> to vector<32xf32>
    %15 = vector.shape_cast %14 : vector<32xf32> to vector<1x32xf32>
    %cst_9 = arith.constant 2.030000e+02 : f32
    %16 = vector.broadcast %cst_9 : f32 to vector<1x32xf32>
    %17 = arith.divf %15, %16 : vector<1x32xf32>
    %18 = vector.broadcast %10 : vector<1x32xf32> to vector<203x32xf32>
    %19 = arith.subf %6, %18 : vector<203x32xf32>
    %cst_10 = arith.constant 9.99999974E-6 : f32
    %20 = vector.broadcast %cst_10 : f32 to vector<1x32xf32>
    %21 = arith.addf %17, %20 : vector<1x32xf32>
    %22 = math.rsqrt %21 : vector<1x32xf32>
    %23 = vector.broadcast %22 : vector<1x32xf32> to vector<203x32xf32>
    %24 = arith.mulf %19, %23 : vector<203x32xf32>
    %c0_11 = arith.constant 0 : index
    %c0_12 = arith.constant 0 : index
    %25 = vector.load %arg4[%c0_11, %c0_12] : memref<1x32xf32, #tpu.memory_space<vmem>>, vector<1x32xf32>
    %26 = vector.broadcast %25 : vector<1x32xf32> to vector<203x32xf32>
    %27 = arith.mulf %24, %26 : vector<203x32xf32>
    %c0_13 = arith.constant 0 : index
    %c0_14 = arith.constant 0 : index
    %28 = vector.load %arg5[%c0_13, %c0_14] : memref<1x32xf32, #tpu.memory_space<vmem>>, vector<1x32xf32>
    %29 = vector.broadcast %28 : vector<1x32xf32> to vector<203x32xf32>
    %30 = arith.addf %27, %29 : vector<203x32xf32>
    %cst_15 = arith.constant 5.000000e-01 : f32
    %31 = vector.broadcast %cst_15 : f32 to vector<203x32xf32>
    %32 = arith.mulf %31, %30 : vector<203x32xf32>
    %cst_16 = arith.constant 4.471500e-02 : f32
    %33 = vector.broadcast %cst_16 : f32 to vector<203x32xf32>
    %34 = arith.mulf %33, %30 : vector<203x32xf32>
    %35 = arith.mulf %34, %30 : vector<203x32xf32>
    %36 = arith.mulf %35, %30 : vector<203x32xf32>
    %37 = arith.addf %30, %36 : vector<203x32xf32>
    %cst_17 = arith.constant 0.797884583 : f32
    %38 = vector.broadcast %cst_17 : f32 to vector<203x32xf32>
    %39 = arith.mulf %38, %37 : vector<203x32xf32>
    %40 = math.tanh %39 : vector<203x32xf32>
    %cst_18 = arith.constant 1.000000e+00 : f32
    %41 = vector.broadcast %cst_18 : f32 to vector<203x32xf32>
    %42 = arith.addf %41, %40 : vector<203x32xf32>
    %43 = arith.mulf %32, %42 : vector<203x32xf32>
    %44 = arith.truncf %43 : vector<203x32xf32> to vector<203x32xbf16>
    %cst_19 = arith.constant 0.000000e+00 : f32
    %45 = vector.broadcast %cst_19 : f32 to vector<101x32xf32>
    %c0_20 = arith.constant 0 : index
    %c0_21 = arith.constant 0 : index
    %c0_22 = arith.constant 0 : index
    %46 = vector.load %arg6[%c0_20, %c0_21, %c0_22] : memref<3x101x203xbf16, #tpu.memory_space<vmem>>, vector<1x101x203xbf16>
    %47 = vector.shape_cast %46 : vector<1x101x203xbf16> to vector<101x203xbf16>
    %cst_23 = arith.constant dense<0.000000e+00> : vector<101x32xf32>
    %48 = tpu.matmul %47, %44, %cst_23 {dimension_numbers = #tpu.dot_dimension_numbers<[1], [0], [0], [1], [0, 0, 1, 1], [], []>} : vector<101x203xbf16>, vector<203x32xbf16>, vector<101x32xf32> -> vector<101x32xf32>
    %c0_24 = arith.constant 0 : index
    %c0_25 = arith.constant 0 : index
    %c0_26 = arith.constant 0 : index
    %49 = vector.load %arg7[%c0_24, %c0_25, %c0_26] : memref<3x32x32xbf16, #tpu.memory_space<vmem>>, vector<1x32x32xbf16>
    %50 = vector.shape_cast %49 : vector<1x32x32xbf16> to vector<32x32xbf16>
    %51 = arith.truncf %48 : vector<101x32xf32> to vector<101x32xbf16>
    %cst_27 = arith.constant dense<0.000000e+00> : vector<101x32xf32>
    %52 = tpu.matmul %51, %50, %cst_27 {dimension_numbers = #tpu.dot_dimension_numbers<[1], [0], [0], [1], [0, 0, 1, 1], [], []>} : vector<101x32xbf16>, vector<32x32xbf16>, vector<101x32xf32> -> vector<101x32xf32>
    %53 = arith.addf %45, %52 : vector<101x32xf32>
    %c1 = arith.constant 1 : index
    %c0_28 = arith.constant 0 : index
    %c0_29 = arith.constant 0 : index
    %54 = vector.load %arg6[%c1, %c0_28, %c0_29] : memref<3x101x203xbf16, #tpu.memory_space<vmem>>, vector<1x101x203xbf16>
    %55 = vector.shape_cast %54 : vector<1x101x203xbf16> to vector<101x203xbf16>
    %cst_30 = arith.constant dense<0.000000e+00> : vector<101x32xf32>
    %56 = tpu.matmul %55, %44, %cst_30 {dimension_numbers = #tpu.dot_dimension_numbers<[1], [0], [0], [1], [0, 0, 1, 1], [], []>} : vector<101x203xbf16>, vector<203x32xbf16>, vector<101x32xf32> -> vector<101x32xf32>
    %c1_31 = arith.constant 1 : index
    %c0_32 = arith.constant 0 : index
    %c0_33 = arith.constant 0 : index
    %57 = vector.load %arg7[%c1_31, %c0_32, %c0_33] : memref<3x32x32xbf16, #tpu.memory_space<vmem>>, vector<1x32x32xbf16>
    %58 = vector.shape_cast %57 : vector<1x32x32xbf16> to vector<32x32xbf16>
    %59 = arith.truncf %56 : vector<101x32xf32> to vector<101x32xbf16>
    %cst_34 = arith.constant dense<0.000000e+00> : vector<101x32xf32>
    %60 = tpu.matmul %59, %58, %cst_34 {dimension_numbers = #tpu.dot_dimension_numbers<[1], [0], [0], [1], [0, 0, 1, 1], [], []>} : vector<101x32xbf16>, vector<32x32xbf16>, vector<101x32xf32> -> vector<101x32xf32>
    %61 = arith.addf %53, %60 : vector<101x32xf32>
    %c2 = arith.constant 2 : index
    %c0_35 = arith.constant 0 : index
    %c0_36 = arith.constant 0 : index
    %62 = vector.load %arg6[%c2, %c0_35, %c0_36] : memref<3x101x203xbf16, #tpu.memory_space<vmem>>, vector<1x101x203xbf16>
    %63 = vector.shape_cast %62 : vector<1x101x203xbf16> to vector<101x203xbf16>
    %cst_37 = arith.constant dense<0.000000e+00> : vector<101x32xf32>
    %64 = tpu.matmul %63, %44, %cst_37 {dimension_numbers = #tpu.dot_dimension_numbers<[1], [0], [0], [1], [0, 0, 1, 1], [], []>} : vector<101x203xbf16>, vector<203x32xbf16>, vector<101x32xf32> -> vector<101x32xf32>
    %c2_38 = arith.constant 2 : index
    %c0_39 = arith.constant 0 : index
    %c0_40 = arith.constant 0 : index
    %65 = vector.load %arg7[%c2_38, %c0_39, %c0_40] : memref<3x32x32xbf16, #tpu.memory_space<vmem>>, vector<1x32x32xbf16>
    %66 = vector.shape_cast %65 : vector<1x32x32xbf16> to vector<32x32xbf16>
    %67 = arith.truncf %64 : vector<101x32xf32> to vector<101x32xbf16>
    %cst_41 = arith.constant dense<0.000000e+00> : vector<101x32xf32>
    %68 = tpu.matmul %67, %66, %cst_41 {dimension_numbers = #tpu.dot_dimension_numbers<[1], [0], [0], [1], [0, 0, 1, 1], [], []>} : vector<101x32xbf16>, vector<32x32xbf16>, vector<101x32xf32> -> vector<101x32xf32>
    %69 = arith.addf %61, %68 : vector<101x32xf32>
    %c0_42 = arith.constant 0 : index
    %c0_43 = arith.constant 0 : index
    %70 = vector.load %arg8[%c0_42, %c0_43] : memref<1x32xf32, #tpu.memory_space<vmem>>, vector<1x32xf32>
    %71 = vector.broadcast %70 : vector<1x32xf32> to vector<101x32xf32>
    %72 = arith.addf %69, %71 : vector<101x32xf32>
    %cst_44 = arith.constant 5.000000e-01 : f32
    %73 = vector.broadcast %cst_44 : f32 to vector<101x32xf32>
    %74 = arith.mulf %73, %72 : vector<101x32xf32>
    %cst_45 = arith.constant 4.471500e-02 : f32
    %75 = vector.broadcast %cst_45 : f32 to vector<101x32xf32>
    %76 = arith.mulf %75, %72 : vector<101x32xf32>
    %77 = arith.mulf %76, %72 : vector<101x32xf32>
    %78 = arith.mulf %77, %72 : vector<101x32xf32>
    %79 = arith.addf %72, %78 : vector<101x32xf32>
    %cst_46 = arith.constant 0.797884583 : f32
    %80 = vector.broadcast %cst_46 : f32 to vector<101x32xf32>
    %81 = arith.mulf %80, %79 : vector<101x32xf32>
    %82 = math.tanh %81 : vector<101x32xf32>
    %cst_47 = arith.constant 1.000000e+00 : f32
    %83 = vector.broadcast %cst_47 : f32 to vector<101x32xf32>
    %84 = arith.addf %83, %82 : vector<101x32xf32>
    %85 = arith.mulf %74, %84 : vector<101x32xf32>
    %86 = arith.truncf %85 : vector<101x32xf32> to vector<101x32xbf16>
    %cst_48 = arith.constant 0.000000e+00 : f32
    %87 = vector.broadcast %cst_48 : f32 to vector<50x32xf32>
    %c0_49 = arith.constant 0 : index
    %c0_50 = arith.constant 0 : index
    %c0_51 = arith.constant 0 : index
    %88 = vector.load %arg9[%c0_49, %c0_50, %c0_51] : memref<2x50x101xbf16, #tpu.memory_space<vmem>>, vector<1x50x101xbf16>
    %89 = vector.shape_cast %88 : vector<1x50x101xbf16> to vector<50x101xbf16>
    %cst_52 = arith.constant dense<0.000000e+00> : vector<50x32xf32>
    %90 = tpu.matmul %89, %86, %cst_52 {dimension_numbers = #tpu.dot_dimension_numbers<[1], [0], [0], [1], [0, 0, 1, 1], [], []>} : vector<50x101xbf16>, vector<101x32xbf16>, vector<50x32xf32> -> vector<50x32xf32>
    %c0_53 = arith.constant 0 : index
    %c0_54 = arith.constant 0 : index
    %c0_55 = arith.constant 0 : index
    %91 = vector.load %arg10[%c0_53, %c0_54, %c0_55] : memref<2x32x32xbf16, #tpu.memory_space<vmem>>, vector<1x32x32xbf16>
    %92 = vector.shape_cast %91 : vector<1x32x32xbf16> to vector<32x32xbf16>
    %93 = arith.truncf %90 : vector<50x32xf32> to vector<50x32xbf16>
    %cst_56 = arith.constant dense<0.000000e+00> : vector<50x32xf32>
    %94 = tpu.matmul %93, %92, %cst_56 {dimension_numbers = #tpu.dot_dimension_numbers<[1], [0], [0], [1], [0, 0, 1, 1], [], []>} : vector<50x32xbf16>, vector<32x32xbf16>, vector<50x32xf32> -> vector<50x32xf32>
    %95 = arith.addf %87, %94 : vector<50x32xf32>
    %c1_57 = arith.constant 1 : index
    %c0_58 = arith.constant 0 : index
    %c0_59 = arith.constant 0 : index
    %96 = vector.load %arg9[%c1_57, %c0_58, %c0_59] : memref<2x50x101xbf16, #tpu.memory_space<vmem>>, vector<1x50x101xbf16>
    %97 = vector.shape_cast %96 : vector<1x50x101xbf16> to vector<50x101xbf16>
    %cst_60 = arith.constant dense<0.000000e+00> : vector<50x32xf32>
    %98 = tpu.matmul %97, %86, %cst_60 {dimension_numbers = #tpu.dot_dimension_numbers<[1], [0], [0], [1], [0, 0, 1, 1], [], []>} : vector<50x101xbf16>, vector<101x32xbf16>, vector<50x32xf32> -> vector<50x32xf32>
    %c1_61 = arith.constant 1 : index
    %c0_62 = arith.constant 0 : index
    %c0_63 = arith.constant 0 : index
    %99 = vector.load %arg10[%c1_61, %c0_62, %c0_63] : memref<2x32x32xbf16, #tpu.memory_space<vmem>>, vector<1x32x32xbf16>
    %100 = vector.shape_cast %99 : vector<1x32x32xbf16> to vector<32x32xbf16>
    %101 = arith.truncf %98 : vector<50x32xf32> to vector<50x32xbf16>
    %cst_64 = arith.constant dense<0.000000e+00> : vector<50x32xf32>
    %102 = tpu.matmul %101, %100, %cst_64 {dimension_numbers = #tpu.dot_dimension_numbers<[1], [0], [0], [1], [0, 0, 1, 1], [], []>} : vector<50x32xbf16>, vector<32x32xbf16>, vector<50x32xf32> -> vector<50x32xf32>
    %103 = arith.addf %95, %102 : vector<50x32xf32>
    %c0_65 = arith.constant 0 : index
    %c0_66 = arith.constant 0 : index
    %104 = vector.load %arg11[%c0_65, %c0_66] : memref<1x32xf32, #tpu.memory_space<vmem>>, vector<1x32xf32>
    %105 = vector.broadcast %104 : vector<1x32xf32> to vector<50x32xf32>
    %106 = arith.addf %103, %105 : vector<50x32xf32>
    %cst_67 = arith.constant 5.000000e-01 : f32
    %107 = vector.broadcast %cst_67 : f32 to vector<50x32xf32>
    %108 = arith.mulf %107, %106 : vector<50x32xf32>
    %cst_68 = arith.constant 4.471500e-02 : f32
    %109 = vector.broadcast %cst_68 : f32 to vector<50x32xf32>
    %110 = arith.mulf %109, %106 : vector<50x32xf32>
    %111 = arith.mulf %110, %106 : vector<50x32xf32>
    %112 = arith.mulf %111, %106 : vector<50x32xf32>
    %113 = arith.addf %106, %112 : vector<50x32xf32>
    %cst_69 = arith.constant 0.797884583 : f32
    %114 = vector.broadcast %cst_69 : f32 to vector<50x32xf32>
    %115 = arith.mulf %114, %113 : vector<50x32xf32>
    %116 = math.tanh %115 : vector<50x32xf32>
    %cst_70 = arith.constant 1.000000e+00 : f32
    %117 = vector.broadcast %cst_70 : f32 to vector<50x32xf32>
    %118 = arith.addf %117, %116 : vector<50x32xf32>
    %119 = arith.mulf %108, %118 : vector<50x32xf32>
    %c0_71 = arith.constant 0 : index
    %c0_72 = arith.constant 0 : index
    %120 = vector.load %arg12[%c0_71, %c0_72] : memref<1x32xf32, #tpu.memory_space<vmem>>, vector<1x32xf32>
    %c0_73 = arith.constant 0 : index
    %c0_74 = arith.constant 0 : index
    %121 = vector.load %arg13[%c0_73, %c0_74] : memref<1x32xf32, #tpu.memory_space<vmem>>, vector<1x32xf32>
    %cst_75 = arith.constant dense<0.000000e+00> : vector<50xf32>
    %122 = vector.multi_reduction <add>, %119, %cst_75 [1] : vector<50x32xf32> to vector<50xf32>
    %123 = vector.shape_cast %122 : vector<50xf32> to vector<50x1xf32>
    %cst_76 = arith.constant 3.200000e+01 : f32
    %124 = vector.broadcast %cst_76 : f32 to vector<50x1xf32>
    %125 = arith.divf %123, %124 : vector<50x1xf32>
    %126 = vector.broadcast %125 : vector<50x1xf32> to vector<50x32xf32>
    %127 = arith.subf %119, %126 : vector<50x32xf32>
    %128 = arith.mulf %127, %127 : vector<50x32xf32>
    %cst_77 = arith.constant dense<0.000000e+00> : vector<50xf32>
    %129 = vector.multi_reduction <add>, %128, %cst_77 [1] : vector<50x32xf32> to vector<50xf32>
    %130 = vector.shape_cast %129 : vector<50xf32> to vector<50x1xf32>
    %cst_78 = arith.constant 3.200000e+01 : f32
    %131 = vector.broadcast %cst_78 : f32 to vector<50x1xf32>
    %132 = arith.divf %130, %131 : vector<50x1xf32>
    %133 = vector.broadcast %125 : vector<50x1xf32> to vector<50x32xf32>
    %134 = arith.subf %119, %133 : vector<50x32xf32>
    %cst_79 = arith.constant 9.99999974E-6 : f32
    %135 = vector.broadcast %cst_79 : f32 to vector<50x1xf32>
    %136 = arith.addf %132, %135 : vector<50x1xf32>
    %137 = math.rsqrt %136 : vector<50x1xf32>
    %138 = vector.broadcast %137 : vector<50x1xf32> to vector<50x32xf32>
    %139 = arith.mulf %134, %138 : vector<50x32xf32>
    %140 = vector.broadcast %120 : vector<1x32xf32> to vector<50x32xf32>
    %141 = arith.mulf %139, %140 : vector<50x32xf32>
    %142 = vector.broadcast %121 : vector<1x32xf32> to vector<50x32xf32>
    %143 = arith.addf %141, %142 : vector<50x32xf32>
    %c0_80 = arith.constant 0 : index
    %c0_81 = arith.constant 0 : index
    %144 = vector.load %arg14[%c0_80, %c0_81] : memref<32x32xbf16, #tpu.memory_space<vmem>>, vector<32x32xbf16>
    %145 = arith.truncf %143 : vector<50x32xf32> to vector<50x32xbf16>
    %cst_82 = arith.constant dense<0.000000e+00> : vector<50x32xf32>
    %146 = tpu.matmul %145, %144, %cst_82 {dimension_numbers = #tpu.dot_dimension_numbers<[1], [0], [0], [1], [0, 0, 1, 1], [], []>} : vector<50x32xbf16>, vector<32x32xbf16>, vector<50x32xf32> -> vector<50x32xf32>
    %c0_83 = arith.constant 0 : index
    %c0_84 = arith.constant 0 : index
    %147 = vector.load %arg15[%c0_83, %c0_84] : memref<1x32xf32, #tpu.memory_space<vmem>>, vector<1x32xf32>
    %148 = vector.broadcast %147 : vector<1x32xf32> to vector<50x32xf32>
    %149 = arith.addf %146, %148 : vector<50x32xf32>
    %c0_85 = arith.constant 0 : index
    %c0_86 = arith.constant 0 : index
    %150 = vector.load %arg16[%c0_85, %c0_86] : memref<1x32xf32, #tpu.memory_space<vmem>>, vector<1x32xf32>
    %c0_87 = arith.constant 0 : index
    %c0_88 = arith.constant 0 : index
    %151 = vector.load %arg17[%c0_87, %c0_88] : memref<1x32xf32, #tpu.memory_space<vmem>>, vector<1x32xf32>
    %cst_89 = arith.constant dense<0.000000e+00> : vector<50xf32>
    %152 = vector.multi_reduction <add>, %149, %cst_89 [1] : vector<50x32xf32> to vector<50xf32>
    %153 = vector.shape_cast %152 : vector<50xf32> to vector<50x1xf32>
    %cst_90 = arith.constant 3.200000e+01 : f32
    %154 = vector.broadcast %cst_90 : f32 to vector<50x1xf32>
    %155 = arith.divf %153, %154 : vector<50x1xf32>
    %156 = vector.broadcast %155 : vector<50x1xf32> to vector<50x32xf32>
    %157 = arith.subf %149, %156 : vector<50x32xf32>
    %158 = arith.mulf %157, %157 : vector<50x32xf32>
    %cst_91 = arith.constant dense<0.000000e+00> : vector<50xf32>
    %159 = vector.multi_reduction <add>, %158, %cst_91 [1] : vector<50x32xf32> to vector<50xf32>
    %160 = vector.shape_cast %159 : vector<50xf32> to vector<50x1xf32>
    %cst_92 = arith.constant 3.200000e+01 : f32
    %161 = vector.broadcast %cst_92 : f32 to vector<50x1xf32>
    %162 = arith.divf %160, %161 : vector<50x1xf32>
    %163 = vector.broadcast %155 : vector<50x1xf32> to vector<50x32xf32>
    %164 = arith.subf %149, %163 : vector<50x32xf32>
    %cst_93 = arith.constant 9.99999974E-6 : f32
    %165 = vector.broadcast %cst_93 : f32 to vector<50x1xf32>
    %166 = arith.addf %162, %165 : vector<50x1xf32>
    %167 = math.rsqrt %166 : vector<50x1xf32>
    %168 = vector.broadcast %167 : vector<50x1xf32> to vector<50x32xf32>
    %169 = arith.mulf %164, %168 : vector<50x32xf32>
    %170 = vector.broadcast %150 : vector<1x32xf32> to vector<50x32xf32>
    %171 = arith.mulf %169, %170 : vector<50x32xf32>
    %172 = vector.broadcast %151 : vector<1x32xf32> to vector<50x32xf32>
    %173 = arith.addf %171, %172 : vector<50x32xf32>
    %c0_94 = arith.constant 0 : index
    %c0_95 = arith.constant 0 : index
    %174 = vector.load %arg18[%c0_94, %c0_95] : memref<32x96xbf16, #tpu.memory_space<vmem>>, vector<32x96xbf16>
    %175 = arith.truncf %173 : vector<50x32xf32> to vector<50x32xbf16>
    %cst_96 = arith.constant dense<0.000000e+00> : vector<50x96xf32>
    %176 = tpu.matmul %175, %174, %cst_96 {dimension_numbers = #tpu.dot_dimension_numbers<[1], [0], [0], [1], [0, 0, 1, 1], [], []>} : vector<50x32xbf16>, vector<32x96xbf16>, vector<50x96xf32> -> vector<50x96xf32>
    %c0_97 = arith.constant 0 : index
    %c0_98 = arith.constant 0 : index
    %177 = vector.load %arg19[%c0_97, %c0_98] : memref<1x96xf32, #tpu.memory_space<vmem>>, vector<1x96xf32>
    %178 = vector.broadcast %177 : vector<1x96xf32> to vector<50x96xf32>
    %179 = arith.addf %176, %178 : vector<50x96xf32>
    %c0_99 = arith.constant 0 : index
    %c0_100 = arith.constant 0 : index
    %180 = vector.load %arg20[%c0_99, %c0_100] : memref<32x32xbf16, #tpu.memory_space<vmem>>, vector<32x32xbf16>
    %cst_101 = arith.constant 0.000000e+00 : f32
    %181 = vector.broadcast %cst_101 : f32 to vector<50x32xf32>
    %182 = vector.extract_strided_slice %179 {offsets = [0, 0], sizes = [50, 16], strides = [1, 1]} : vector<50x96xf32> to vector<50x16xf32>
    %183 = vector.extract_strided_slice %179 {offsets = [0, 32], sizes = [50, 16], strides = [1, 1]} : vector<50x96xf32> to vector<50x16xf32>
    %184 = vector.extract_strided_slice %179 {offsets = [0, 64], sizes = [50, 16], strides = [1, 1]} : vector<50x96xf32> to vector<50x16xf32>
    %185 = arith.truncf %182 : vector<50x16xf32> to vector<50x16xbf16>
    %186 = arith.truncf %183 : vector<50x16xf32> to vector<50x16xbf16>
    %cst_102 = arith.constant dense<0.000000e+00> : vector<50x50xf32>
    %187 = tpu.matmul %185, %186, %cst_102 {dimension_numbers = #tpu.dot_dimension_numbers<[1], [1], [0], [0], [0, 0, 1, 0], [], []>} : vector<50x16xbf16>, vector<50x16xbf16>, vector<50x50xf32> -> vector<50x50xf32>
    %cst_103 = arith.constant 2.500000e-01 : f32
    %188 = vector.broadcast %cst_103 : f32 to vector<50x50xf32>
    %189 = arith.mulf %187, %188 : vector<50x50xf32>
    %cst_104 = arith.constant dense<0xFF800000> : vector<50xf32>
    %190 = vector.multi_reduction <maximumf>, %189, %cst_104 [1] : vector<50x50xf32> to vector<50xf32>
    %191 = vector.shape_cast %190 : vector<50xf32> to vector<50x1xf32>
    %192 = vector.broadcast %191 : vector<50x1xf32> to vector<50x50xf32>
    %193 = arith.subf %189, %192 : vector<50x50xf32>
    %194 = math.exp %193 : vector<50x50xf32>
    %cst_105 = arith.constant dense<0.000000e+00> : vector<50xf32>
    %195 = vector.multi_reduction <add>, %194, %cst_105 [1] : vector<50x50xf32> to vector<50xf32>
    %196 = vector.shape_cast %195 : vector<50xf32> to vector<50x1xf32>
    %197 = tpu.reciprocal %196 {approx = true} : vector<50x1xf32> -> vector<50x1xf32>
    %198 = vector.broadcast %197 : vector<50x1xf32> to vector<50x50xf32>
    %199 = arith.mulf %194, %198 : vector<50x50xf32>
    %200 = arith.truncf %199 : vector<50x50xf32> to vector<50x50xbf16>
    %201 = arith.truncf %184 : vector<50x16xf32> to vector<50x16xbf16>
    %cst_106 = arith.constant dense<0.000000e+00> : vector<50x16xf32>
    %202 = tpu.matmul %200, %201, %cst_106 {dimension_numbers = #tpu.dot_dimension_numbers<[1], [0], [0], [1], [0, 0, 1, 1], [], []>} : vector<50x50xbf16>, vector<50x16xbf16>, vector<50x16xf32> -> vector<50x16xf32>
    %203 = vector.extract_strided_slice %180 {offsets = [0, 0], sizes = [16, 32], strides = [1, 1]} : vector<32x32xbf16> to vector<16x32xbf16>
    %204 = arith.truncf %202 : vector<50x16xf32> to vector<50x16xbf16>
    %cst_107 = arith.constant dense<0.000000e+00> : vector<50x32xf32>
    %205 = tpu.matmul %204, %203, %cst_107 {dimension_numbers = #tpu.dot_dimension_numbers<[1], [0], [0], [1], [0, 0, 1, 1], [], []>} : vector<50x16xbf16>, vector<16x32xbf16>, vector<50x32xf32> -> vector<50x32xf32>
    %206 = arith.addf %181, %205 : vector<50x32xf32>
    %207 = vector.extract_strided_slice %179 {offsets = [0, 16], sizes = [50, 16], strides = [1, 1]} : vector<50x96xf32> to vector<50x16xf32>
    %208 = vector.extract_strided_slice %179 {offsets = [0, 48], sizes = [50, 16], strides = [1, 1]} : vector<50x96xf32> to vector<50x16xf32>
    %209 = vector.extract_strided_slice %179 {offsets = [0, 80], sizes = [50, 16], strides = [1, 1]} : vector<50x96xf32> to vector<50x16xf32>
    %210 = arith.truncf %207 : vector<50x16xf32> to vector<50x16xbf16>
    %211 = arith.truncf %208 : vector<50x16xf32> to vector<50x16xbf16>
    %cst_108 = arith.constant dense<0.000000e+00> : vector<50x50xf32>
    %212 = tpu.matmul %210, %211, %cst_108 {dimension_numbers = #tpu.dot_dimension_numbers<[1], [1], [0], [0], [0, 0, 1, 0], [], []>} : vector<50x16xbf16>, vector<50x16xbf16>, vector<50x50xf32> -> vector<50x50xf32>
    %cst_109 = arith.constant 2.500000e-01 : f32
    %213 = vector.broadcast %cst_109 : f32 to vector<50x50xf32>
    %214 = arith.mulf %212, %213 : vector<50x50xf32>
    %cst_110 = arith.constant dense<0xFF800000> : vector<50xf32>
    %215 = vector.multi_reduction <maximumf>, %214, %cst_110 [1] : vector<50x50xf32> to vector<50xf32>
    %216 = vector.shape_cast %215 : vector<50xf32> to vector<50x1xf32>
    %217 = vector.broadcast %216 : vector<50x1xf32> to vector<50x50xf32>
    %218 = arith.subf %214, %217 : vector<50x50xf32>
    %219 = math.exp %218 : vector<50x50xf32>
    %cst_111 = arith.constant dense<0.000000e+00> : vector<50xf32>
    %220 = vector.multi_reduction <add>, %219, %cst_111 [1] : vector<50x50xf32> to vector<50xf32>
    %221 = vector.shape_cast %220 : vector<50xf32> to vector<50x1xf32>
    %222 = tpu.reciprocal %221 {approx = true} : vector<50x1xf32> -> vector<50x1xf32>
    %223 = vector.broadcast %222 : vector<50x1xf32> to vector<50x50xf32>
    %224 = arith.mulf %219, %223 : vector<50x50xf32>
    %225 = arith.truncf %224 : vector<50x50xf32> to vector<50x50xbf16>
    %226 = arith.truncf %209 : vector<50x16xf32> to vector<50x16xbf16>
    %cst_112 = arith.constant dense<0.000000e+00> : vector<50x16xf32>
    %227 = tpu.matmul %225, %226, %cst_112 {dimension_numbers = #tpu.dot_dimension_numbers<[1], [0], [0], [1], [0, 0, 1, 1], [], []>} : vector<50x50xbf16>, vector<50x16xbf16>, vector<50x16xf32> -> vector<50x16xf32>
    %228 = vector.extract_strided_slice %180 {offsets = [16, 0], sizes = [16, 32], strides = [1, 1]} : vector<32x32xbf16> to vector<16x32xbf16>
    %229 = arith.truncf %227 : vector<50x16xf32> to vector<50x16xbf16>
    %cst_113 = arith.constant dense<0.000000e+00> : vector<50x32xf32>
    %230 = tpu.matmul %229, %228, %cst_113 {dimension_numbers = #tpu.dot_dimension_numbers<[1], [0], [0], [1], [0, 0, 1, 1], [], []>} : vector<50x16xbf16>, vector<16x32xbf16>, vector<50x32xf32> -> vector<50x32xf32>
    %231 = arith.addf %206, %230 : vector<50x32xf32>
    %232 = arith.addf %173, %231 : vector<50x32xf32>
    %c0_114 = arith.constant 0 : index
    %c0_115 = arith.constant 0 : index
    %233 = vector.load %arg21[%c0_114, %c0_115] : memref<1x32xf32, #tpu.memory_space<vmem>>, vector<1x32xf32>
    %234 = vector.broadcast %233 : vector<1x32xf32> to vector<50x32xf32>
    %235 = arith.addf %232, %234 : vector<50x32xf32>
    %c0_116 = arith.constant 0 : index
    %c0_117 = arith.constant 0 : index
    %236 = vector.load %arg22[%c0_116, %c0_117] : memref<1x32xf32, #tpu.memory_space<vmem>>, vector<1x32xf32>
    %c0_118 = arith.constant 0 : index
    %c0_119 = arith.constant 0 : index
    %237 = vector.load %arg23[%c0_118, %c0_119] : memref<1x32xf32, #tpu.memory_space<vmem>>, vector<1x32xf32>
    %cst_120 = arith.constant dense<0.000000e+00> : vector<50xf32>
    %238 = vector.multi_reduction <add>, %235, %cst_120 [1] : vector<50x32xf32> to vector<50xf32>
    %239 = vector.shape_cast %238 : vector<50xf32> to vector<50x1xf32>
    %cst_121 = arith.constant 3.200000e+01 : f32
    %240 = vector.broadcast %cst_121 : f32 to vector<50x1xf32>
    %241 = arith.divf %239, %240 : vector<50x1xf32>
    %242 = vector.broadcast %241 : vector<50x1xf32> to vector<50x32xf32>
    %243 = arith.subf %235, %242 : vector<50x32xf32>
    %244 = arith.mulf %243, %243 : vector<50x32xf32>
    %cst_122 = arith.constant dense<0.000000e+00> : vector<50xf32>
    %245 = vector.multi_reduction <add>, %244, %cst_122 [1] : vector<50x32xf32> to vector<50xf32>
    %246 = vector.shape_cast %245 : vector<50xf32> to vector<50x1xf32>
    %cst_123 = arith.constant 3.200000e+01 : f32
    %247 = vector.broadcast %cst_123 : f32 to vector<50x1xf32>
    %248 = arith.divf %246, %247 : vector<50x1xf32>
    %249 = vector.broadcast %241 : vector<50x1xf32> to vector<50x32xf32>
    %250 = arith.subf %235, %249 : vector<50x32xf32>
    %cst_124 = arith.constant 9.99999974E-6 : f32
    %251 = vector.broadcast %cst_124 : f32 to vector<50x1xf32>
    %252 = arith.addf %248, %251 : vector<50x1xf32>
    %253 = math.rsqrt %252 : vector<50x1xf32>
    %254 = vector.broadcast %253 : vector<50x1xf32> to vector<50x32xf32>
    %255 = arith.mulf %250, %254 : vector<50x32xf32>
    %256 = vector.broadcast %236 : vector<1x32xf32> to vector<50x32xf32>
    %257 = arith.mulf %255, %256 : vector<50x32xf32>
    %258 = vector.broadcast %237 : vector<1x32xf32> to vector<50x32xf32>
    %259 = arith.addf %257, %258 : vector<50x32xf32>
    %c0_125 = arith.constant 0 : index
    %c0_126 = arith.constant 0 : index
    %260 = vector.load %arg24[%c0_125, %c0_126] : memref<32x64xbf16, #tpu.memory_space<vmem>>, vector<32x64xbf16>
    %261 = arith.truncf %259 : vector<50x32xf32> to vector<50x32xbf16>
    %cst_127 = arith.constant dense<0.000000e+00> : vector<50x64xf32>
    %262 = tpu.matmul %261, %260, %cst_127 {dimension_numbers = #tpu.dot_dimension_numbers<[1], [0], [0], [1], [0, 0, 1, 1], [], []>} : vector<50x32xbf16>, vector<32x64xbf16>, vector<50x64xf32> -> vector<50x64xf32>
    %c0_128 = arith.constant 0 : index
    %c0_129 = arith.constant 0 : index
    %263 = vector.load %arg25[%c0_128, %c0_129] : memref<1x64xf32, #tpu.memory_space<vmem>>, vector<1x64xf32>
    %264 = vector.broadcast %263 : vector<1x64xf32> to vector<50x64xf32>
    %265 = arith.addf %262, %264 : vector<50x64xf32>
    %cst_130 = arith.constant 5.000000e-01 : f32
    %266 = vector.broadcast %cst_130 : f32 to vector<50x64xf32>
    %267 = arith.mulf %266, %265 : vector<50x64xf32>
    %cst_131 = arith.constant 4.471500e-02 : f32
    %268 = vector.broadcast %cst_131 : f32 to vector<50x64xf32>
    %269 = arith.mulf %268, %265 : vector<50x64xf32>
    %270 = arith.mulf %269, %265 : vector<50x64xf32>
    %271 = arith.mulf %270, %265 : vector<50x64xf32>
    %272 = arith.addf %265, %271 : vector<50x64xf32>
    %cst_132 = arith.constant 0.797884583 : f32
    %273 = vector.broadcast %cst_132 : f32 to vector<50x64xf32>
    %274 = arith.mulf %273, %272 : vector<50x64xf32>
    %275 = math.tanh %274 : vector<50x64xf32>
    %cst_133 = arith.constant 1.000000e+00 : f32
    %276 = vector.broadcast %cst_133 : f32 to vector<50x64xf32>
    %277 = arith.addf %276, %275 : vector<50x64xf32>
    %278 = arith.mulf %267, %277 : vector<50x64xf32>
    %c0_134 = arith.constant 0 : index
    %c0_135 = arith.constant 0 : index
    %279 = vector.load %arg26[%c0_134, %c0_135] : memref<64x32xbf16, #tpu.memory_space<vmem>>, vector<64x32xbf16>
    %280 = arith.truncf %278 : vector<50x64xf32> to vector<50x64xbf16>
    %cst_136 = arith.constant dense<0.000000e+00> : vector<50x32xf32>
    %281 = tpu.matmul %280, %279, %cst_136 {dimension_numbers = #tpu.dot_dimension_numbers<[1], [0], [0], [1], [0, 0, 1, 1], [], []>} : vector<50x64xbf16>, vector<64x32xbf16>, vector<50x32xf32> -> vector<50x32xf32>
    %c0_137 = arith.constant 0 : index
    %c0_138 = arith.constant 0 : index
    %282 = vector.load %arg27[%c0_137, %c0_138] : memref<1x32xf32, #tpu.memory_space<vmem>>, vector<1x32xf32>
    %283 = vector.broadcast %282 : vector<1x32xf32> to vector<50x32xf32>
    %284 = arith.addf %281, %283 : vector<50x32xf32>
    %285 = arith.addf %259, %284 : vector<50x32xf32>
    %c0_139 = arith.constant 0 : index
    %c0_140 = arith.constant 0 : index
    %286 = vector.load %arg28[%c0_139, %c0_140] : memref<1x32xf32, #tpu.memory_space<vmem>>, vector<1x32xf32>
    %c0_141 = arith.constant 0 : index
    %c0_142 = arith.constant 0 : index
    %287 = vector.load %arg29[%c0_141, %c0_142] : memref<1x32xf32, #tpu.memory_space<vmem>>, vector<1x32xf32>
    %cst_143 = arith.constant dense<0.000000e+00> : vector<50xf32>
    %288 = vector.multi_reduction <add>, %285, %cst_143 [1] : vector<50x32xf32> to vector<50xf32>
    %289 = vector.shape_cast %288 : vector<50xf32> to vector<50x1xf32>
    %cst_144 = arith.constant 3.200000e+01 : f32
    %290 = vector.broadcast %cst_144 : f32 to vector<50x1xf32>
    %291 = arith.divf %289, %290 : vector<50x1xf32>
    %292 = vector.broadcast %291 : vector<50x1xf32> to vector<50x32xf32>
    %293 = arith.subf %285, %292 : vector<50x32xf32>
    %294 = arith.mulf %293, %293 : vector<50x32xf32>
    %cst_145 = arith.constant dense<0.000000e+00> : vector<50xf32>
    %295 = vector.multi_reduction <add>, %294, %cst_145 [1] : vector<50x32xf32> to vector<50xf32>
    %296 = vector.shape_cast %295 : vector<50xf32> to vector<50x1xf32>
    %cst_146 = arith.constant 3.200000e+01 : f32
    %297 = vector.broadcast %cst_146 : f32 to vector<50x1xf32>
    %298 = arith.divf %296, %297 : vector<50x1xf32>
    %299 = vector.broadcast %291 : vector<50x1xf32> to vector<50x32xf32>
    %300 = arith.subf %285, %299 : vector<50x32xf32>
    %cst_147 = arith.constant 9.99999974E-6 : f32
    %301 = vector.broadcast %cst_147 : f32 to vector<50x1xf32>
    %302 = arith.addf %298, %301 : vector<50x1xf32>
    %303 = math.rsqrt %302 : vector<50x1xf32>
    %304 = vector.broadcast %303 : vector<50x1xf32> to vector<50x32xf32>
    %305 = arith.mulf %300, %304 : vector<50x32xf32>
    %306 = vector.broadcast %286 : vector<1x32xf32> to vector<50x32xf32>
    %307 = arith.mulf %305, %306 : vector<50x32xf32>
    %308 = vector.broadcast %287 : vector<1x32xf32> to vector<50x32xf32>
    %309 = arith.addf %307, %308 : vector<50x32xf32>
    %c0_148 = arith.constant 0 : index
    %c0_149 = arith.constant 0 : index
    %c0_150 = arith.constant 0 : index
    %310 = vector.load %arg30[%c0_148, %c0_149, %c0_150] : memref<1x50x32xf32, #tpu.memory_space<vmem>>, vector<1x50x32xf32>
    %311 = vector.shape_cast %310 : vector<1x50x32xf32> to vector<50x32xf32>
    %312 = vector.shape_cast %309 : vector<50x32xf32> to vector<1x50x32xf32>
    tpu.vector_store %arg30[%c0_148, %c0_149, %c0_150], %312 {strides = array<i32>} : memref<1x50x32xf32, #tpu.memory_space<vmem>>, vector<1x50x32xf32>,
    return
  }
  func.func @transform_0(%arg0: i32) -> (i32, i32, i32) {
    %c0_i32 = arith.constant 0 : i32
    %c0_i32_0 = arith.constant 0 : i32
    %c0_i32_1 = arith.constant 0 : i32
    return %arg0, %c0_i32, %c0_i32_0 : i32, i32, i32
  }
  func.func @transform_1(%arg0: i32) -> (i32, i32) {
    %c0_i32 = arith.constant 0 : i32
    %c0_i32_0 = arith.constant 0 : i32
    %c0_i32_1 = arith.constant 0 : i32
    return %c0_i32, %c0_i32_0 : i32, i32
  }
  func.func @transform_2(%arg0: i32) -> (i32, i32) {
    %c0_i32 = arith.constant 0 : i32
    %c0_i32_0 = arith.constant 0 : i32
    %c0_i32_1 = arith.constant 0 : i32
    return %c0_i32, %c0_i32_0 : i32, i32
  }
  func.func @transform_3(%arg0: i32) -> (i32, i32) {
    %c0_i32 = arith.constant 0 : i32
    %c0_i32_0 = arith.constant 0 : i32
    %c0_i32_1 = arith.constant 0 : i32
    return %c0_i32, %c0_i32_0 : i32, i32
  }
  func.func @transform_4(%arg0: i32) -> (i32, i32) {
    %c0_i32 = arith.constant 0 : i32
    %c0_i32_0 = arith.constant 0 : i32
    %c0_i32_1 = arith.constant 0 : i32
    return %c0_i32, %c0_i32_0 : i32, i32
  }
  func.func @transform_5(%arg0: i32) -> (i32, i32, i32) {
    %c0_i32 = arith.constant 0 : i32
    %c0_i32_0 = arith.constant 0 : i32
    %c0_i32_1 = arith.constant 0 : i32
    %c0_i32_2 = arith.constant 0 : i32
    return %c0_i32, %c0_i32_0, %c0_i32_1 : i32, i32, i32
  }
  func.func @transform_6(%arg0: i32) -> (i32, i32, i32) {
    %c0_i32 = arith.constant 0 : i32
    %c0_i32_0 = arith.constant 0 : i32
    %c0_i32_1 = arith.constant 0 : i32
    %c0_i32_2 = arith.constant 0 : i32
    return %c0_i32, %c0_i32_0, %c0_i32_1 : i32, i32, i32
  }
  func.func @transform_7(%arg0: i32) -> (i32, i32) {
    %c0_i32 = arith.constant 0 : i32
    %c0_i32_0 = arith.constant 0 : i32
    %c0_i32_1 = arith.constant 0 : i32
    return %c0_i32, %c0_i32_0 : i32, i32
  }
  func.func @transform_8(%arg0: i32) -> (i32, i32, i32) {
    %c0_i32 = arith.constant 0 : i32
    %c0_i32_0 = arith.constant 0 : i32
    %c0_i32_1 = arith.constant 0 : i32
    %c0_i32_2 = arith.constant 0 : i32
    return %c0_i32, %c0_i32_0, %c0_i32_1 : i32, i32, i32
  }
  func.func @transform_9(%arg0: i32) -> (i32, i32, i32) {
    %c0_i32 = arith.constant 0 : i32
    %c0_i32_0 = arith.constant 0 : i32
    %c0_i32_1 = arith.constant 0 : i32
    %c0_i32_2 = arith.constant 0 : i32
    return %c0_i32, %c0_i32_0, %c0_i32_1 : i32, i32, i32
  }
  func.func @transform_10(%arg0: i32) -> (i32, i32) {
    %c0_i32 = arith.constant 0 : i32
    %c0_i32_0 = arith.constant 0 : i32
    %c0_i32_1 = arith.constant 0 : i32
    return %c0_i32, %c0_i32_0 : i32, i32
  }
  func.func @transform_11(%arg0: i32) -> (i32, i32) {
    %c0_i32 = arith.constant 0 : i32
    %c0_i32_0 = arith.constant 0 : i32
    %c0_i32_1 = arith.constant 0 : i32
    return %c0_i32, %c0_i32_0 : i32, i32
  }
  func.func @transform_12(%arg0: i32) -> (i32, i32) {
    %c0_i32 = arith.constant 0 : i32
    %c0_i32_0 = arith.constant 0 : i32
    %c0_i32_1 = arith.constant 0 : i32
    return %c0_i32, %c0_i32_0 : i32, i32
  }
  func.func @transform_13(%arg0: i32) -> (i32, i32) {
    %c0_i32 = arith.constant 0 : i32
    %c0_i32_0 = arith.constant 0 : i32
    %c0_i32_1 = arith.constant 0 : i32
    return %c0_i32, %c0_i32_0 : i32, i32
  }
  func.func @transform_14(%arg0: i32) -> (i32, i32) {
    %c0_i32 = arith.constant 0 : i32
    %c0_i32_0 = arith.constant 0 : i32
    %c0_i32_1 = arith.constant 0 : i32
    return %c0_i32, %c0_i32_0 : i32, i32
  }
  func.func @transform_15(%arg0: i32) -> (i32, i32) {
    %c0_i32 = arith.constant 0 : i32
    %c0_i32_0 = arith.constant 0 : i32
    %c0_i32_1 = arith.constant 0 : i32
    return %c0_i32, %c0_i32_0 : i32, i32
  }
  func.func @transform_16(%arg0: i32) -> (i32, i32) {
    %c0_i32 = arith.constant 0 : i32
    %c0_i32_0 = arith.constant 0 : i32
    %c0_i32_1 = arith.constant 0 : i32
    return %c0_i32, %c0_i32_0 : i32, i32
  }
  func.func @transform_17(%arg0: i32) -> (i32, i32) {
    %c0_i32 = arith.constant 0 : i32
    %c0_i32_0 = arith.constant 0 : i32
    %c0_i32_1 = arith.constant 0 : i32
    return %c0_i32, %c0_i32_0 : i32, i32
  }
  func.func @transform_18(%arg0: i32) -> (i32, i32) {
    %c0_i32 = arith.constant 0 : i32
    %c0_i32_0 = arith.constant 0 : i32
    %c0_i32_1 = arith.constant 0 : i32
    return %c0_i32, %c0_i32_0 : i32, i32
  }
  func.func @transform_19(%arg0: i32) -> (i32, i32) {
    %c0_i32 = arith.constant 0 : i32
    %c0_i32_0 = arith.constant 0 : i32
    %c0_i32_1 = arith.constant 0 : i32
    return %c0_i32, %c0_i32_0 : i32, i32
  }
  func.func @transform_20(%arg0: i32) -> (i32, i32) {
    %c0_i32 = arith.constant 0 : i32
    %c0_i32_0 = arith.constant 0 : i32
    %c0_i32_1 = arith.constant 0 : i32
    return %c0_i32, %c0_i32_0 : i32, i32
  }
  func.func @transform_21(%arg0: i32) -> (i32, i32) {
    %c0_i32 = arith.constant 0 : i32
    %c0_i32_0 = arith.constant 0 : i32
    %c0_i32_1 = arith.constant 0 : i32
    return %c0_i32, %c0_i32_0 : i32, i32
  }
  func.func @transform_22(%arg0: i32) -> (i32, i32) {
    %c0_i32 = arith.constant 0 : i32
    %c0_i32_0 = arith.constant 0 : i32
    %c0_i32_1 = arith.constant 0 : i32
    return %c0_i32, %c0_i32_0 : i32, i32
  }
  func.func @transform_23(%arg0: i32) -> (i32, i32) {
    %c0_i32 = arith.constant 0 : i32
    %c0_i32_0 = arith.constant 0 : i32
    %c0_i32_1 = arith.constant 0 : i32
    return %c0_i32, %c0_i32_0 : i32, i32
  }
  func.func @transform_24(%arg0: i32) -> (i32, i32) {
    %c0_i32 = arith.constant 0 : i32
    %c0_i32_0 = arith.constant 0 : i32
    %c0_i32_1 = arith.constant 0 : i32
    return %c0_i32, %c0_i32_0 : i32, i32
  }
  func.func @transform_25(%arg0: i32) -> (i32, i32) {
    %c0_i32 = arith.constant 0 : i32
    %c0_i32_0 = arith.constant 0 : i32
    %c0_i32_1 = arith.constant 0 : i32
    return %c0_i32, %c0_i32_0 : i32, i32
  }
  func.func @transform_26(%arg0: i32) -> (i32, i32) {
    %c0_i32 = arith.constant 0 : i32
    %c0_i32_0 = arith.constant 0 : i32
    %c0_i32_1 = arith.constant 0 : i32
    return %c0_i32, %c0_i32_0 : i32, i32
  }
  func.func @transform_27(%arg0: i32) -> (i32, i32) {
    %c0_i32 = arith.constant 0 : i32
    %c0_i32_0 = arith.constant 0 : i32
    %c0_i32_1 = arith.constant 0 : i32
    return %c0_i32, %c0_i32_0 : i32, i32
  }
  func.func @transform_28(%arg0: i32) -> (i32, i32) {
    %c0_i32 = arith.constant 0 : i32
    %c0_i32_0 = arith.constant 0 : i32
    %c0_i32_1 = arith.constant 0 : i32
    return %c0_i32, %c0_i32_0 : i32, i32
  }
  func.func @transform_29(%arg0: i32) -> (i32, i32, i32) {
    %c0_i32 = arith.constant 0 : i32
    %c0_i32_0 = arith.constant 0 : i32
    %c0_i32_1 = arith.constant 0 : i32
    return %arg0, %c0_i32, %c0_i32_0 : i32, i32, i32
  }
}

</mosaic_0001>

<bundles_post_ra>
// kernel: wav2vec2_forward.1
= control target key start
LH: loop header
LB: loop body
LE: loop exit
PB: predicated region body
PF: predicated region fallthrough
CT: control target
= control target key end

     0   :  { %s6292_s6 = smov 1   ;;  %s6293_s10 = smov 2   ;;  %s7998_s0 = inlined_call_operand.smem [shape: u32[30], index: -1, kind: input, shape index: {}] }
   0x1   :  { %s6338_s5 = sld [smem:[%s7998_s0]]   ;;  %s6294_s14 = smov 3  }
   0x2   :  { %s6343_s9 = sld [smem:[%s7998_s0 + %s6292_s6]]   ;;  %s6295_s18 = smov 4  }
   0x3   :  { %s6348_s13 = sld [smem:[%s7998_s0 + %s6293_s10]]   ;;  %s6296_s22 = smov 5  }
   0x4   :  { %s6353_s17 = sld [smem:[%s7998_s0 + %s6294_s14]]   ;;  %s6297_s26 = smov 6  }
   0x5   :  { %s6358_s21 = sld [smem:[%s7998_s0 + %s6295_s18]]   ;;  %s6298_s30 = smov 7  }
   0x6   :  { %s6363_s25 = sld [smem:[%s7998_s0 + %s6296_s22]]   ;;  %s6299_s4 = smov 8  }
   0x7   :  { %s6368_s29 = sld [smem:[%s7998_s0 + %s6297_s26]]   ;;  %s6300_s10 = smov 9  }
   0x8   :  { %s6373_s3 = sld [smem:[%s7998_s0 + %s6298_s30]]   ;;  %s6301_s15 = smov 10  }
   0x9   :  { %s6378_s8 = sld [smem:[%s7998_s0 + %s6299_s4]]   ;;  %s6302_s20 = smov 11  }
   0xa   :  { %s6383_s14 = sld [smem:[%s7998_s0 + %s6300_s10]]   ;;  %s6303_s26 = smov 12  }
   0xb   :  { %s6388_s19 = sld [smem:[%s7998_s0 + %s6301_s15]]   ;;  %s6304_s1 = smov 13  }
   0xc   :  { %s6393_s24 = sld [smem:[%s7998_s0 + %s6302_s20]]   ;;  %s6305_s7 = smov 14  }
   0xd   :  { %s6398_s30 = sld [smem:[%s7998_s0 + %s6303_s26]]   ;;  %s6306_s15 = smov 15  }
   0xe   :  { %s6403_s6 = sld [smem:[%s7998_s0 + %s6304_s1]]   ;;  %s6307_s22 = smov 16  }
   0xf   :  { %s6408_s12 = sld [smem:[%s7998_s0 + %s6305_s7]]   ;;  %s6308_s28 = smov 17  }
  0x10   :  { %s6413_s20 = sld [smem:[%s7998_s0 + %s6306_s15]]   ;;  %s6309_s7 = smov 18  }
  0x11   :  { %s6418_s27 = sld [smem:[%s7998_s0 + %s6307_s22]]   ;;  %s6310_s15 = smov 19  }
  0x12   :  { %s6423_s4 = sld [smem:[%s7998_s0 + %s6308_s28]]   ;;  %s6311_s22 = smov 20  }
  0x13   :  { %s6312_s28 = smov 21  }
  0x15   :  { %8003 = sst [smem:[#allocation2_spill]] %s6408_s12 }
  0x16   :  { %8004 = sst [smem:[#allocation3_spill]] %s6413_s20 }
  0x17   :  { %8005 = sst [smem:[#allocation4_spill]] %s6418_s27 }
  0x18   :  { %8006 = sst [smem:[#allocation5_spill]] %s6423_s4 }
  0x19   :  { %s6428_s12 = sld [smem:[%s7998_s0 + %s6309_s7]]   ;;  %s6313_s7 = smov 22  }
  0x1a   :  { %s6433_s20 = sld [smem:[%s7998_s0 + %s6310_s15]]   ;;  %s6314_s15 = smov 23  }
  0x1b   :  { %s6438_s27 = sld [smem:[%s7998_s0 + %s6311_s22]]   ;;  %s6315_s22 = smov 24  }
  0x1c   :  { %s6443_s4 = sld [smem:[%s7998_s0 + %s6312_s28]]   ;;  %s6316_s28 = smov 25  }
  0x1f   :  { %8007 = sst [smem:[#allocation6_spill]] %s6428_s12 }
  0x20   :  { %8008 = sst [smem:[#allocation7_spill]] %s6433_s20 }
  0x21   :  { %8009 = sst [smem:[#allocation8_spill]] %s6438_s27 }
  0x22   :  { %8010 = sst [smem:[#allocation9_spill]] %s6443_s4 }
  0x23   :  { %s6448_s12 = sld [smem:[%s7998_s0 + %s6313_s7]]   ;;  %s6317_s7 = smov 26  }
  0x24   :  { %s6453_s20 = sld [smem:[%s7998_s0 + %s6314_s15]]   ;;  %s6318_s15 = smov 27  }
  0x25   :  { %s6458_s27 = sld [smem:[%s7998_s0 + %s6315_s22]]   ;;  %s6319_s22 = smov 28  }
  0x26   :  { %s6463_s4 = sld [smem:[%s7998_s0 + %s6316_s28]]   ;;  %s6320_s28 = smov 29  }
  0x29   :  { %8011 = sst [smem:[#allocation10_spill]] %s6448_s12 }
  0x2a   :  { %8012 = sst [smem:[#allocation11_spill]] %s6453_s20 }
  0x2b   :  { %8013 = sst [smem:[#allocation12_spill]] %s6458_s27 }
  0x2c   :  { %8014 = sst [smem:[#allocation13_spill]] %s6463_s4 }
  0x2d   :  { %s6468_s12 = sld [smem:[%s7998_s0 + %s6317_s7]]   ;;  %s6485_s7 = smov 0  }
  0x2e   :  { %s6473_s20 = sld [smem:[%s7998_s0 + %s6318_s15]]  }
  0x2f   :  { %s6478_s27 = sld [smem:[%s7998_s0 + %s6319_s22]]  }
  0x30   :  { %s6483_s4 = sld [smem:[%s7998_s0 + %s6320_s28]]  }
  0x31 LB: > { %s5126_s10 = sadd.s32 4294967295, %s6290_s7   ;;  %p5130_p0 = scmp.ge.s32.totalorder %s6290_s7, 1  ;;  %s6290_s7 = sphi %s6485_s7, %s69_s7  }
  0x32   : > { %p817_p1 = scmp.lt.s32.totalorder %s6290_s7, 3 }
  0x34   : > { %p818_p2 = pnand %p5130_p0, %p817_p1 }
  0x35   : > { %vm1049_vm0 = vcmask (!%p818_p2), 1044480   ;;  %v6321_v0 = vmov (!%p818_p2), 0.0   ;;  %v5960_v1 = vld [vmem:[%s6343_s9] sm:$0x1f] (!%p818_p2)   ;;  %p893_p3 = scmp.lt.s32.totalorder (!%p818_p2), %s5126_s10, 1  ;;  %vm6322_vm1 = vmmov (!%p818_p2), 0  }
  0x36   : > { %821 = sbr.rel (%p818_p2) target bundleno = 5727 (0x165f), region = 136  ;;  %5538 = vmatprep.subr.bf16.mxu0 (!%p818_p2), %v6321_v0  ;;  %5892 = vmatprep.subr.bf16.mxu1 (!%p818_p2), %v6321_v0  ;;  %v1051_v2 = vsel (!%p818_p2), %vm1049_vm0, %v5960_v1, 0  ;;  %vm1009_vm2 = vcmask (!%p818_p2), 80896   ;;  %v6560_v24 = vld [vmem:[%s6348_s13] ss:$0 sm:$0xff] (!%p818_p2)  ;;  %vm1190_vm3 = vcmask (!%p818_p2), 261120  }
  0x37   : > { %5540 = vmatprep.mubr.msk.bf16.mxu0 (!%p818_p2), %vm6322_vm1, %v6321_v0  ;;  %5568 = vmatprep.mubr.msk.bf16.mxu1 (!%p818_p2), %vm6322_vm1, %v6321_v0  ;;  %vm1240_vm4 = vcmask (!%p818_p2), 256000   ;;  %vm1775_vm5 = vcmask (!%p818_p2), 613376   ;;  %vm1797_vm6 = vcmask (!%p818_p2), 1045504   ;;  %vm2837_vm7 = vcmask (!%p818_p2), 826368   ;;  %s8015_s15 = sld [smem:[#allocation2_spill]] (!%p818_p2)  ;;  %s8016_s16 = sld [smem:[#allocation5_spill]] (!%p818_p2) }
  0x38   : > { %5539 = vmatpush3.bf16.msra.mxu0 (!%p818_p2), %v1051_v2  ;;  %5893 = vmatpush3.bf16.msra.mxu1 (!%p818_p2), %v1051_v2  ;;  %vm2850_vm8 = vcmask (!%p818_p2), 1041408   ;;  %vm2851_vm9 = vcmask (!%p818_p2), 1042432   ;;  %vm3313_vm10 = vcmask (!%p818_p2), 254976   ;;  %s8017_s18 = sld [smem:[#allocation3_spill]] (!%p818_p2)  ;;  %s8018_s22 = sld [smem:[#allocation4_spill]] (!%p818_p2)  ;;  %vm3759_vm11 = vcmask (!%p818_p2), 130048  }
  0x39   : > { %s8019_s23 = sld [smem:[#allocation6_spill]] (!%p818_p2)  ;;  %s6325_s26 = smov (!%p818_p2), 96   ;;  %vm3855_vm12 = vcmask (!%p818_p2), 408576   ;;  %vm3874_vm13 = vcmask (!%p818_p2), 402432   ;;  %vm3961_vm14 = vcmask (!%p818_p2), 1040384   ;;  %vm4832_vm15 = vcmask (!%p818_p2), 523264  }
  0x3a   : > { %s6326_s28 = smov (!%p818_p2), 64   ;;  %s6327_s1 = smov (!%p818_p2), 80  }
  0x3b   : > { %s6328_s2 = smov (!%p818_p2), 112  }
  0x3d   : > { %s8028_s10 = smov (!%p893_p3, %s5126_s10), 1 }
  0x3e   : > { %s5912_s0 = smul.u32 104, %s8028_s10 }
  0x40   : > { %s6505_s11 = scalar_lea.vmem %s6338_s5, %s5912_s0  ;;  %s6329_s0 = smov 48  }
  0x41   : > { %v5961_v3 = vld [vmem:[%s6505_s11] sm:$0xff]   ;;  %v5965_v4 = vld [vmem:[%s6505_s11 + $0x38] sm:$0xff]   ;;  %v5962_v5 = vld [vmem:[%s6505_s11 + $0x8] sm:$0xff]  }
  0x42   : > { %5541 = vmatmul.mubr.msk.bf16.vlgmr.msra.gmra.mrb[0].mxu0 %vm1009_vm2, %v5961_v3  ;;  %5569 = vmatmul.mubr.msk.bf16.vlgmr.msra.gmra.mrb[0].mxu1 %vm1009_vm2, %v5965_v4  ;;  %v5967_v6 = vld [vmem:[%s6505_s11 + $0x40] sm:$0xff]   ;;  %v5963_v7 = vld [vmem:[%s6505_s11 + $0x10] sm:$0xff]   ;;  %v5969_v8 = vld [vmem:[%s6505_s11 + $0x48] sm:$0xff]  }
  0x43   : > { %5544 = vmatprep.mubr.msk.bf16.mxu0 %vm6322_vm1, %v6321_v0  ;;  %5572 = vmatprep.mubr.msk.bf16.mxu1 %vm6322_vm1, %v6321_v0  ;;  %v5964_v9 = vld [vmem:[%s6505_s11 + $0x18] sm:$0xff]   ;;  %v5971_v10 = vld [vmem:[%s6505_s11 + $0x50] sm:$0xff]   ;;  %v5966_v11 = vld [vmem:[%s6505_s11 + $0x20] sm:$0xff]  }
  0x44   : > { %v5972_v12 = vld [vmem:[%s6505_s11 + $0x58] sm:$0xff]   ;;  %v5968_v13 = vld [vmem:[%s6505_s11 + $0x28] sm:$0xff]   ;;  %v5973_v14 = vld [vmem:[%s6505_s11 + $0x60] sm:$0x3f]  }
  0x45   : > { %v5970_v15 = vld [vmem:[%s6505_s11 + $0x30] sm:$0xff]   ;;  %s8020_s11 = sld [smem:[#allocation7_spill]] }
  0x4a   : > { %5545 = vmatmul.mubr.msk.bf16.gmra.mrb[4].mxu0 %vm1009_vm2, %v5962_v5  ;;  %5573 = vmatmul.mubr.msk.bf16.gmra.mrb[4].mxu1 %vm1009_vm2, %v5967_v6 }
  0x4b   : > { %5548 = vmatprep.mubr.msk.bf16.mxu0 %vm6322_vm1, %v6321_v0  ;;  %5576 = vmatprep.mubr.msk.bf16.mxu1 %vm6322_vm1, %v6321_v0 }
  0x52   : > { %5549 = vmatmul.mubr.msk.bf16.gmra.mrb[8].mxu0 %vm1009_vm2, %v5963_v7  ;;  %5577 = vmatmul.mubr.msk.bf16.gmra.mrb[8].mxu1 %vm1009_vm2, %v5969_v8 }
  0x53   : > { %5552 = vmatprep.mubr.msk.bf16.mxu0 %vm6322_vm1, %v6321_v0  ;;  %5580 = vmatprep.mubr.msk.bf16.mxu1 %vm6322_vm1, %v6321_v0 }
  0x5a   : > { %5553 = vmatmul.mubr.msk.bf16.gmra.mrb[12].mxu0 %vm1009_vm2, %v5964_v9  ;;  %5581 = vmatmul.mubr.msk.bf16.gmra.mrb[12].mxu1 %vm1009_vm2, %v5971_v10 }
  0x5b   : > { %5556 = vmatprep.mubr.msk.bf16.mxu0 %vm6322_vm1, %v6321_v0  ;;  %5584 = vmatprep.mubr.msk.bf16.mxu1 %vm6322_vm1, %v6321_v0 }
  0x62   : > { %5557 = vmatmul.mubr.msk.bf16.gmra.mrb[16].mxu0 %vm1009_vm2, %v5966_v11  ;;  %5585 = vmatmul.mubr.msk.bf16.gmra.mrb[16].mxu1 %vm1009_vm2, %v5972_v12 }
  0x63   : > { %5560 = vmatprep.mubr.msk.bf16.mxu0 %vm6322_vm1, %v6321_v0  ;;  %5588 = vmatprep.mubr.msk.bf16.mxu1 %vm6322_vm1, %v6321_v0 }
  0x6a   : > { %5561 = vmatmul.mubr.msk.bf16.gmra.mrb[20].mxu0 %vm1009_vm2, %v5968_v13  ;;  %5589 = vmatmul.mubr.msk.bf16.gmra.mrb[20].mxu1 %vm1009_vm2, %v5973_v14 }
  0x6b   : > { %5564 = vmatprep.mubr.msk.bf16.mxu0 %vm6322_vm1, %v6321_v0 }
  0x72   : > { %5565 = vmatmul.mubr.msk.bf16.gmra.mrb[24].mxu0 %vm1009_vm2, %v5970_v15 }
 0x115   : > { %v1087_v16 = vpop.f32.mrb[0].mxu0  ;;  %v6555_v20 = vpop.f32.mrb[0].mxu1 }
 0x116   : > { %v5542_v17 = vpop.f32.mrb[1].mxu0  ;;  %v5570_v21 = vpop.f32.mrb[1].mxu1  ;;  %v6566_v29 = vadd.f32 %v6560_v24, %v1087_v16 }
 0x117   : > { %v1090_v18 = vpop.f32.mrb[2].mxu0  ;;  %v6557_v22 = vpop.f32.mrb[2].mxu1 }
 0x118   : > { %v5543_v19 = vpop.f32.mrb[3].mxu0  ;;  %v5571_v23 = vpop.f32.mrb[3].mxu1  ;;  %v6563_v26 = vadd.f32 %v6560_v24, %v1090_v18  ;;  %v1191_v36 = vsel %vm1190_vm3, %v6566_v29, 0.0 }
 0x11a   : > { %v1192_v33 = vsel %vm1190_vm3, %v6563_v26, 0.0 }
 0x11b   : > { %v1193_v40 = vadd.f32 %v1192_v33, %v1191_v36 }
 0x11d   : > { %v1095_v25 = vpop.f32.mrb[4].mxu0  ;;  %v6571_v32 = vpop.f32.mrb[4].mxu1 }
 0x11e   : > { %v5546_v27 = vpop.f32.mrb[5].mxu0  ;;  %v6569_v30 = vadd.f32 %v6560_v24, %v1095_v25  ;;  %v5574_v34 = vpop.f32.mrb[5].mxu1 }
 0x11f   : > { %v1098_v28 = vpop.f32.mrb[6].mxu0  ;;  %v6575_v35 = vpop.f32.mrb[6].mxu1 }
 0x120   : > { %v5547_v31 = vpop.f32.mrb[7].mxu0  ;;  %v1194_v37 = vsel %vm1190_vm3, %v6569_v30, 0.0  ;;  %v6582_v38 = vadd.f32 %v6560_v24, %v1098_v28  ;;  %v5575_v39 = vpop.f32.mrb[7].mxu1 }
 0x121   : > { %v1195_v44 = vadd.f32 %v1194_v37, %v1193_v40 }
 0x122   : > { %v1196_v46 = vsel %vm1190_vm3, %v6582_v38, 0.0 }
 0x123   : > { %v1197_v52 = vadd.f32 %v1196_v46, %v1195_v44 }
 0x125   : > { %v1103_v41 = vpop.f32.mrb[8].mxu0  ;;  %v6589_v48 = vpop.f32.mrb[8].mxu1 }
 0x126   : > { %v6585_v42 = vadd.f32 %v6560_v24, %v1103_v41  ;;  %v5550_v43 = vpop.f32.mrb[9].mxu0  ;;  %v5578_v51 = vpop.f32.mrb[9].mxu1 }
 0x127   : > { %v1106_v45 = vpop.f32.mrb[10].mxu0  ;;  %v6596_v53 = vpop.f32.mrb[10].mxu1 }
 0x128   : > { %v5551_v47 = vpop.f32.mrb[11].mxu0  ;;  %v1198_v49 = vsel %vm1190_vm3, %v6585_v42, 0.0  ;;  %v6594_v50 = vadd.f32 %v6560_v24, %v1106_v45  ;;  %v5579_v54 = vpop.f32.mrb[11].mxu1 }
 0x129   : > { %v1199_v55 = vadd.f32 %v1198_v49, %v1197_v52  ;;  %v6633_v54 = vadd.f32 %v6560_v24, %v6555_v20  ;;  %v6646_v20 = vadd.f32 %v6560_v24, %v6571_v32 }
 0x12a   : > { %v1200_v57 = vsel %vm1190_vm3, %v6594_v50, 0.0 }
 0x12b   : > { %v1201_v1 = vadd.f32 %v1200_v57, %v1199_v55 }
 0x12d   : > { %v1111_v56 = vpop.f32.mrb[12].mxu0  ;;  %v1167_v2 = vpop.f32.mrb[12].mxu1 }
 0x12e   : > { %v6601_v58 = vadd.f32 %v6560_v24, %v1111_v56  ;;  %v5554_v59 = vpop.f32.mrb[13].mxu0  ;;  %v5582_v3 = vpop.f32.mrb[13].mxu1 }
 0x12f   : > { %v1114_v60 = vpop.f32.mrb[14].mxu0  ;;  %v1170_v5 = vpop.f32.mrb[14].mxu1 }
 0x130   : > { %v1202_v61 = vsel %vm1190_vm3, %v6601_v58, 0.0  ;;  %v6606_v62 = vadd.f32 %v6560_v24, %v1114_v60  ;;  %v5555_v63 = vpop.f32.mrb[15].mxu0  ;;  %v5583_v7 = vpop.f32.mrb[15].mxu1  ;;  %v6639_v60 = vadd.f32 %v6560_v24, %v6557_v22 }
 0x131   : > { %v1203_v4 = vadd.f32 %v1202_v61, %v1201_v1  ;;  %v1218_v1 = vsel %vm1190_vm3, %v6633_v54, 0.0  ;;  %v1222_v7 = vsel %vm1190_vm3, %v6646_v20, 0.0 }
 0x132   : > { %v1204_v6 = vsel %vm1190_vm3, %v6606_v62, 0.0 }
 0x133   : > { %v1205_v11 = vadd.f32 %v1204_v6, %v1203_v4  ;;  %v1220_v4 = vsel %vm1190_vm3, %v6639_v60, 0.0  ;;  %v6652_v6 = vadd.f32 %v6560_v24, %v6575_v35 }
 0x135   : > { %v1119_v8 = vpop.f32.mrb[16].mxu0  ;;  %v1175_v17 = vpop.f32.mrb[16].mxu1  ;;  %v1224_v32 = vsel %vm1190_vm3, %v6652_v6, 0.0 }
 0x136   : > { %v6611_v9 = vadd.f32 %v6560_v24, %v1119_v8  ;;  %v5558_v10 = vpop.f32.mrb[17].mxu0  ;;  %v5586_v19 = vpop.f32.mrb[17].mxu1  ;;  %v6658_v8 = vadd.f32 %v6560_v24, %v6589_v48 }
 0x137   : > { %v1122_v12 = vpop.f32.mrb[18].mxu0  ;;  %v1178_v23 = vpop.f32.mrb[18].mxu1 }
 0x138   : > { %v1206_v13 = vsel %vm1190_vm3, %v6611_v9, 0.0  ;;  %v6616_v14 = vadd.f32 %v6560_v24, %v1122_v12  ;;  %v5559_v15 = vpop.f32.mrb[19].mxu0  ;;  %v5587_v25 = vpop.f32.mrb[19].mxu1  ;;  %v1226_v35 = vsel %vm1190_vm3, %v6658_v8, 0.0 }
 0x139   : > { %v1207_v16 = vadd.f32 %v1206_v13, %v1205_v11  ;;  %v6664_v11 = vadd.f32 %v6560_v24, %v6596_v53  ;;  %v6669_v13 = vadd.f32 %v6560_v24, %v1167_v2  ;;  %v1176_v53 = vadd.f32 %v6560_v24, %v1175_v17 }
 0x13a   : > { %v1208_v18 = vsel %vm1190_vm3, %v6616_v14, 0.0 }
 0x13b   : > { %v1209_v21 = vadd.f32 %v1208_v18, %v1207_v16  ;;  %v1228_v48 = vsel %vm1190_vm3, %v6664_v11, 0.0  ;;  %v6674_v16 = vadd.f32 %v6560_v24, %v1170_v5  ;;  %v1230_v19 = vsel %vm1190_vm3, %v6669_v13, 0.0 }
 0x13d   : > { %v1127_v27 = vpop.f32.mrb[20].mxu0  ;;  %v1183_v40 = vpop.f32.mrb[20].mxu1  ;;  %v1232_v25 = vsel %vm1190_vm3, %v6674_v16, 0.0 }
 0x13e   : > { %v6621_v28 = vadd.f32 %v6560_v24, %v1127_v27  ;;  %v5562_v31 = vpop.f32.mrb[21].mxu0  ;;  %v5590_v43 = vpop.f32.mrb[21].mxu1  ;;  %v1179_v27 = vadd.f32 %v6560_v24, %v1178_v23  ;;  %v1184_v5 = vadd.f32 %v6560_v24, %v1183_v40 }
 0x13f   : > { %v1130_v33 = vpop.f32.mrb[22].mxu0  ;;  %v1186_v45 = vpop.f32.mrb[22].mxu1 }
 0x140   : > { %v1210_v34 = vsel %vm1190_vm3, %v6621_v28, 0.0  ;;  %v6626_v36 = vadd.f32 %v6560_v24, %v1130_v33  ;;  %v5563_v37 = vpop.f32.mrb[23].mxu0  ;;  %v5591_v46 = vpop.f32.mrb[23].mxu1  ;;  %v1234_v33 = vsel %vm1190_vm3, %v1176_v53, 0.0  ;;  %v1238_v17 = vsel %vm1190_vm3, %v1184_v5, 0.0 }
 0x141   : > { %v1211_v39 = vadd.f32 %v1210_v34, %v1209_v21  ;;  %v6323_v21 = vmov 0   ;;  %v1236_v37 = vsel %vm1190_vm3, %v1179_v27, 0.0 }
 0x142   : > { %v1212_v41 = vsel %vm1190_vm3, %v6626_v36, 0.0  ;;  %1803 = vmatprep.subr.bf16.mxu1 %v6323_v21  ;;  %1997 = vmatprep.subr.bf16.mxu0 %v6323_v21 }
 0x143   : > { %v1213_v44 = vadd.f32 %v1212_v41, %v1211_v39  ;;  %v1187_v39 = vadd.f32 %v6560_v24, %v1186_v45 }
 0x145   : > { %v1135_v47 = vpop.f32.mrb[24].mxu0 }
 0x146   : > { %v1136_v49 = vadd.f32 %v6560_v24, %v1135_v47  ;;  %v5566_v51 = vpop.f32.mrb[25].mxu0 }
 0x147   : > { %v1138_v52 = vpop.f32.mrb[26].mxu0 }
 0x148   : > { %v1214_v55 = vsel %vm1190_vm3, %v1136_v49, 0.0  ;;  %v1139_v56 = vadd.f32 %v6560_v24, %v1138_v52  ;;  %v5567_v57 = vpop.f32.mrb[27].mxu0 }
 0x149   : > { %v1215_v59 = vadd.f32 %v1214_v55, %v1213_v44  ;;  %v1241_v44 = vsel %vm1240_vm4, %v1187_v39, 0.0 }
 0x14a   : > { %v1216_v61 = vsel %vm1190_vm3, %v1139_v56, 0.0 }
 0x14b   : > { %v1217_v63 = vadd.f32 %v1216_v61, %v1215_v59 }
 0x14d   : > { %v1219_v3 = vadd.f32 %v1218_v1, %v1217_v63 }
 0x14f   : > { %v1221_v22 = vadd.f32 %v1220_v4, %v1219_v3 }
 0x151   : > { %v1223_v10 = vadd.f32 %v1222_v7, %v1221_v22 }
 0x153   : > { %v1225_v12 = vadd.f32 %v1224_v32, %v1223_v10 }
 0x155   : > { %v1227_v15 = vadd.f32 %v1226_v35, %v1225_v12 }
 0x157   : > { %v1229_v18 = vadd.f32 %v1228_v48, %v1227_v15 }
 0x159   : > { %v1231_v2 = vadd.f32 %v1230_v19, %v1229_v18 }
 0x15b   : > { %v1233_v31 = vadd.f32 %v1232_v25, %v1231_v2 }
 0x15d   : > { %v1235_v34 = vadd.f32 %v1234_v33, %v1233_v31 }
 0x15f   : > { %v1237_v41 = vadd.f32 %v1236_v37, %v1235_v34 }
 0x161   : > { %v1239_v43 = vadd.f32 %v1238_v17, %v1237_v41 }
 0x163   : > { %v1242_v46 = vadd.f32 %v1241_v44, %v1239_v43 }
 0x165   : > { %v1243_v47 = vrot.slane %v1242_v46, 4 }
 0x167   : > { %v1244_v23 = vadd.f32 %v1243_v47, %v1242_v46 }
 0x169   : > { %v1245_v51 = vrot.slane %v1244_v23, 2 }
 0x16b   : > { %v1246_v40 = vadd.f32 %v1245_v51, %v1244_v23 }
 0x16d   : > { %v1247_v52 = vrot.slane %v1246_v40, 1 }
 0x16f   : > { %v1248_v55 = vadd.f32 %v1247_v52, %v1246_v40 }
 0x171   : > { %v6690_v57 = vmul.f32 0.0049261083, %v1248_v55 }
 0x173   : > { %v6694_v59 = vsub.f32 %v6611_v9, %v6690_v57  ;;  %v6698_v24 = vsub.f32 %v6616_v14, %v6690_v57  ;;  %v6702_v45 = vsub.f32 %v6621_v28, %v6690_v57  ;;  %v6706_v61 = vsub.f32 %v6626_v36, %v6690_v57 }
 0x174   : > { %v6709_v63 = vsub.f32 %v1136_v49, %v6690_v57  ;;  %v6712_v1 = vsub.f32 %v1139_v56, %v6690_v57  ;;  %v6716_v9 = vsub.f32 %v6566_v29, %v6690_v57  ;;  %v6720_v14 = vsub.f32 %v6563_v26, %v6690_v57 }
 0x175   : > { %v6723_v28 = vsub.f32 %v1176_v53, %v6690_v57  ;;  %v6726_v36 = vsub.f32 %v1179_v27, %v6690_v57  ;;  %v6729_v49 = vsub.f32 %v1184_v5, %v6690_v57  ;;  %v6732_v56 = vsub.f32 %v1187_v39, %v6690_v57 }
 0x176   : > { %v6736_v29 = vsub.f32 %v6569_v30, %v6690_v57  ;;  %v6740_v26 = vsub.f32 %v6582_v38, %v6690_v57  ;;  %v1277_v3 = vmul.f32 %v6716_v9, %v6716_v9  ;;  %v1278_v4 = vmul.f32 %v6720_v14, %v6720_v14 }
 0x177   : > { %v6748_v22 = vsub.f32 %v6585_v42, %v6690_v57  ;;  %v6754_v30 = vsub.f32 %v6594_v50, %v6690_v57  ;;  %v6762_v35 = vsub.f32 %v6601_v58, %v6690_v57  ;;  %v6769_v50 = vsub.f32 %v6606_v62, %v6690_v57 }
 0x178   : > { %v1279_v7 = vmul.f32 %v6736_v29, %v6736_v29  ;;  %v1280_v38 = vmul.f32 %v6740_v26, %v6740_v26  ;;  %v1303_v10 = vsel %vm1190_vm3, %v1277_v3, 0.0  ;;  %v1304_v32 = vsel %vm1190_vm3, %v1278_v4, 0.0 }
 0x179   : > { %v1305_v12 = vadd.f32 %v1304_v32, %v1303_v10  ;;  %v1281_v42 = vmul.f32 %v6748_v22, %v6748_v22  ;;  %v1282_v18 = vmul.f32 %v6754_v30, %v6754_v30  ;;  %v1283_v58 = vmul.f32 %v6762_v35, %v6762_v35 }
 0x17a   : > { %v1306_v15 = vsel %vm1190_vm3, %v1279_v7, 0.0  ;;  %v1308_v19 = vsel %vm1190_vm3, %v1280_v38, 0.0  ;;  %v1284_v27 = vmul.f32 %v6769_v50, %v6769_v50  ;;  %v1285_v62 = vmul.f32 %v6694_v59, %v6694_v59 }
 0x17b   : > { %v1307_v48 = vadd.f32 %v1306_v15, %v1305_v12  ;;  %v1310_v2 = vsel %vm1190_vm3, %v1281_v42, 0.0  ;;  %v1312_v5 = vsel %vm1190_vm3, %v1282_v18, 0.0  ;;  %v1314_v33 = vsel %vm1190_vm3, %v1283_v58, 0.0 }
 0x17c   : > { %v1286_v37 = vmul.f32 %v6698_v24, %v6698_v24  ;;  %v1316_v17 = vsel %vm1190_vm3, %v1284_v27, 0.0  ;;  %v1287_v41 = vmul.f32 %v6702_v45, %v6702_v45  ;;  %v1318_v43 = vsel %vm1190_vm3, %v1285_v62, 0.0 }
 0x17d   : > { %v1309_v53 = vadd.f32 %v1308_v19, %v1307_v48  ;;  %v1288_v46 = vmul.f32 %v6706_v61, %v6706_v61  ;;  %v6794_v51 = vsub.f32 %v6633_v54, %v6690_v57  ;;  %v1289_v40 = vmul.f32 %v6709_v63, %v6709_v63 }
 0x17e   : > { %v1320_v47 = vsel %vm1190_vm3, %v1286_v37, 0.0  ;;  %v1322_v52 = vsel %vm1190_vm3, %v1287_v41, 0.0  ;;  %v6801_v3 = vsub.f32 %v6639_v60, %v6690_v57  ;;  %v1290_v4 = vmul.f32 %v6712_v1, %v6712_v1 }
 0x17f   : > { %v1311_v25 = vadd.f32 %v1310_v2, %v1309_v53  ;;  %v1324_v7 = vsel %vm1190_vm3, %v1288_v46, 0.0  ;;  %v6808_v54 = vsub.f32 %v6646_v20, %v6690_v57  ;;  %v1291_v10 = vmul.f32 %v6794_v51, %v6794_v51 }
 0x180   : > { %v1326_v32 = vsel %vm1190_vm3, %v1289_v40, 0.0  ;;  %v6815_v60 = vsub.f32 %v6652_v6, %v6690_v57  ;;  %v1292_v42 = vmul.f32 %v6801_v3, %v6801_v3  ;;  %v1328_v15 = vsel %vm1190_vm3, %v1290_v4, 0.0 }
 0x181   : > { %v1313_v31 = vadd.f32 %v1312_v5, %v1311_v25  ;;  %v6822_v20 = vsub.f32 %v6658_v8, %v6690_v57  ;;  %v1293_v18 = vmul.f32 %v6808_v54, %v6808_v54  ;;  %v1330_v19 = vsel %vm1190_vm3, %v1291_v10, 0.0 }
 0x182   : > { %v6829_v6 = vsub.f32 %v6664_v11, %v6690_v57  ;;  %v1294_v58 = vmul.f32 %v6815_v60, %v6815_v60  ;;  %v1332_v2 = vsel %vm1190_vm3, %v1292_v42, 0.0  ;;  %v1271_v8 = vsub.f32 %v6669_v13, %v6690_v57  ;;  %v5976_v42 = vld [vmem:[%s6363_s25 + $0x4] ss:$8 sps:$4 sm:$0xff]  }
 0x183   : > { %v1315_v34 = vadd.f32 %v1314_v33, %v1313_v31  ;;  %v1295_v27 = vmul.f32 %v6822_v20, %v6822_v20  ;;  %v1334_v5 = vsel %vm1190_vm3, %v1293_v18, 0.0  ;;  %v1272_v62 = vsub.f32 %v6674_v16, %v6690_v57  ;;  %5177 = vmatprep.mubr.msk.bf16.mxu1 %vm1775_vm5, %v5976_v42 }
 0x184   : > { %v1296_v11 = vmul.f32 %v6829_v6, %v6829_v6  ;;  %v1336_v33 = vsel %vm1190_vm3, %v1294_v58, 0.0  ;;  %v1297_v37 = vmul.f32 %v1271_v8, %v1271_v8  ;;  %v1300_v46 = vmul.f32 %v6726_v36, %v6726_v36 }
 0x185   : > { %v1317_v39 = vadd.f32 %v1316_v17, %v1315_v34  ;;  %v1338_v17 = vsel %vm1190_vm3, %v1295_v27, 0.0  ;;  %v1298_v13 = vmul.f32 %v1272_v62, %v1272_v62  ;;  %v1301_v40 = vmul.f32 %v6729_v49, %v6729_v49 }
 0x186   : > { %v1340_v41 = vsel %vm1190_vm3, %v1296_v11, 0.0  ;;  %v1342_v16 = vsel %vm1190_vm3, %v1297_v37, 0.0  ;;  %v1302_v4 = vmul.f32 %v6732_v56, %v6732_v56 }
 0x187   : > { %v1319_v44 = vadd.f32 %v1318_v43, %v1317_v39  ;;  %v1350_v10 = vsel %vm1190_vm3, %v1301_v40, 0.0 }
 0x189   : > { %v1321_v23 = vadd.f32 %v1320_v47, %v1319_v44  ;;  %v1299_v44 = vmul.f32 %v6723_v28, %v6723_v28  ;;  %v1344_v47 = vsel %vm1190_vm3, %v1298_v13, 0.0 }
 0x18b   : > { %v1323_v55 = vadd.f32 %v1322_v52, %v1321_v23  ;;  %v1346_v52 = vsel %vm1190_vm3, %v1299_v44, 0.0 }
 0x18d   : > { %v1325_v38 = vadd.f32 %v1324_v7, %v1323_v55  ;;  %v1348_v7 = vsel %vm1190_vm3, %v1300_v46, 0.0 }
 0x18f   : > { %v1327_v12 = vadd.f32 %v1326_v32, %v1325_v38 }
 0x191   : > { %v1329_v48 = vadd.f32 %v1328_v15, %v1327_v12  ;;  %v1352_v12 = vsel %vm1240_vm4, %v1302_v4, 0.0 }
 0x193   : > { %v1331_v53 = vadd.f32 %v1330_v19, %v1329_v48  ;;  %v5979_v48 = vld [vmem:[%s6363_s25 + $0x6c] ss:$8 sps:$4 sm:$0xff]  }
 0x194   : > { %5211 = vmatprep.mubr.msk.bf16.mxu0 %vm1775_vm5, %v5979_v48 }
 0x195   : > { %v1333_v25 = vadd.f32 %v1332_v2, %v1331_v53 }
 0x197   : > { %v1335_v31 = vadd.f32 %v1334_v5, %v1333_v25 }
 0x199   : > { %v1337_v34 = vadd.f32 %v1336_v33, %v1335_v31  ;;  %v6868_v33 = vld [vmem:[%s6353_s17] ss:$0 sm:$0xff] }
 0x19b   : > { %v1339_v39 = vadd.f32 %v1338_v17, %v1337_v34 }
 0x19d   : > { %v1341_v43 = vadd.f32 %v1340_v41, %v1339_v39 }
 0x19f   : > { %v1343_v57 = vadd.f32 %v1342_v16, %v1341_v43 }
 0x1a1   : > { %v1345_v23 = vadd.f32 %v1344_v47, %v1343_v57 }
 0x1a3   : > { %v1347_v55 = vadd.f32 %v1346_v52, %v1345_v23 }
 0x1a5   : > { %v1349_v38 = vadd.f32 %v1348_v7, %v1347_v55 }
 0x1a7   : > { %v1351_v32 = vadd.f32 %v1350_v10, %v1349_v38 }
 0x1a9   : > { %v1353_v15 = vadd.f32 %v1352_v12, %v1351_v32 }
 0x1ab   : > { %v1354_v18 = vrot.slane %v1353_v15, 4 }
 0x1ad   : > { %v1355_v19 = vadd.f32 %v1354_v18, %v1353_v15 }
 0x1af   : > { %v1356_v53 = vrot.slane %v1355_v19, 2 }
 0x1b1   : > { %v1357_v58 = vadd.f32 %v1356_v53, %v1355_v19 }
 0x1b3   : > { %v1358_v2 = vrot.slane %v1357_v58, 1 }
 0x1b5   : > { %v1359_v25 = vadd.f32 %v1358_v2, %v1357_v58 }
 0x1b7   : > { %v1360_v27 = vmul.f32 0.0049261083, %v1359_v25 }
 0x1b9   : > { %v1361_v5 = vadd.f32 1e-05, %v1360_v27 }
 0x1bb   : > { %6064 = vrsqrt.f32 %v1361_v5 }
 0x1c5   : > { %v6864_v31 = vpop.eup %6064 }
 0x1c6   : > { %v1383_v11 = vmul.f32 %v6864_v31, %v1271_v8  ;;  %v1363_v34 = vmul.f32 %v6864_v31, %v6716_v9  ;;  %v1364_v37 = vmul.f32 %v6864_v31, %v6720_v14  ;;  %v1384_v17 = vmul.f32 %v6864_v31, %v1272_v62  ;;  %v6882_v8 = vld [vmem:[%s6358_s21] ss:$0 sm:$0xff] }
 0x1c7   : > { %v1385_v39 = vmul.f32 %v6864_v31, %v6723_v28  ;;  %v1386_v13 = vmul.f32 %v6864_v31, %v6726_v36  ;;  %v1388_v41 = vmul.f32 %v6864_v31, %v6732_v56  ;;  %v1365_v14 = vmul.f32 %v6864_v31, %v6736_v29 }
 0x1c8   : > { %v1396_v43 = vmul.f32 %v6868_v33, %v1363_v34  ;;  %v1397_v9 = vmul.f32 %v6868_v33, %v1364_v37  ;;  %v1366_v62 = vmul.f32 %v6864_v31, %v6740_v26  ;;  %v6892_v28 = vmul.f32 %v6864_v31, %v6822_v20 }
 0x1c9   : > { %v6896_v36 = vmul.f32 %v6864_v31, %v6829_v6  ;;  %v1387_v56 = vmul.f32 %v6864_v31, %v6729_v49  ;;  %v6901_v44 = vmul.f32 %v6868_v33, %v1383_v11  ;;  %v1398_v26 = vmul.f32 %v6868_v33, %v1365_v14 }
 0x1ca   : > { %v1429_v16 = vadd.f32 %v6882_v8, %v1396_v43  ;;  %v1430_v29 = vadd.f32 %v6882_v8, %v1397_v9  ;;  %v1399_v57 = vmul.f32 %v6868_v33, %v1366_v62  ;;  %v6908_v20 = vmul.f32 %v6868_v33, %v1384_v17 }
 0x1cb   : > { %v1418_v6 = vmul.f32 %v6868_v33, %v1385_v39  ;;  %v1367_v46 = vmul.f32 %v6864_v31, %v6748_v22  ;;  %v1368_v49 = vmul.f32 %v6864_v31, %v6754_v30  ;;  %v6916_v47 = vmul.f32 %v6868_v33, %v1386_v13 }
 0x1cc   : > { %v1421_v23 = vmul.f32 %v6868_v33, %v1388_v41  ;;  %v1481_v40 = vmul.f32 0.044715, %v1429_v16  ;;  %v1482_v52 = vmul.f32 0.044715, %v1430_v29  ;;  %v1431_v55 = vadd.f32 %v6882_v8, %v1398_v26 }
 0x1cd   : > { %v6921_v4 = vadd.f32 %v6882_v8, %v1399_v57  ;;  %v1400_v7 = vmul.f32 %v6868_v33, %v1367_v46  ;;  %v1369_v22 = vmul.f32 %v6864_v31, %v6762_v35  ;;  %v1401_v30 = vmul.f32 %v6868_v33, %v1368_v49 }
 0x1ce   : > { %v1507_v38 = vmul.f32 %v1481_v40, %v1429_v16  ;;  %v1508_v10 = vmul.f32 %v1482_v52, %v1430_v29  ;;  %v1370_v32 = vmul.f32 %v6864_v31, %v6769_v50  ;;  %v6930_v12 = vmul.f32 %v6868_v33, %v1387_v56 }
 0x1cf   : > { %v6933_v42 = vadd.f32 %v6882_v8, %v1418_v6  ;;  %v1483_v15 = vmul.f32 0.044715, %v1431_v55  ;;  %v1484_v48 = vmul.f32 0.044715, %v6921_v4  ;;  %v1433_v35 = vadd.f32 %v6882_v8, %v1400_v7 }
 0x1d0   : > { %v1533_v18 = vmul.f32 %v1507_v38, %v1429_v16  ;;  %v1534_v19 = vmul.f32 %v1508_v10, %v1430_v29  ;;  %v1434_v53 = vadd.f32 %v6882_v8, %v1401_v30  ;;  %v1402_v50 = vmul.f32 %v6868_v33, %v1369_v22 }
 0x1d1   : > { %v1509_v58 = vmul.f32 %v1483_v15, %v1431_v55  ;;  %v1510_v2 = vmul.f32 %v1484_v48, %v6921_v4  ;;  %v1403_v25 = vmul.f32 %v6868_v33, %v1370_v32  ;;  %v6942_v27 = vadd.f32 %v6882_v8, %v1421_v23 }
 0x1d2   : > { %v6944_v5 = vmul.f32 0.5, %v1429_v16  ;;  %v1559_v11 = vadd.f32 %v1533_v18, %v1429_v16  ;;  %v1560_v34 = vadd.f32 %v1534_v19, %v1430_v29  ;;  %v1485_v39 = vmul.f32 0.044715, %v1433_v35 }
 0x1d3   : > { %v1535_v37 = vmul.f32 %v1509_v58, %v1431_v55  ;;  %v1536_v17 = vmul.f32 %v1510_v2, %v6921_v4  ;;  %v1486_v13 = vmul.f32 0.044715, %v1434_v53  ;;  %v1435_v9 = vadd.f32 %v6882_v8, %v1402_v50 }
 0x1d4   : > { %v1585_v41 = vmul.f32 0.7978846, %v1559_v11  ;;  %v1586_v43 = vmul.f32 0.7978846, %v1560_v34  ;;  %v6949_v14 = vadd.f32 %v6882_v8, %v1403_v25  ;;  %v1511_v26 = vmul.f32 %v1485_v39, %v1433_v35 }
 0x1d5   : > { %v1561_v62 = vadd.f32 %v1535_v37, %v1431_v55  ;;  %v1562_v56 = vadd.f32 %v1536_v17, %v6921_v4  ;;  %v1512_v57 = vmul.f32 %v1486_v13, %v1434_v53  ;;  %v1456_v6 = vmul.f32 0.5, %v1430_v29 }
 0x1d6   : > { %6066 = vtanh.f32 %v1585_v41  ;;  %v6952_v16 = vmul.f32 0.5, %v1431_v55  ;;  %v1487_v46 = vmul.f32 0.044715, %v1435_v9  ;;  %v1537_v40 = vmul.f32 %v1511_v26, %v1433_v35 }
 0x1d7   : > { %6068 = vtanh.f32 %v1586_v43  ;;  %v1587_v49 = vmul.f32 0.7978846, %v1561_v62  ;;  %v1588_v23 = vmul.f32 0.7978846, %v1562_v56  ;;  %v1538_v52 = vmul.f32 %v1512_v57, %v1434_v53 }
 0x1d8   : > { %v1488_v7 = vmul.f32 0.044715, %v6949_v14  ;;  %v1513_v22 = vmul.f32 %v1487_v46, %v1435_v9  ;;  %v1371_v38 = vmul.f32 %v6864_v31, %v6694_v59  ;;  %v1563_v10 = vadd.f32 %v1537_v40, %v1433_v35 }
 0x1d9   : > { %6070 = vtanh.f32 %v1587_v49  ;;  %v1372_v29 = vmul.f32 %v6864_v31, %v6698_v24  ;;  %v1373_v55 = vmul.f32 %v6864_v31, %v6702_v45  ;;  %v1564_v30 = vadd.f32 %v1538_v52, %v1434_v53 }
 0x1da   : > { %6072 = vtanh.f32 %v1588_v23  ;;  %v1514_v32 = vmul.f32 %v1488_v7, %v6949_v14  ;;  %v1539_v15 = vmul.f32 %v1513_v22, %v1435_v9  ;;  %v1589_v48 = vmul.f32 0.7978846, %v1563_v10 }
 0x1db   : > { %v1404_v18 = vmul.f32 %v6868_v33, %v1371_v38  ;;  %v1405_v19 = vmul.f32 %v6868_v33, %v1372_v29  ;;  %v1374_v59 = vmul.f32 %v6864_v31, %v6706_v61  ;;  %v1590_v58 = vmul.f32 0.7978846, %v1564_v30 }
 0x1dc   : > { %v1540_v2 = vmul.f32 %v1514_v32, %v6949_v14  ;;  %v1565_v24 = vadd.f32 %v1539_v15, %v1435_v9  ;;  %v1406_v50 = vmul.f32 %v6868_v33, %v1373_v55  ;;  %6074 = vtanh.f32 %v1589_v48 }
 0x1dd   : > { %v6969_v45 = vadd.f32 %v6882_v8, %v1404_v18  ;;  %v6972_v25 = vadd.f32 %v6882_v8, %v1405_v19  ;;  %v1407_v11 = vmul.f32 %v6868_v33, %v1374_v59  ;;  %6076 = vtanh.f32 %v1590_v58 }
 0x1de   : > { %v1566_v34 = vadd.f32 %v1540_v2, %v6949_v14  ;;  %v1591_v37 = vmul.f32 0.7978846, %v1565_v24  ;;  %v6977_v61 = vadd.f32 %v6882_v8, %v1406_v50  ;;  %v1458_v17 = vmul.f32 0.5, %v6921_v4 }
 0x1df   : > { %v1459_v39 = vmul.f32 0.5, %v1433_v35  ;;  %v1489_v13 = vmul.f32 0.044715, %v6969_v45  ;;  %v1490_v41 = vmul.f32 0.044715, %v6972_v25  ;;  %v1460_v62 = vmul.f32 0.5, %v1434_v53 }
 0x1e0   : > { %v6067_v43 = vpop.eup %6066  ;;  %v1592_v56 = vmul.f32 0.7978846, %v1566_v34  ;;  %6078 = vtanh.f32 %v1591_v37  ;;  %v6983_v26 = vadd.f32 %v6882_v8, %v1407_v11  ;;  %v1491_v4 = vmul.f32 0.044715, %v6977_v61 }
 0x1e1   : > { %v6069_v57 = vpop.eup %6068  ;;  %v1637_v46 = vadd.f32 1.0, %v6067_v43  ;;  %v1515_v49 = vmul.f32 %v1489_v13, %v6969_v45  ;;  %v1516_v23 = vmul.f32 %v1490_v41, %v6972_v25  ;;  %v1461_v40 = vmul.f32 0.5, %v1435_v9 }
 0x1e2   : > { %v1638_v35 = vadd.f32 1.0, %v6069_v57  ;;  %6080 = vtanh.f32 %v1592_v56  ;;  %v1492_v52 = vmul.f32 0.044715, %v6983_v26  ;;  %v1517_v10 = vmul.f32 %v1491_v4, %v6977_v61 }
 0x1e3   : > { %v6071_v7 = vpop.eup %6070  ;;  %v1663_v53 = vmul.f32 %v1637_v46, %v6944_v5  ;;  %v1541_v22 = vmul.f32 %v1515_v49, %v6969_v45  ;;  %v1542_v38 = vmul.f32 %v1516_v23, %v6972_v25  ;;  %v1375_v9 = vmul.f32 %v6864_v31, %v6709_v63 }
 0x1e4   : > { %v6073_v29 = vpop.eup %6072  ;;  %v1664_v55 = vmul.f32 %v1638_v35, %v1456_v6  ;;  %v1639_v30 = vadd.f32 1.0, %v6071_v7  ;;  %v1518_v32 = vmul.f32 %v1492_v52, %v6983_v26  ;;  %v1543_v5 = vmul.f32 %v1517_v10, %v6977_v61 }
 0x1e5   : > { %v1640_v15 = vadd.f32 1.0, %v6073_v29  ;;  %v1567_v48 = vadd.f32 %v1541_v22, %v6969_v45  ;;  %v1568_v18 = vadd.f32 %v1542_v38, %v6972_v25  ;;  %v1376_v6 = vmul.f32 %v6864_v31, %v6712_v1 }
 0x1e6   : > { %v6999_v19 = vpack.c.bf16 %v1664_v55, %v1663_v53  ;;  %v1665_v59 = vmul.f32 %v1639_v30, %v6952_v16  ;;  %v1544_v58 = vmul.f32 %v1518_v32, %v6983_v26  ;;  %v6075_v2 = vpop.eup %6074  ;;  %v1569_v11 = vadd.f32 %v1543_v5, %v6977_v61 }
 0x1e7   : > { %v1666_v24 = vmul.f32 %v1640_v15, %v1458_v17  ;;  %v1593_v50 = vmul.f32 0.7978846, %v1567_v48  ;;  %v1594_v63 = vmul.f32 0.7978846, %v1568_v18  ;;  %v6077_v34 = vpop.eup %6076  ;;  %v1641_v37 = vadd.f32 1.0, %v6075_v2 }
 0x1e8   : > { %1804 = vmatpush1.bf16.msra.mxu1 %v6999_v19  ;;  %1998 = vmatpush1.bf16.msra.mxu0 %v6999_v19  ;;  %v1570_v13 = vadd.f32 %v1544_v58, %v6983_v26  ;;  %v1408_v16 = vmul.f32 %v6868_v33, %v1375_v9  ;;  %v1409_v41 = vmul.f32 %v6868_v33, %v1376_v6  ;;  %v1642_v17 = vadd.f32 1.0, %v6077_v34 }
 0x1e9   : > { %1805 = vmatprep.subr.bf16.mxu1 %v6323_v21  ;;  %1999 = vmatprep.subr.bf16.mxu0 %v6323_v21  ;;  %v7013_v1 = vpack.c.bf16 %v1666_v24, %v1665_v59  ;;  %6082 = vtanh.f32 %v1593_v50  ;;  %v1595_v43 = vmul.f32 0.7978846, %v1569_v11  ;;  %v1667_v57 = vmul.f32 %v1641_v37, %v1459_v39 }
 0x1ea   : > { %v6079_v56 = vpop.eup %6078  ;;  %6084 = vtanh.f32 %v1594_v63  ;;  %v1596_v46 = vmul.f32 0.7978846, %v1570_v13  ;;  %v7016_v49 = vadd.f32 %v6882_v8, %v1408_v16  ;;  %v1668_v23 = vmul.f32 %v1642_v17, %v1460_v62 }
 0x1eb   : > { %v1643_v4 = vadd.f32 1.0, %v6079_v56  ;;  %6086 = vtanh.f32 %v1595_v43  ;;  %v7019_v35 = vadd.f32 %v6882_v8, %v1409_v41  ;;  %v7022_v7 = vmul.f32 0.044715, %v6942_v27 }
 0x1ec   : > { %v6081_v52 = vpop.eup %6080  ;;  %1806 = vmatpush1.bf16.msra.mxu1 %v7013_v1  ;;  %2000 = vmatpush1.bf16.msra.mxu0 %v7013_v1  ;;  %6088 = vtanh.f32 %v1596_v46  ;;  %v1493_v39 = vmul.f32 0.044715, %v7016_v49  ;;  %v1377_v53 = vmul.f32 %v6864_v31, %v6794_v51  ;;  %v7031_v62 = vpack.c.bf16 %v1668_v23, %v1667_v57 }
 0x1ed   : > { %1807 = vmatprep.subr.bf16.mxu1 %v6323_v21  ;;  %2001 = vmatprep.subr.bf16.mxu0 %v6323_v21  ;;  %v1462_v22 = vmul.f32 0.5, %v6949_v14  ;;  %v1644_v38 = vadd.f32 1.0, %v6081_v52  ;;  %v1669_v10 = vmul.f32 %v1643_v4, %v1461_v40  ;;  %v1494_v29 = vmul.f32 0.044715, %v7019_v35 }
 0x1ee   : > { %v1519_v55 = vmul.f32 %v1493_v39, %v7016_v49  ;;  %v1378_v30 = vmul.f32 %v6864_v31, %v6801_v3  ;;  %v1410_v32 = vmul.f32 %v6868_v33, %v1377_v53  ;;  %v1463_v9 = vmul.f32 0.5, %v6969_v45 }
 0x1ef   : > { %v1670_v51 = vmul.f32 %v1644_v38, %v1462_v22  ;;  %v1379_v15 = vmul.f32 %v6864_v31, %v6808_v54  ;;  %v1380_v14 = vmul.f32 %v6864_v31, %v6815_v60  ;;  %v1464_v40 = vmul.f32 0.5, %v6972_v25 }
 0x1f0   : > { %1808 = vmatpush1.bf16.msra.mxu1 %v7031_v62  ;;  %2002 = vmatpush1.bf16.msra.mxu0 %v7031_v62  ;;  %v1520_v48 = vmul.f32 %v1494_v29, %v7019_v35  ;;  %v1545_v3 = vmul.f32 %v1519_v55, %v7016_v49  ;;  %v1411_v18 = vmul.f32 %v6868_v33, %v1378_v30  ;;  %v1465_v60 = vmul.f32 0.5, %v6977_v61 }
 0x1f1   : > { %1809 = vmatprep.subr.bf16.mxu1 %v6323_v21  ;;  %2003 = vmatprep.subr.bf16.mxu0 %v6323_v21  ;;  %v7052_v54 = vpack.c.bf16 %v1670_v51, %v1669_v10  ;;  %v7056_v31 = vadd.f32 %v6882_v8, %v1410_v32  ;;  %v1412_v45 = vmul.f32 %v6868_v33, %v1379_v15  ;;  %v1466_v2 = vmul.f32 0.5, %v6983_v26 }
 0x1f2   : > { %v1546_v25 = vmul.f32 %v1520_v48, %v7019_v35  ;;  %v1571_v5 = vadd.f32 %v1545_v3, %v7016_v49  ;;  %v7062_v59 = vadd.f32 %v6882_v8, %v1411_v18  ;;  %v1413_v58 = vmul.f32 %v6868_v33, %v1380_v14 }
 0x1f3   : > { %v6083_v6 = vpop.eup %6082  ;;  %v1495_v24 = vmul.f32 0.044715, %v7056_v31  ;;  %v7068_v61 = vadd.f32 %v6882_v8, %v1412_v45  ;;  %v1414_v50 = vmul.f32 %v6868_v33, %v6892_v28  ;;  %v1415_v26 = vmul.f32 %v6868_v33, %v6896_v36 }
 0x1f4   : > { %v6085_v63 = vpop.eup %6084  ;;  %1810 = vmatpush1.bf16.msra.mxu1 %v7052_v54  ;;  %2004 = vmatpush1.bf16.msra.mxu0 %v7052_v54  ;;  %v1645_v11 = vadd.f32 1.0, %v6083_v6  ;;  %v1572_v34 = vadd.f32 %v1546_v25, %v7019_v35  ;;  %v1597_v37 = vmul.f32 0.7978846, %v1571_v5  ;;  %v1496_v28 = vmul.f32 0.044715, %v7062_v59 }
 0x1f5   : > { %v6087_v13 = vpop.eup %6086  ;;  %1811 = vmatprep.subr.bf16.mxu1 %v6323_v21  ;;  %2005 = vmatprep.subr.bf16.mxu0 %v6323_v21  ;;  %v1646_v16 = vadd.f32 1.0, %v6085_v63  ;;  %v1521_v41 = vmul.f32 %v1495_v24, %v7056_v31  ;;  %v7082_v17 = vadd.f32 %v6882_v8, %v1413_v58  ;;  %v7088_v52 = vadd.f32 %v6882_v8, %v6916_v47 }
 0x1f6   : > { %v6089_v43 = vpop.eup %6088  ;;  %v1671_v56 = vmul.f32 %v1645_v11, %v1463_v9  ;;  %v1647_v57 = vadd.f32 1.0, %v6087_v13  ;;  %v1598_v46 = vmul.f32 0.7978846, %v1572_v34  ;;  %6090 = vtanh.f32 %v1597_v37 }
 0x1f7   : > { %v1672_v23 = vmul.f32 %v1646_v16, %v1464_v40  ;;  %v1648_v33 = vadd.f32 1.0, %v6089_v43  ;;  %v1522_v36 = vmul.f32 %v1496_v28, %v7062_v59  ;;  %v1547_v4 = vmul.f32 %v1521_v41, %v7056_v31 }
 0x1f8   : > { %v7092_v39 = vadd.f32 %v6882_v8, %v6930_v12  ;;  %v1673_v53 = vmul.f32 %v1647_v57, %v1465_v60  ;;  %6092 = vtanh.f32 %v1598_v46  ;;  %v1497_v55 = vmul.f32 0.044715, %v7068_v61 }
 0x1f9   : > { %v7094_v22 = vpack.c.bf16 %v1672_v23, %v1671_v56  ;;  %v1674_v38 = vmul.f32 %v1648_v33, %v1466_v2  ;;  %v1548_v10 = vmul.f32 %v1522_v36, %v7062_v59  ;;  %v1573_v29 = vadd.f32 %v1547_v4, %v7056_v31 }
 0x1fa   : > { %v1498_v30 = vmul.f32 0.044715, %v7082_v17  ;;  %v7101_v47 = vadd.f32 %v6882_v8, %v1414_v50  ;;  %v7104_v32 = vadd.f32 %v6882_v8, %v1415_v26  ;;  %v7108_v12 = vmul.f32 %v7022_v7, %v6942_v27 }
 0x1fb   : > { %1812 = vmatpush1.bf16.msra.mxu1 %v7094_v22  ;;  %2006 = vmatpush1.bf16.msra.mxu0 %v7094_v22  ;;  %v1574_v51 = vadd.f32 %v1548_v10, %v7062_v59  ;;  %v1599_v9 = vmul.f32 0.7978846, %v1573_v29  ;;  %v7115_v15 = vadd.f32 %v6882_v8, %v6901_v44  ;;  %v7119_v14 = vpack.c.bf16 %v1674_v38, %v1673_v53 }
 0x1fc   : > { %1813 = vmatprep.subr.bf16.mxu1 %v6323_v21  ;;  %2007 = vmatprep.subr.bf16.mxu0 %v6323_v21  ;;  %v1523_v7 = vmul.f32 %v1497_v55, %v7068_v61  ;;  %v1524_v40 = vmul.f32 %v1498_v30, %v7082_v17  ;;  %v1499_v3 = vmul.f32 0.044715, %v7101_v47  ;;  %v1500_v18 = vmul.f32 0.044715, %v7104_v32 }
 0x1fd   : > { %v1600_v48 = vmul.f32 0.7978846, %v1574_v51  ;;  %6094 = vtanh.f32 %v1599_v9  ;;  %v1467_v60 = vmul.f32 0.5, %v7016_v49  ;;  %v7130_v25 = vadd.f32 %v6882_v8, %v6908_v20 }
 0x1fe   : > { %v1549_v44 = vmul.f32 %v1523_v7, %v7068_v61  ;;  %v1550_v45 = vmul.f32 %v1524_v40, %v7082_v17  ;;  %v1525_v5 = vmul.f32 %v1499_v3, %v7101_v47  ;;  %v1526_v58 = vmul.f32 %v1500_v18, %v7104_v32 }
 0x1ff   : > { %1814 = vmatpush1.bf16.msra.mxu1 %v7119_v14  ;;  %2008 = vmatpush1.bf16.msra.mxu0 %v7119_v14  ;;  %6096 = vtanh.f32 %v1600_v48  ;;  %v1501_v6 = vmul.f32 0.044715, %v7115_v15  ;;  %v1468_v2 = vmul.f32 0.5, %v7019_v35  ;;  %v1502_v24 = vmul.f32 0.044715, %v7130_v25 }
 0x200   : > { %v6091_v49 = vpop.eup %6090  ;;  %1815 = vmatprep.subr.bf16.mxu1 %v6323_v21  ;;  %2009 = vmatprep.subr.bf16.mxu0 %v6323_v21  ;;  %v1575_v8 = vadd.f32 %v1549_v44, %v7068_v61  ;;  %v1576_v20 = vadd.f32 %v1550_v45, %v7082_v17  ;;  %v1551_v63 = vmul.f32 %v1525_v5, %v7101_v47  ;;  %v1503_v35 = vmul.f32 0.044715, %v6933_v42 }
 0x201   : > { %v1649_v50 = vadd.f32 1.0, %v6091_v49  ;;  %v1552_v11 = vmul.f32 %v1526_v58, %v7104_v32  ;;  %v1527_v34 = vmul.f32 %v1501_v6, %v7115_v15  ;;  %v1528_v16 = vmul.f32 %v1502_v24, %v7130_v25 }
 0x202   : > { %v6093_v37 = vpop.eup %6092  ;;  %v1601_v26 = vmul.f32 0.7978846, %v1575_v8  ;;  %v1602_v13 = vmul.f32 0.7978846, %v1576_v20  ;;  %v1577_v43 = vadd.f32 %v1551_v63, %v7101_v47  ;;  %v1504_v23 = vmul.f32 0.044715, %v7088_v52 }
 0x203   : > { %v1650_v28 = vadd.f32 1.0, %v6093_v37  ;;  %v1675_v41 = vmul.f32 %v1649_v50, %v1467_v60  ;;  %v1578_v56 = vadd.f32 %v1552_v11, %v7104_v32  ;;  %v1553_v57 = vmul.f32 %v1527_v34, %v7115_v15 }
 0x204   : > { %6098 = vtanh.f32 %v1601_v26  ;;  %v1554_v46 = vmul.f32 %v1528_v16, %v7130_v25  ;;  %v1603_v36 = vmul.f32 0.7978846, %v1577_v43  ;;  %v1529_v10 = vmul.f32 %v1503_v35, %v6933_v42 }
 0x205   : > { %v1676_v33 = vmul.f32 %v1650_v28, %v1468_v2  ;;  %6100 = vtanh.f32 %v1602_v13  ;;  %v1604_v4 = vmul.f32 0.7978846, %v1578_v56  ;;  %v1579_v53 = vadd.f32 %v1553_v57, %v7115_v15 }
 0x206   : > { %v1580_v38 = vadd.f32 %v1554_v46, %v7130_v25  ;;  %v1530_v29 = vmul.f32 %v1504_v23, %v7088_v52  ;;  %v1469_v51 = vmul.f32 0.5, %v7056_v31  ;;  %6102 = vtanh.f32 %v1603_v36 }
 0x207   : > { %v6095_v55 = vpop.eup %6094  ;;  %v7157_v30 = vpack.c.bf16 %v1676_v33, %v1675_v41  ;;  %6104 = vtanh.f32 %v1604_v4  ;;  %v1605_v7 = vmul.f32 0.7978846, %v1579_v53  ;;  %v1555_v3 = vmul.f32 %v1529_v10, %v6933_v42 }
 0x208   : > { %v1651_v9 = vadd.f32 1.0, %v6095_v55  ;;  %v1606_v40 = vmul.f32 0.7978846, %v1580_v38  ;;  %v1556_v18 = vmul.f32 %v1530_v29, %v7088_v52  ;;  %v1505_v60 = vmul.f32 0.044715, %v7092_v39 }
 0x209   : > { %v6097_v48 = vpop.eup %6096  ;;  %1816 = vmatpush1.bf16.msra.mxu1 %v7157_v30  ;;  %2010 = vmatpush1.bf16.msra.mxu0 %v7157_v30  ;;  %v1558_v44 = vmul.f32 %v7108_v12, %v6942_v27  ;;  %v1470_v31 = vmul.f32 0.5, %v7062_v59  ;;  %6106 = vtanh.f32 %v1605_v7  ;;  %v1581_v58 = vadd.f32 %v1555_v3, %v6933_v42 }
 0x20a   : > { %1817 = vmatprep.subr.bf16.mxu1 %v6323_v21  ;;  %2011 = vmatprep.subr.bf16.mxu0 %v6323_v21  ;;  %v1652_v45 = vadd.f32 1.0, %v6097_v48  ;;  %v1677_v5 = vmul.f32 %v1651_v9, %v1469_v51  ;;  %6108 = vtanh.f32 %v1606_v40  ;;  %v1582_v6 = vadd.f32 %v1556_v18, %v7088_v52 }
 0x20b   : > { %v1531_v49 = vmul.f32 %v1505_v60, %v7092_v39  ;;  %v1584_v8 = vadd.f32 %v1558_v44, %v6942_v27  ;;  %v1607_v12 = vmul.f32 0.7978846, %v1581_v58  ;;  %v1471_v34 = vmul.f32 0.5, %v7068_v61 }
 0x20c   : > { %v1678_v2 = vmul.f32 %v1652_v45, %v1470_v31  ;;  %v1608_v20 = vmul.f32 0.7978846, %v1582_v6  ;;  %v1472_v13 = vmul.f32 0.5, %v7082_v17  ;;  %v1473_v56 = vmul.f32 0.5, %v7101_v47 }
 0x20d   : > { %v1557_v24 = vmul.f32 %v1531_v49, %v7092_v39  ;;  %v1610_v59 = vmul.f32 0.7978846, %v1584_v8  ;;  %6110 = vtanh.f32 %v1607_v12  ;;  %v1474_v46 = vmul.f32 0.5, %v7104_v32 }
 0x20e   : > { %v6099_v50 = vpop.eup %6098  ;;  %v7175_v63 = vpack.c.bf16 %v1678_v2, %v1677_v5  ;;  %6112 = vtanh.f32 %v1608_v20  ;;  %v1475_v10 = vmul.f32 0.5, %v7115_v15  ;;  %v1476_v47 = vmul.f32 0.5, %v7130_v25  ;;  %v5974_v20 = vld [vmem:[%s6363_s25] ss:$8 sps:$4 sm:$0xff]  }
 0x20f   : > { %v6101_v11 = vpop.eup %6100  ;;  %v1653_v37 = vadd.f32 1.0, %v6099_v50  ;;  %v1583_v26 = vadd.f32 %v1557_v24, %v7092_v39  ;;  %6114 = vtanh.f32 %v1610_v59  ;;  %v1477_v40 = vmul.f32 0.5, %v6933_v42  ;;  %v5977_v24 = vld [vmem:[%s6363_s25 + $0x68] ss:$8 sps:$4 sm:$0xff]   ;;  %v5980_v50 = vld [vmem:[%s6363_s25 + $0x14] ss:$8 sps:$4 sm:$0xff]  }
 0x210   : > { %1818 = vmatpush1.bf16.msra.mxu1 %v7175_v63  ;;  %2012 = vmatpush1.bf16.msra.mxu0 %v7175_v63  ;;  %v1654_v16 = vadd.f32 1.0, %v6101_v11  ;;  %v6103_v35 = vpop.eup %6102  ;;  %v1478_v25 = vmul.f32 0.5, %v7088_v52  ;;  %v1480_v44 = vmul.f32 0.5, %v6942_v27  ;;  %v6324_v58 = vmov 65535   ;;  %v5982_v59 = vld [vmem:[%s6363_s25 + $0x7c] ss:$8 sps:$4 sm:$0xff]  }
 0x211   : > { %1819 = vmatprep.subr.bf16.mxu1 %v6323_v21  ;;  %2013 = vmatprep.subr.bf16.mxu0 %v6323_v21  ;;  %v1679_v28 = vmul.f32 %v1653_v37, %v1471_v34  ;;  %v1609_v41 = vmul.f32 0.7978846, %v1583_v26  ;;  %v6105_v61 = vpop.eup %6104  ;;  %v1655_v57 = vadd.f32 1.0, %v6103_v35  ;;  %v1798_v42 = vsel %vm1049_vm0, 4294967295, %v6324_v58  ;;  %v6014_v11 = vld [vmem:[%s6368_s29 + $0x10] sm:$0xff]   ;;  %v6016_v34 = vld [vmem:[%s6368_s29] sm:$0xff]  }
 0x212   : > { %v1680_v43 = vmul.f32 %v1654_v16, %v1472_v13  ;;  %v1656_v23 = vadd.f32 1.0, %v6105_v61  ;;  %v1479_v52 = vmul.f32 0.5, %v7092_v39  ;;  %v1799_v8 = vsel %vm1797_vm6, %v1798_v42, 0  ;;  %v6015_v37 = vld [vmem:[%s6368_s29 + $0x18] sm:$0xff]   ;;  %v5986_v16 = vld [vmem:[%s6363_s25 + $0x24] ss:$8 sps:$4 sm:$0xff]  }
 0x213   : > { %6116 = vtanh.f32 %v1609_v41  ;;  %v6107_v17 = vpop.eup %6106  ;;  %v1681_v36 = vmul.f32 %v1655_v57, %v1473_v56  ;;  %v5984_v26 = vld [vmem:[%s6363_s25 + $0x10] ss:$8 sps:$4 sm:$0xff]   ;;  %v5988_v35 = vld [vmem:[%s6363_s25 + $0x8c] ss:$8 sps:$4 sm:$0xff]  }
 0x214   : > { %v7186_v33 = vpack.c.bf16 %v1680_v43, %v1679_v28  ;;  %v6109_v4 = vpop.eup %6108  ;;  %v1682_v53 = vmul.f32 %v1656_v23, %v1474_v46  ;;  %v1657_v38 = vadd.f32 1.0, %v6107_v17  ;;  %v5985_v13 = vld [vmem:[%s6363_s25 + $0x78] ss:$8 sps:$4 sm:$0xff]   ;;  %v5991_v41 = vld [vmem:[%s6363_s25 + $0x88] ss:$8 sps:$4 sm:$0xff]  }
 0x215   : > { %v1658_v29 = vadd.f32 1.0, %v6109_v4  ;;  %v5990_v28 = vld [vmem:[%s6363_s25 + $0x20] ss:$8 sps:$4 sm:$0xff]   ;;  %v5992_v61 = vld [vmem:[%s6363_s25 + $0x34] ss:$8 sps:$4 sm:$0xff]  }
 0x216   : > { %1820 = vmatpush1.bf16.msra.mxu1 %v7186_v33  ;;  %2014 = vmatpush1.bf16.msra.mxu0 %v7186_v33  ;;  %v7194_v32 = vpack.c.bf16 %v1682_v53, %v1681_v36  ;;  %v1683_v55 = vmul.f32 %v1657_v38, %v1475_v10  ;;  %v5994_v43 = vld [vmem:[%s6363_s25 + $0x9c] ss:$8 sps:$4 sm:$0xff]   ;;  %v5996_v56 = vld [vmem:[%s6363_s25 + $0x30] ss:$8 sps:$4 sm:$0xff]   ;;  %v6000_v23 = vld [vmem:[%s6363_s25 + $0xac] ss:$8 sps:$4 sm:$0xff]  }
 0x217   : > { %1821 = vmatprep.subr.bf16.mxu1 %v6323_v21  ;;  %2015 = vmatprep.subr.bf16.mxu0 %v6323_v21  ;;  %v1684_v51 = vmul.f32 %v1658_v29, %v1476_v47  ;;  %v6111_v9 = vpop.eup %6110  ;;  %v5997_v57 = vld [vmem:[%s6363_s25 + $0x98] ss:$8 sps:$4 sm:$0xff]   ;;  %v5998_v46 = vld [vmem:[%s6363_s25 + $0x44] ss:$8 sps:$4 sm:$0xff]   ;;  %v6003_v36 = vld [vmem:[%s6363_s25 + $0xa8] ss:$8 sps:$4 sm:$0xff]  }
 0x218   : > { %v6113_v7 = vpop.eup %6112  ;;  %v1659_v15 = vadd.f32 1.0, %v6111_v9  ;;  %v6002_v17 = vld [vmem:[%s6363_s25 + $0x40] ss:$8 sps:$4 sm:$0xff]   ;;  %v6004_v4 = vld [vmem:[%s6363_s25 + $0x54] ss:$8 sps:$4 sm:$0xff]  }
 0x219   : > { %v6115_v48 = vpop.eup %6114  ;;  %v1660_v3 = vadd.f32 1.0, %v6113_v7  ;;  %v7202_v18 = vpack.c.bf16 %v1684_v51, %v1683_v55  ;;  %v6006_v53 = vld [vmem:[%s6363_s25 + $0xbc] ss:$8 sps:$4 sm:$0xff]   ;;  %v5196_v38 = vld [vmem:[%s6363_s25 + $0xc8] sm:$0x77] }
 0x21a   : > { %1822 = vmatpush1.bf16.msra.mxu1 %v7194_v32  ;;  %2016 = vmatpush1.bf16.msra.mxu0 %v7194_v32  ;;  %v1685_v60 = vmul.f32 %v1659_v15, %v1477_v40  ;;  %v1662_v31 = vadd.f32 1.0, %v6115_v48  ;;  %v1714_v10 = vld [vmem:[%s6363_s25 + $0x60] sm:$0x77]  ;;  %v6008_v47 = vld [vmem:[%s6363_s25 + $0x50] ss:$8 sps:$4 sm:$0xff]   ;;  %v5210_v55 = vcombine.high %v5196_v38, %v5196_v38  ;;  %v5209_v9 = vcombine.low %v5196_v38, %v5196_v38  ;;  %v6017_v40 = vld [vmem:[%s6368_s29 + $0x8] sm:$0xff]  }
 0x21b   : > { %1823 = vmatprep.subr.bf16.mxu1 %v6323_v21  ;;  %2017 = vmatprep.subr.bf16.mxu0 %v6323_v21  ;;  %v1686_v5 = vmul.f32 %v1660_v3, %v1478_v25  ;;  %v6009_v29 = vld [vmem:[%s6363_s25 + $0xb8] ss:$8 sps:$4 sm:$0xff]   ;;  %v5176_v51 = vcombine.high %v1714_v10, %v1714_v10  ;;  %v5175_v7 = vcombine.low %v1714_v10, %v1714_v10 }
 0x21c   : > { %v1688_v49 = vmul.f32 %v1662_v31, %v1480_v44 }
 0x21d   : > { %v6117_v45 = vpop.eup %6116  ;;  %v7212_v27 = vpack.c.bf16 %v1686_v5, %v1685_v60 }
 0x21e   : > { %1824 = vmatpush1.bf16.msra.mxu1 %v7202_v18  ;;  %2018 = vmatpush1.bf16.msra.mxu0 %v7202_v18  ;;  %v1661_v6 = vadd.f32 1.0, %v6117_v45 }
 0x21f   : > { %1825 = vmatprep.subr.bf16.mxu1 %v6323_v21  ;;  %2019 = vmatprep.subr.bf16.mxu0 %v6323_v21 }
 0x220   : > { %v1687_v2 = vmul.f32 %v1661_v6, %v1479_v52 }
 0x222   : > { %1826 = vmatpush1.bf16.msra.mxu1 %v7212_v27  ;;  %2020 = vmatpush1.bf16.msra.mxu0 %v7212_v27  ;;  %v1701_v12 = vpack.c.bf16 %v1688_v49, %v1687_v2 }
 0x223   : > { %1827 = vmatprep.subr.bf16.mxu1 %v6323_v21  ;;  %2021 = vmatprep.subr.bf16.mxu0 %v6323_v21 }
 0x224   : > { %v7218_v39 = vand.u32 %v1799_v8, %v1701_v12 }
 0x226   : > { %1828 = vmatpush1.bf16.msra.mxu1 %v7218_v39  ;;  %2022 = vmatpush1.bf16.msra.mxu0 %v7218_v39 }
 0x227   : > { %5592 = vmatprep.subr.bf16.mxu1 %v6321_v0  ;;  %5624 = vmatprep.subr.bf16.mxu0 %v6321_v0 }
 0x229   : > { %1836 = vmatmul.mubr.bf16.vlgmr.msra.gmra.mrb[24].mxu1 %v5974_v20  ;;  %2030 = vmatmul.mubr.bf16.vlgmr.msra.gmra.mrb[28].mxu0 %v5977_v24 }
 0x22a   : > { %5178 = vmatprep.mubr.msk.bf16.mxu1 %vm1775_vm5, %v5980_v50  ;;  %5212 = vmatprep.mubr.msk.bf16.mxu0 %vm1775_vm5, %v5982_v59 }
 0x22b   : > { %5593 = vmatpush3.bf16.msra.mxu1 %v6014_v11  ;;  %5625 = vmatpush3.bf16.msra.mxu0 %v6016_v34 }
 0x22c   : > { %5594 = vmatprep.subr.bf16.mxu1 %v6321_v0  ;;  %5626 = vmatprep.subr.bf16.mxu0 %v6321_v0 }
 0x22f   : > { %5595 = vmatpush3.bf16.msra.mxu1 %v6015_v37  ;;  %5627 = vmatpush3.bf16.msra.mxu0 %v6017_v40 }
 0x230   : > { %2434 = vmatprep.subr.bf16.mxu1 %v6323_v21  ;;  %5656 = vmatprep.subr.bf16.mxu0 %v6321_v0 }
 0x231   : > { %1844 = vmatmul.mubr.bf16.gmra.mrb[28].mxu1 %v5984_v26  ;;  %2038 = vmatmul.mubr.bf16.gmra.mrb[32].mxu0 %v5985_v13 }
 0x232   : > { %5179 = vmatprep.mubr.msk.bf16.mxu1 %vm1775_vm5, %v5986_v16  ;;  %5213 = vmatprep.mubr.msk.bf16.mxu0 %vm1775_vm5, %v5988_v35 }
 0x239   : > { %1852 = vmatmul.mubr.bf16.gmra.mrb[32].mxu1 %v5990_v28  ;;  %2046 = vmatmul.mubr.bf16.gmra.mrb[36].mxu0 %v5991_v41 }
 0x23a   : > { %5180 = vmatprep.mubr.msk.bf16.mxu1 %vm1775_vm5, %v5992_v61  ;;  %5214 = vmatprep.mubr.msk.bf16.mxu0 %vm1775_vm5, %v5994_v43 }
 0x241   : > { %1860 = vmatmul.mubr.bf16.gmra.mrb[36].mxu1 %v5996_v56  ;;  %2054 = vmatmul.mubr.bf16.gmra.mrb[40].mxu0 %v5997_v57 }
 0x242   : > { %5181 = vmatprep.mubr.msk.bf16.mxu1 %vm1775_vm5, %v5998_v46  ;;  %5215 = vmatprep.mubr.msk.bf16.mxu0 %vm1775_vm5, %v6000_v23 }
 0x249   : > { %1868 = vmatmul.mubr.bf16.gmra.mrb[40].mxu1 %v6002_v17  ;;  %2062 = vmatmul.mubr.bf16.gmra.mrb[44].mxu0 %v6003_v36 }
 0x24a   : > { %5182 = vmatprep.mubr.msk.bf16.mxu1 %vm1775_vm5, %v6004_v4  ;;  %5216 = vmatprep.mubr.msk.bf16.mxu0 %vm1775_vm5, %v6006_v53 }
 0x251   : > { %1876 = vmatmul.mubr.bf16.gmra.mrb[44].mxu1 %v6008_v47  ;;  %2070 = vmatmul.mubr.bf16.gmra.mrb[48].mxu0 %v6009_v29 }
 0x252   : > { %5217 = vmatprep.mubr.msk.bf16.mxu0 %vm1775_vm5, %v5210_v55  ;;  %5183 = vmatprep.mubr.msk.bf16.mxu1 %vm1775_vm5, %v5176_v51 }
 0x259   : > { %2078 = vmatmul.mubr.bf16.gmra.mrb[52].mxu0 %v5209_v9  ;;  %1884 = vmatmul.mubr.bf16.gmra.mrb[48].mxu1 %v5175_v7 }
 0x25a   : > { %5596 = vmatprep.mubr.msk.bf16.mxu1 %vm6322_vm1, %v6321_v0  ;;  %5628 = vmatprep.mubr.msk.bf16.mxu0 %vm6322_vm1, %v6321_v0 }
 0x2fc   : > { %v1837_v15 = vpop.f32.mrb[24].mxu1  ;;  %v2031_v48 = vpop.f32.mrb[28].mxu0 }
 0x2fd   : > { %v1839_v25 = vpop.f32.mrb[25].mxu1  ;;  %v2033_v3 = vpop.f32.mrb[29].mxu0 }
 0x2fe   : > { %v1840_v60 = vpop.f32.mrb[26].mxu1  ;;  %v2034_v44 = vpop.f32.mrb[30].mxu0 }
 0x2ff   : > { %v1895_v31 = vpack.c.bf16 %v1840_v60, %v1837_v15  ;;  %v2090_v45 = vpack.c.bf16 %v2034_v44, %v2031_v48  ;;  %v2036_v5 = vpop.f32.mrb[31].mxu0  ;;  %v1842_v42 = vpop.f32.mrb[27].mxu1 }
 0x300   : > { %v6020_v5 = vld [vmem:[%s6363_s25 + $0xd4] ss:$8 sps:$4 sm:$0xff]  }
 0x301   : > { %5597 = vmatmul.mubr.msk.bf16.vlgmr.msra.gmra.mrb[52].mxu1 %vm1190_vm3, %v2090_v45  ;;  %5629 = vmatmul.mubr.msk.bf16.vlgmr.msra.gmra.mrb[56].mxu0 %vm1190_vm3, %v1895_v31 }
 0x302   : > { %2435 = vmatpush1.bf16.msra.mxu1 %v6999_v19  ;;  %5600 = vmatprep.mubr.msk.bf16.mxu1 %vm6322_vm1, %v6321_v0 }
 0x303   : > { %2436 = vmatprep.subr.bf16.mxu1 %v6323_v21  ;;  %5632 = vmatprep.mubr.msk.bf16.mxu0 %vm6322_vm1, %v6321_v0 }
 0x304   : > { %v1845_v52 = vpop.f32.mrb[28].mxu1  ;;  %v2039_v6 = vpop.f32.mrb[32].mxu0 }
 0x305   : > { %v1847_v49 = vpop.f32.mrb[29].mxu1  ;;  %v2041_v2 = vpop.f32.mrb[33].mxu0 }
 0x306   : > { %2437 = vmatpush1.bf16.msra.mxu1 %v7013_v1  ;;  %v1848_v8 = vpop.f32.mrb[30].mxu1  ;;  %v2042_v12 = vpop.f32.mrb[34].mxu0  ;;  %v6021_v49 = vld [vmem:[%s6363_s25 + $0xe4] ss:$8 sps:$4 sm:$0xff]   ;;  %v6024_v2 = vld [vmem:[%s6363_s25 + $0xf4] ss:$8 sps:$4 sm:$0xff]  }
 0x307   : > { %v1896_v20 = vpack.c.bf16 %v1848_v8, %v1845_v52  ;;  %v2091_v24 = vpack.c.bf16 %v2042_v12, %v2039_v6  ;;  %v2044_v50 = vpop.f32.mrb[35].mxu0  ;;  %2438 = vmatprep.subr.bf16.mxu1 %v6323_v21  ;;  %v1850_v19 = vpop.f32.mrb[31].mxu1  ;;  %v6027_v8 = vld [vmem:[%s6363_s25 + $0x104] ss:$8 sps:$4 sm:$0xff]   ;;  %v6029_v12 = vld [vmem:[%s6363_s25 + $0x100] ss:$8 sps:$4 sm:$0xff]  }
 0x308   : > { %v6033_v50 = vld [vmem:[%s6363_s25 + $0x124] ss:$8 sps:$4 sm:$0xff]   ;;  %v5252_v19 = vld [vmem:[%s6363_s25 + $0x130] sm:$0x77] }
 0x309   : > { %5601 = vmatmul.mubr.msk.bf16.gmra.mrb[56].mxu1 %vm1190_vm3, %v2091_v24  ;;  %5633 = vmatmul.mubr.msk.bf16.gmra.mrb[60].mxu0 %vm1190_vm3, %v1896_v20  ;;  %v6030_v20 = vld [vmem:[%s6363_s25 + $0x114] ss:$8 sps:$4 sm:$0xff]   ;;  %v6032_v24 = vld [vmem:[%s6363_s25 + $0x110] ss:$8 sps:$4 sm:$0xff]  }
 0x30a   : > { %2439 = vmatpush1.bf16.msra.mxu1 %v7031_v62  ;;  %5604 = vmatprep.mubr.msk.bf16.mxu1 %vm6322_vm1, %v6321_v0 }
 0x30b   : > { %2440 = vmatprep.subr.bf16.mxu1 %v6323_v21  ;;  %5636 = vmatprep.mubr.msk.bf16.mxu0 %vm6322_vm1, %v6321_v0 }
 0x30c   : > { %v1853_v1 = vpop.f32.mrb[32].mxu1  ;;  %v2047_v59 = vpop.f32.mrb[36].mxu0 }
 0x30d   : > { %v1855_v11 = vpop.f32.mrb[33].mxu1  ;;  %v2049_v34 = vpop.f32.mrb[37].mxu0 }
 0x30e   : > { %2441 = vmatpush1.bf16.msra.mxu1 %v7052_v54  ;;  %v1856_v37 = vpop.f32.mrb[34].mxu1  ;;  %v2050_v26 = vpop.f32.mrb[38].mxu0  ;;  %v6038_v11 = vld [vmem:[%s6368_s29 + $0x20] sm:$0xff]   ;;  %v5265_v34 = vcombine.low %v5252_v19, %v5252_v19 }
 0x30f   : > { %v1897_v13 = vpack.c.bf16 %v1856_v37, %v1853_v1  ;;  %v2092_v16 = vpack.c.bf16 %v2050_v26, %v2047_v59  ;;  %v2052_v35 = vpop.f32.mrb[39].mxu0  ;;  %2442 = vmatprep.subr.bf16.mxu1 %v6323_v21  ;;  %v1858_v62 = vpop.f32.mrb[35].mxu1  ;;  %v6035_v1 = vld [vmem:[%s6363_s25 + $0x120] ss:$8 sps:$4 sm:$0xff]   ;;  %v5266_v59 = vcombine.high %v5252_v19, %v5252_v19  ;;  %5657 = vmatpush3.bf16.msra.mxu0 %v6038_v11 }
 0x310   : > { %5658 = vmatprep.subr.bf16.mxu0 %v6321_v0  ;;  %v6039_v37 = vld [vmem:[%s6368_s29 + $0x28] sm:$0xff]  }
 0x311   : > { %5605 = vmatmul.mubr.msk.bf16.gmra.mrb[60].mxu1 %vm1190_vm3, %v2092_v16  ;;  %5637 = vmatmul.mubr.msk.bf16.gmra.mrb[64].mxu0 %vm1190_vm3, %v1897_v13 }
 0x312   : > { %2443 = vmatpush1.bf16.msra.mxu1 %v7094_v22  ;;  %5608 = vmatprep.mubr.msk.bf16.mxu1 %vm6322_vm1, %v6321_v0 }
 0x313   : > { %2444 = vmatprep.subr.bf16.mxu1 %v6323_v21  ;;  %5640 = vmatprep.mubr.msk.bf16.mxu0 %vm6322_vm1, %v6321_v0 }
 0x314   : > { %v1861_v54 = vpop.f32.mrb[36].mxu1  ;;  %v2055_v28 = vpop.f32.mrb[40].mxu0  ;;  %5659 = vmatpush3.bf16.msra.mxu0 %v6039_v37 }
 0x315   : > { %v1863_v41 = vpop.f32.mrb[37].mxu1  ;;  %v2057_v61 = vpop.f32.mrb[41].mxu0 }
 0x316   : > { %2445 = vmatpush1.bf16.msra.mxu1 %v7119_v14  ;;  %v1864_v43 = vpop.f32.mrb[38].mxu1  ;;  %v2058_v56 = vpop.f32.mrb[42].mxu0 }
 0x317   : > { %v1898_v57 = vpack.c.bf16 %v1864_v43, %v1861_v54  ;;  %v2093_v46 = vpack.c.bf16 %v2058_v56, %v2055_v28  ;;  %v2060_v23 = vpop.f32.mrb[43].mxu0  ;;  %2446 = vmatprep.subr.bf16.mxu1 %v6323_v21  ;;  %v1866_v22 = vpop.f32.mrb[39].mxu1 }
 0x319   : > { %5609 = vmatmul.mubr.msk.bf16.gmra.mrb[64].mxu1 %vm1190_vm3, %v2093_v46  ;;  %5641 = vmatmul.mubr.msk.bf16.gmra.mrb[68].mxu0 %vm1190_vm3, %v1898_v57 }
 0x31a   : > { %2447 = vmatpush1.bf16.msra.mxu1 %v7157_v30  ;;  %5612 = vmatprep.mubr.msk.bf16.mxu1 %vm6322_vm1, %v6321_v0 }
 0x31b   : > { %2448 = vmatprep.subr.bf16.mxu1 %v6323_v21  ;;  %5644 = vmatprep.mubr.msk.bf16.mxu0 %vm6322_vm1, %v6321_v0 }
 0x31c   : > { %v1869_v14 = vpop.f32.mrb[40].mxu1  ;;  %v2063_v17 = vpop.f32.mrb[44].mxu0 }
 0x31d   : > { %v1871_v36 = vpop.f32.mrb[41].mxu1  ;;  %v2065_v4 = vpop.f32.mrb[45].mxu0 }
 0x31e   : > { %2449 = vmatpush1.bf16.msra.mxu1 %v7175_v63  ;;  %v1872_v53 = vpop.f32.mrb[42].mxu1  ;;  %v2066_v38 = vpop.f32.mrb[46].mxu0 }
 0x31f   : > { %v1899_v10 = vpack.c.bf16 %v1872_v53, %v1869_v14  ;;  %v2094_v47 = vpack.c.bf16 %v2066_v38, %v2063_v17  ;;  %v2068_v29 = vpop.f32.mrb[47].mxu0  ;;  %2450 = vmatprep.subr.bf16.mxu1 %v6323_v21  ;;  %v1874_v30 = vpop.f32.mrb[43].mxu1 }
 0x321   : > { %5613 = vmatmul.mubr.msk.bf16.gmra.mrb[68].mxu1 %vm1190_vm3, %v2094_v47  ;;  %5645 = vmatmul.mubr.msk.bf16.gmra.mrb[72].mxu0 %vm1190_vm3, %v1899_v10 }
 0x322   : > { %2451 = vmatpush1.bf16.msra.mxu1 %v7186_v33  ;;  %5616 = vmatprep.mubr.msk.bf16.mxu1 %vm6322_vm1, %v6321_v0 }
 0x323   : > { %2452 = vmatprep.subr.bf16.mxu1 %v6323_v21  ;;  %5648 = vmatprep.mubr.msk.bf16.mxu0 %vm6322_vm1, %v6321_v0 }
 0x324   : > { %v1877_v63 = vpop.f32.mrb[44].mxu1  ;;  %v2071_v55 = vpop.f32.mrb[48].mxu0 }
 0x325   : > { %v1879_v51 = vpop.f32.mrb[45].mxu1  ;;  %v2073_v9 = vpop.f32.mrb[49].mxu0 }
 0x326   : > { %2453 = vmatpush1.bf16.msra.mxu1 %v7194_v32  ;;  %v1880_v7 = vpop.f32.mrb[46].mxu1  ;;  %v2074_v40 = vpop.f32.mrb[50].mxu0 }
 0x327   : > { %v1900_v15 = vpack.c.bf16 %v1880_v7, %v1877_v63  ;;  %v2095_v48 = vpack.c.bf16 %v2074_v40, %v2071_v55  ;;  %v2076_v25 = vpop.f32.mrb[51].mxu0  ;;  %2454 = vmatprep.subr.bf16.mxu1 %v6323_v21  ;;  %v1882_v33 = vpop.f32.mrb[47].mxu1 }
 0x329   : > { %5617 = vmatmul.mubr.msk.bf16.gmra.mrb[72].mxu1 %vm1190_vm3, %v2095_v48  ;;  %5649 = vmatmul.mubr.msk.bf16.gmra.mrb[76].mxu0 %vm1190_vm3, %v1900_v15 }
 0x32a   : > { %2455 = vmatpush1.bf16.msra.mxu1 %v7202_v18  ;;  %5620 = vmatprep.mubr.msk.bf16.mxu1 %vm6322_vm1, %v6321_v0 }
 0x32b   : > { %2456 = vmatprep.subr.bf16.mxu1 %v6323_v21  ;;  %5652 = vmatprep.mubr.msk.bf16.mxu0 %vm6322_vm1, %v6321_v0 }
 0x32c   : > { %v2079_v32 = vpop.f32.mrb[52].mxu0  ;;  %v1885_v3 = vpop.f32.mrb[48].mxu1 }
 0x32d   : > { %v2096_v60 = vpack.c.bf16 %v2079_v32, %v2079_v32  ;;  %v2081_v44 = vpop.f32.mrb[53].mxu0  ;;  %v1901_v31 = vpack.c.bf16 %v1885_v3, %v1885_v3  ;;  %v1887_v45 = vpop.f32.mrb[49].mxu1 }
 0x32e   : > { %2457 = vmatpush1.bf16.msra.mxu1 %v7212_v27  ;;  %v2082_v18 = vpop.f32.mrb[54].mxu0  ;;  %v1888_v42 = vpop.f32.mrb[50].mxu1  ;;  %v6018_v27 = vld [vmem:[%s6363_s25 + $0xd0] ss:$8 sps:$4 sm:$0xff]  }
 0x32f   : > { %v2083_v52 = vpop.f32.mrb[55].mxu0  ;;  %2458 = vmatprep.subr.bf16.mxu1 %v6323_v21  ;;  %v1889_v6 = vpop.f32.mrb[51].mxu1  ;;  %v6023_v21 = vld [vmem:[%s6363_s25 + $0xe0] ss:$8 sps:$4 sm:$0xff]  }
 0x331   : > { %5621 = vmatmul.mubr.msk.bf16.gmra.mrb[76].mxu1 %vm1190_vm3, %v2096_v60  ;;  %5653 = vmatmul.mubr.msk.bf16.gmra.mrb[80].mxu0 %vm1190_vm3, %v1901_v31 }
 0x332   : > { %2459 = vmatpush1.bf16.msra.mxu1 %v7218_v39  ;;  %5267 = vmatprep.mubr.msk.bf16.mxu1 %vm1775_vm5, %v6020_v5  ;;  %v6026_v39 = vld [vmem:[%s6363_s25 + $0xf0] ss:$8 sps:$4 sm:$0xff]  }
 0x333   : > { %5660 = vmatprep.mubr.msk.bf16.mxu0 %vm6322_vm1, %v6321_v0 }
 0x339   : > { %2467 = vmatmul.mubr.bf16.vlgmr.msra.gmra.mrb[80].mxu1 %v6018_v27 }
 0x33a   : > { %5268 = vmatprep.mubr.msk.bf16.mxu1 %vm1775_vm5, %v6021_v49 }
 0x341   : > { %2475 = vmatmul.mubr.bf16.gmra.mrb[84].mxu1 %v6023_v21 }
 0x342   : > { %5269 = vmatprep.mubr.msk.bf16.mxu1 %vm1775_vm5, %v6024_v2 }
 0x349   : > { %2483 = vmatmul.mubr.bf16.gmra.mrb[88].mxu1 %v6026_v39 }
 0x34a   : > { %5270 = vmatprep.mubr.msk.bf16.mxu1 %vm1775_vm5, %v6027_v8 }
 0x351   : > { %2491 = vmatmul.mubr.bf16.gmra.mrb[92].mxu1 %v6029_v12 }
 0x352   : > { %5271 = vmatprep.mubr.msk.bf16.mxu1 %vm1775_vm5, %v6030_v20 }
 0x359   : > { %2499 = vmatmul.mubr.bf16.gmra.mrb[96].mxu1 %v6032_v24 }
 0x35a   : > { %5272 = vmatprep.mubr.msk.bf16.mxu1 %vm1775_vm5, %v6033_v50 }
 0x361   : > { %2507 = vmatmul.mubr.bf16.gmra.mrb[100].mxu1 %v6035_v1 }
 0x362   : > { %5273 = vmatprep.mubr.msk.bf16.mxu1 %vm1775_vm5, %v5266_v59 }
 0x369   : > { %2515 = vmatmul.mubr.bf16.gmra.mrb[104].mxu1 %v5265_v34 }
 0x3d4   : > { %v2164_v26 = vpop.f32.mrb[52].mxu1  ;;  %v2285_v13 = vpop.f32.mrb[56].mxu0 }
 0x3d5   : > { %v7360_v16 = vadd.f32 %v2285_v13, %v2164_v26  ;;  %v5598_v35 = vpop.f32.mrb[53].mxu1  ;;  %v5630_v62 = vpop.f32.mrb[57].mxu0 }
 0x3d6   : > { %v2167_v54 = vpop.f32.mrb[54].mxu1  ;;  %v2288_v28 = vpop.f32.mrb[58].mxu0 }
 0x3d7   : > { %v7362_v41 = vadd.f32 %v2288_v28, %v2167_v54  ;;  %v5599_v61 = vpop.f32.mrb[55].mxu1  ;;  %v5631_v43 = vpop.f32.mrb[59].mxu0 }
 0x3dc   : > { %v2172_v56 = vpop.f32.mrb[56].mxu1  ;;  %v2293_v57 = vpop.f32.mrb[60].mxu0 }
 0x3dd   : > { %v7364_v46 = vadd.f32 %v2293_v57, %v2172_v56  ;;  %v5602_v23 = vpop.f32.mrb[57].mxu1  ;;  %v5634_v22 = vpop.f32.mrb[61].mxu0 }
 0x3de   : > { %v2175_v14 = vpop.f32.mrb[58].mxu1  ;;  %v2296_v17 = vpop.f32.mrb[62].mxu0 }
 0x3df   : > { %v7366_v36 = vadd.f32 %v2296_v17, %v2175_v14  ;;  %v5603_v4 = vpop.f32.mrb[59].mxu1  ;;  %v5635_v53 = vpop.f32.mrb[63].mxu0 }
 0x3e4   : > { %v2180_v38 = vpop.f32.mrb[60].mxu1  ;;  %v2301_v10 = vpop.f32.mrb[64].mxu0 }
 0x3e5   : > { %v7368_v47 = vadd.f32 %v2301_v10, %v2180_v38  ;;  %v5606_v29 = vpop.f32.mrb[61].mxu1  ;;  %v5638_v30 = vpop.f32.mrb[65].mxu0 }
 0x3e6   : > { %v2183_v63 = vpop.f32.mrb[62].mxu1  ;;  %v2304_v55 = vpop.f32.mrb[66].mxu0 }
 0x3e7   : > { %v7370_v51 = vadd.f32 %v2304_v55, %v2183_v63  ;;  %v5607_v9 = vpop.f32.mrb[63].mxu1  ;;  %v5639_v7 = vpop.f32.mrb[67].mxu0 }
 0x3ec   : > { %v2188_v40 = vpop.f32.mrb[64].mxu1  ;;  %v2309_v15 = vpop.f32.mrb[68].mxu0 }
 0x3ed   : > { %v7372_v48 = vadd.f32 %v2309_v15, %v2188_v40  ;;  %v5610_v25 = vpop.f32.mrb[65].mxu1  ;;  %v5642_v33 = vpop.f32.mrb[69].mxu0 }
 0x3ee   : > { %v2191_v32 = vpop.f32.mrb[66].mxu1  ;;  %v2312_v3 = vpop.f32.mrb[70].mxu0 }
 0x3ef   : > { %v7374_v60 = vadd.f32 %v2312_v3, %v2191_v32  ;;  %v5611_v44 = vpop.f32.mrb[67].mxu1  ;;  %v5643_v31 = vpop.f32.mrb[71].mxu0 }
 0x3f4   : > { %v2196_v45 = vpop.f32.mrb[68].mxu1  ;;  %v2317_v18 = vpop.f32.mrb[72].mxu0 }
 0x3f5   : > { %v7376_v5 = vadd.f32 %v2317_v18, %v2196_v45  ;;  %v5614_v42 = vpop.f32.mrb[69].mxu1  ;;  %v5646_v52 = vpop.f32.mrb[73].mxu0 }
 0x3f6   : > { %v2199_v6 = vpop.f32.mrb[70].mxu1  ;;  %v2320_v27 = vpop.f32.mrb[74].mxu0 }
 0x3f7   : > { %v7378_v49 = vadd.f32 %v2320_v27, %v2199_v6  ;;  %v5615_v21 = vpop.f32.mrb[71].mxu1  ;;  %v5647_v2 = vpop.f32.mrb[75].mxu0 }
 0x3fc   : > { %v2204_v39 = vpop.f32.mrb[72].mxu1  ;;  %v2325_v8 = vpop.f32.mrb[76].mxu0 }
 0x3fd   : > { %v7380_v12 = vadd.f32 %v2325_v8, %v2204_v39  ;;  %v5618_v20 = vpop.f32.mrb[73].mxu1  ;;  %v5650_v24 = vpop.f32.mrb[77].mxu0 }
 0x3fe   : > { %v2207_v50 = vpop.f32.mrb[74].mxu1  ;;  %v2328_v19 = vpop.f32.mrb[78].mxu0  ;;  %v6040_v20 = vld [vmem:[%s6378_s8 + $0x1c] sm:$0xff]  }
 0x3ff   : > { %v7382_v1 = vadd.f32 %v2328_v19, %v2207_v50  ;;  %v5619_v59 = vpop.f32.mrb[75].mxu1  ;;  %v5651_v11 = vpop.f32.mrb[79].mxu0  ;;  %5724 = vmatprep.mubr.msk.bf16.mxu1 %vm2837_vm7, %v6040_v20  ;;  %v6044_v24 = vld [vmem:[%s6378_s8] sm:$0xff]  }
 0x400   : > { %v7410_v19 = vld [vmem:[%s6373_s3] ss:$0 sm:$0xff] }
 0x404   : > { %v2212_v34 = vpop.f32.mrb[76].mxu1  ;;  %v2333_v37 = vpop.f32.mrb[80].mxu0 }
 0x405   : > { %v7384_v26 = vadd.f32 %v2333_v37, %v2212_v34  ;;  %v5622_v13 = vpop.f32.mrb[77].mxu1  ;;  %v5654_v35 = vpop.f32.mrb[81].mxu0 }
 0x406   : > { %v2215_v62 = vpop.f32.mrb[78].mxu1  ;;  %v2336_v54 = vpop.f32.mrb[82].mxu0 }
 0x407   : > { %v5623_v28 = vpop.f32.mrb[79].mxu1  ;;  %v5655_v61 = vpop.f32.mrb[83].mxu0 }
 0x40c   : > { %v2468_v43 = vpop.f32.mrb[80].mxu1 }
 0x40d   : > { %v2470_v56 = vpop.f32.mrb[81].mxu1 }
 0x40e   : > { %v2471_v57 = vpop.f32.mrb[82].mxu1 }
 0x40f   : > { %v2527_v23 = vpack.c.bf16 %v2471_v57, %v2468_v43  ;;  %v2473_v22 = vpop.f32.mrb[83].mxu1 }
 0x411   : > { %5661 = vmatmul.mubr.msk.bf16.vlgmr.msra.gmra.mrb[84].mxu0 %vm1190_vm3, %v2527_v23 }
 0x412   : > { %5664 = vmatprep.mubr.msk.bf16.mxu0 %vm6322_vm1, %v6321_v0 }
 0x414   : > { %v2476_v14 = vpop.f32.mrb[84].mxu1 }
 0x415   : > { %v2478_v17 = vpop.f32.mrb[85].mxu1 }
 0x416   : > { %v2479_v4 = vpop.f32.mrb[86].mxu1 }
 0x417   : > { %v2528_v53 = vpack.c.bf16 %v2479_v4, %v2476_v14  ;;  %v2481_v38 = vpop.f32.mrb[87].mxu1 }
 0x419   : > { %5665 = vmatmul.mubr.msk.bf16.gmra.mrb[88].mxu0 %vm1190_vm3, %v2528_v53 }
 0x41a   : > { %5668 = vmatprep.mubr.msk.bf16.mxu0 %vm6322_vm1, %v6321_v0 }
 0x41c   : > { %v2484_v10 = vpop.f32.mrb[88].mxu1 }
 0x41d   : > { %v2486_v29 = vpop.f32.mrb[89].mxu1 }
 0x41e   : > { %v2487_v30 = vpop.f32.mrb[90].mxu1 }
 0x41f   : > { %v2529_v63 = vpack.c.bf16 %v2487_v30, %v2484_v10  ;;  %v2489_v55 = vpop.f32.mrb[91].mxu1 }
 0x421   : > { %5669 = vmatmul.mubr.msk.bf16.gmra.mrb[92].mxu0 %vm1190_vm3, %v2529_v63 }
 0x422   : > { %5672 = vmatprep.mubr.msk.bf16.mxu0 %vm6322_vm1, %v6321_v0 }
 0x424   : > { %v2492_v9 = vpop.f32.mrb[92].mxu1 }
 0x425   : > { %v2494_v7 = vpop.f32.mrb[93].mxu1 }
 0x426   : > { %v2495_v40 = vpop.f32.mrb[94].mxu1 }
 0x427   : > { %v2530_v15 = vpack.c.bf16 %v2495_v40, %v2492_v9  ;;  %v2497_v25 = vpop.f32.mrb[95].mxu1 }
 0x429   : > { %5673 = vmatmul.mubr.msk.bf16.gmra.mrb[96].mxu0 %vm1190_vm3, %v2530_v15 }
 0x42a   : > { %5676 = vmatprep.mubr.msk.bf16.mxu0 %vm6322_vm1, %v6321_v0 }
 0x42c   : > { %v2500_v33 = vpop.f32.mrb[96].mxu1 }
 0x42d   : > { %v2502_v32 = vpop.f32.mrb[97].mxu1 }
 0x42e   : > { %v2503_v3 = vpop.f32.mrb[98].mxu1 }
 0x42f   : > { %v2531_v44 = vpack.c.bf16 %v2503_v3, %v2500_v33  ;;  %v2505_v31 = vpop.f32.mrb[99].mxu1 }
 0x431   : > { %5677 = vmatmul.mubr.msk.bf16.gmra.mrb[100].mxu0 %vm1190_vm3, %v2531_v44 }
 0x432   : > { %5680 = vmatprep.mubr.msk.bf16.mxu0 %vm6322_vm1, %v6321_v0 }
 0x434   : > { %v2508_v45 = vpop.f32.mrb[100].mxu1 }
 0x435   : > { %v2510_v18 = vpop.f32.mrb[101].mxu1 }
 0x436   : > { %v2511_v42 = vpop.f32.mrb[102].mxu1 }
 0x437   : > { %v2532_v52 = vpack.c.bf16 %v2511_v42, %v2508_v45  ;;  %v2513_v6 = vpop.f32.mrb[103].mxu1 }
 0x439   : > { %5681 = vmatmul.mubr.msk.bf16.gmra.mrb[104].mxu0 %vm1190_vm3, %v2532_v52 }
 0x43a   : > { %5684 = vmatprep.mubr.msk.bf16.mxu0 %vm6322_vm1, %v6321_v0 }
 0x43c   : > { %v2516_v27 = vpop.f32.mrb[104].mxu1 }
 0x43d   : > { %v2533_v21 = vpack.c.bf16 %v2516_v27, %v2516_v27  ;;  %v2518_v2 = vpop.f32.mrb[105].mxu1 }
 0x43e   : > { %v2519_v39 = vpop.f32.mrb[106].mxu1 }
 0x43f   : > { %v2520_v8 = vpop.f32.mrb[107].mxu1 }
 0x441   : > { %5685 = vmatmul.mubr.msk.bf16.gmra.mrb[108].mxu0 %vm1190_vm3, %v2533_v21 }
 0x442   : > { %5702 = vmatprep.mubr.msk.bf16.mxu0 %vm2837_vm7, %v6044_v24 }
 0x4e4   : > { %v2601_v50 = vpop.f32.mrb[84].mxu0 }
 0x4e5   : > { %v2655_v59 = vadd.f32 %v2601_v50, %v7360_v16  ;;  %v5662_v0 = vpop.f32.mrb[85].mxu0 }
 0x4e6   : > { %v2604_v11 = vpop.f32.mrb[86].mxu0 }
 0x4e7   : > { %v2675_v34 = vadd.f32 %v7410_v19, %v2655_v59  ;;  %v2656_v37 = vadd.f32 %v2604_v11, %v7362_v41  ;;  %v5663_v13 = vpop.f32.mrb[87].mxu0 }
 0x4e9   : > { %v2701_v35 = vmul.f32 0.044715, %v2675_v34  ;;  %v2676_v62 = vadd.f32 %v7410_v19, %v2656_v37 }
 0x4eb   : > { %v2714_v54 = vmul.f32 %v2701_v35, %v2675_v34  ;;  %v2702_v28 = vmul.f32 0.044715, %v2676_v62  ;;  %v2688_v35 = vmul.f32 0.5, %v2675_v34 }
 0x4ec   : > { %v2609_v61 = vpop.f32.mrb[88].mxu0 }
 0x4ed   : > { %v2727_v43 = vmul.f32 %v2714_v54, %v2675_v34  ;;  %v2715_v56 = vmul.f32 %v2702_v28, %v2676_v62  ;;  %v2657_v57 = vadd.f32 %v2609_v61, %v7364_v46  ;;  %v5666_v23 = vpop.f32.mrb[89].mxu0  ;;  %v2689_v54 = vmul.f32 0.5, %v2676_v62 }
 0x4ee   : > { %v2612_v22 = vpop.f32.mrb[90].mxu0 }
 0x4ef   : > { %v2740_v16 = vadd.f32 %v2727_v43, %v2675_v34  ;;  %v2728_v14 = vmul.f32 %v2715_v56, %v2676_v62  ;;  %v7418_v17 = vadd.f32 %v7410_v19, %v2657_v57  ;;  %v2658_v41 = vadd.f32 %v2612_v22, %v7366_v36  ;;  %v5667_v4 = vpop.f32.mrb[91].mxu0 }
 0x4f1   : > { %v2741_v53 = vadd.f32 %v2728_v14, %v2676_v62  ;;  %v2703_v38 = vmul.f32 0.044715, %v7418_v17  ;;  %v7423_v10 = vadd.f32 %v7410_v19, %v2658_v41  ;;  %v2753_v29 = vmul.f32 0.7978846, %v2740_v16 }
 0x4f3   : > { %v2716_v30 = vmul.f32 %v2703_v38, %v7418_v17  ;;  %v2704_v46 = vmul.f32 0.044715, %v7423_v10  ;;  %v2754_v63 = vmul.f32 0.7978846, %v2741_v53  ;;  %6118 = vtanh.f32 %v2753_v29 }
 0x4f4   : > { %v2617_v55 = vpop.f32.mrb[92].mxu0 }
 0x4f5   : > { %v2729_v9 = vmul.f32 %v2716_v30, %v7418_v17  ;;  %v2717_v7 = vmul.f32 %v2704_v46, %v7423_v10  ;;  %v2659_v36 = vadd.f32 %v2617_v55, %v7368_v47  ;;  %v5670_v40 = vpop.f32.mrb[93].mxu0  ;;  %6120 = vtanh.f32 %v2754_v63 }
 0x4f6   : > { %v2620_v15 = vpop.f32.mrb[94].mxu0  ;;  %v2691_v40 = vmul.f32 0.5, %v7423_v10 }
 0x4f7   : > { %v2742_v25 = vadd.f32 %v2729_v9, %v7418_v17  ;;  %v2730_v33 = vmul.f32 %v2717_v7, %v7423_v10  ;;  %v7433_v32 = vadd.f32 %v7410_v19, %v2659_v36  ;;  %v2660_v3 = vadd.f32 %v2620_v15, %v7370_v51  ;;  %v5671_v44 = vpop.f32.mrb[95].mxu0 }
 0x4f9   : > { %v2743_v31 = vadd.f32 %v2730_v33, %v7423_v10  ;;  %v2705_v45 = vmul.f32 0.044715, %v7433_v32  ;;  %v7439_v18 = vadd.f32 %v7410_v19, %v2660_v3  ;;  %v2755_v47 = vmul.f32 0.7978846, %v2742_v25 }
 0x4fb   : > { %v2718_v42 = vmul.f32 %v2705_v45, %v7433_v32  ;;  %v2706_v52 = vmul.f32 0.044715, %v7439_v18  ;;  %v2756_v6 = vmul.f32 0.7978846, %v2743_v31  ;;  %6122 = vtanh.f32 %v2755_v47 }
 0x4fc   : > { %v2625_v27 = vpop.f32.mrb[96].mxu0 }
 0x4fd   : > { %v6119_v21 = vpop.eup %6118  ;;  %v2731_v2 = vmul.f32 %v2718_v42, %v7433_v32  ;;  %v2719_v51 = vmul.f32 %v2706_v52, %v7439_v18  ;;  %v2661_v39 = vadd.f32 %v2625_v27, %v7372_v48  ;;  %v5674_v8 = vpop.f32.mrb[97].mxu0  ;;  %6124 = vtanh.f32 %v2756_v6 }
 0x4fe   : > { %v2628_v20 = vpop.f32.mrb[98].mxu0  ;;  %v2779_v24 = vadd.f32 1.0, %v6119_v21 }
 0x4ff   : > { %v6121_v50 = vpop.eup %6120  ;;  %v2744_v59 = vadd.f32 %v2731_v2, %v7433_v32  ;;  %v2732_v0 = vmul.f32 %v2719_v51, %v7439_v18  ;;  %v7449_v11 = vadd.f32 %v7410_v19, %v2661_v39  ;;  %v2662_v37 = vadd.f32 %v2628_v20, %v7374_v60  ;;  %v5675_v13 = vpop.f32.mrb[99].mxu0 }
 0x500   : > { %v2780_v28 = vadd.f32 1.0, %v6121_v50  ;;  %v2792_v57 = vmul.f32 %v2779_v24, %v2688_v35 }
 0x501   : > { %v2745_v48 = vadd.f32 %v2732_v0, %v7439_v18  ;;  %v2707_v61 = vmul.f32 0.044715, %v7449_v11  ;;  %v7455_v43 = vadd.f32 %v7410_v19, %v2662_v37  ;;  %v2757_v56 = vmul.f32 0.7978846, %v2744_v59 }
 0x502   : > { %v2793_v23 = vmul.f32 %v2780_v28, %v2689_v54  ;;  %v2693_v37 = vmul.f32 0.5, %v7439_v18 }
 0x503   : > { %v2720_v22 = vmul.f32 %v2707_v61, %v7449_v11  ;;  %v2708_v16 = vmul.f32 0.044715, %v7455_v43  ;;  %v2758_v14 = vmul.f32 0.7978846, %v2745_v48  ;;  %6126 = vtanh.f32 %v2757_v56 }
 0x504   : > { %v2633_v60 = vpop.f32.mrb[100].mxu0  ;;  %v2805_v34 = vpack.c.bf16 %v2793_v23, %v2792_v57 }
 0x505   : > { %v6123_v62 = vpop.eup %6122  ;;  %v2733_v41 = vmul.f32 %v2720_v22, %v7449_v11  ;;  %v2721_v4 = vmul.f32 %v2708_v16, %v7455_v43  ;;  %v2663_v53 = vadd.f32 %v2633_v60, %v7376_v5  ;;  %v5678_v38 = vpop.f32.mrb[101].mxu0  ;;  %6128 = vtanh.f32 %v2758_v14 }
 0x506   : > { %v2636_v29 = vpop.f32.mrb[102].mxu0  ;;  %5688 = vmatprep.subr.bf16.mxu0 %v2805_v34  ;;  %5710 = vmatprep.subr.bf16.mxu1 %v2805_v34  ;;  %v2781_v30 = vadd.f32 1.0, %v6123_v62  ;;  %v2690_v5 = vmul.f32 0.5, %v7418_v17 }
 0x507   : > { %v6125_v46 = vpop.eup %6124  ;;  %v2746_v63 = vadd.f32 %v2733_v41, %v7449_v11  ;;  %v2734_v55 = vmul.f32 %v2721_v4, %v7455_v43  ;;  %v7465_v9 = vadd.f32 %v7410_v19, %v2663_v53  ;;  %v2664_v7 = vadd.f32 %v2636_v29, %v7378_v49  ;;  %v5679_v36 = vpop.f32.mrb[103].mxu0  ;;  %5689 = vmatpush3.bf16.msra.mxu0 %v2805_v34 }
 0x508   : > { %5711 = vmatpush3.bf16.msra.mxu1 %v2805_v34  ;;  %v2782_v15 = vadd.f32 1.0, %v6125_v46  ;;  %v2794_v31 = vmul.f32 %v2781_v30, %v2690_v5  ;;  %v2694_v46 = vmul.f32 0.5, %v7449_v11 }
 0x509   : > { %v2747_v25 = vadd.f32 %v2734_v55, %v7455_v43  ;;  %v2709_v33 = vmul.f32 0.044715, %v7465_v9  ;;  %v7473_v3 = vadd.f32 %v7410_v19, %v2664_v7  ;;  %v2759_v44 = vmul.f32 0.7978846, %v2746_v63 }
 0x50a   : > { %v2795_v45 = vmul.f32 %v2782_v15, %v2691_v40 }
 0x50b   : > { %v2722_v49 = vmul.f32 %v2709_v33, %v7465_v9  ;;  %v2710_v47 = vmul.f32 0.044715, %v7473_v3  ;;  %v2760_v42 = vmul.f32 0.7978846, %v2747_v25  ;;  %6130 = vtanh.f32 %v2759_v44 }
 0x50c   : > { %v2641_v17 = vpop.f32.mrb[104].mxu0  ;;  %v2806_v52 = vpack.c.bf16 %v2795_v45, %v2794_v31 }
 0x50d   : > { %v6127_v10 = vpop.eup %6126  ;;  %v2735_v6 = vmul.f32 %v2722_v49, %v7465_v9  ;;  %v2723_v27 = vmul.f32 %v2710_v47, %v7473_v3  ;;  %v2665_v21 = vadd.f32 %v2641_v17, %v7380_v12  ;;  %v5682_v2 = vpop.f32.mrb[105].mxu0  ;;  %6132 = vtanh.f32 %v2760_v42 }
 0x50e   : > { %v2644_v51 = vpop.f32.mrb[106].mxu0  ;;  %5690 = vmatprep.subr.bf16.mxu0 %v2806_v52  ;;  %5712 = vmatprep.subr.bf16.mxu1 %v2806_v52  ;;  %v2783_v39 = vadd.f32 1.0, %v6127_v10  ;;  %v2692_v12 = vmul.f32 0.5, %v7433_v32  ;;  %v2697_v49 = vmul.f32 0.5, %v7473_v3 }
 0x50f   : > { %v6129_v8 = vpop.eup %6128  ;;  %v2748_v20 = vadd.f32 %v2735_v6, %v7465_v9  ;;  %v2736_v24 = vmul.f32 %v2723_v27, %v7473_v3  ;;  %v7483_v50 = vadd.f32 %v7410_v19, %v2665_v21  ;;  %v2666_v59 = vadd.f32 %v2644_v51, %v7382_v1  ;;  %v5683_v0 = vpop.f32.mrb[107].mxu0  ;;  %5691 = vmatpush3.bf16.msra.mxu0 %v2806_v52 }
 0x510   : > { %5713 = vmatpush3.bf16.msra.mxu1 %v2806_v52  ;;  %v2784_v13 = vadd.f32 1.0, %v6129_v8  ;;  %v2796_v61 = vmul.f32 %v2783_v39, %v2692_v12 }
 0x511   : > { %v2749_v35 = vadd.f32 %v2736_v24, %v7473_v3  ;;  %v2711_v54 = vmul.f32 0.044715, %v7483_v50  ;;  %v7491_v28 = vadd.f32 %v7410_v19, %v2666_v59  ;;  %v2761_v48 = vmul.f32 0.7978846, %v2748_v20 }
 0x512   : > { %v2797_v56 = vmul.f32 %v2784_v13, %v2693_v37  ;;  %v2698_v2 = vmul.f32 0.5, %v7483_v50  ;;  %v2852_v24 = vsel %vm2850_vm8, 4294967295, %v6324_v58  ;;  %v6045_v58 = vld [vmem:[%s6378_s8 + $0x8] sm:$0xff]  }
 0x513   : > { %v2724_v1 = vmul.f32 %v2711_v54, %v7483_v50  ;;  %v2712_v57 = vmul.f32 0.044715, %v7491_v28  ;;  %v2762_v23 = vmul.f32 0.7978846, %v2749_v35  ;;  %6134 = vtanh.f32 %v2761_v48  ;;  %v6048_v35 = vld [vmem:[%s6383_s14 + $0x10] sm:$0xff]   ;;  %v6041_v54 = vld [vmem:[%s6378_s8 + $0x24] sm:$0xff]  }
 0x514   : > { %v2649_v32 = vpop.f32.mrb[108].mxu0  ;;  %v2807_v22 = vpack.c.bf16 %v2797_v56, %v2796_v61  ;;  %v2699_v51 = vmul.f32 0.5, %v7491_v28  ;;  %v2853_v12 = vsel %vm2851_vm9, %v2852_v24, 0  ;;  %v6046_v48 = vld [vmem:[%s6378_s8 + $0x10] sm:$0xff]  }
 0x515   : > { %v6131_v18 = vpop.eup %6130  ;;  %v2737_v16 = vmul.f32 %v2724_v1, %v7483_v50  ;;  %v2725_v14 = vmul.f32 %v2712_v57, %v7491_v28  ;;  %v2667_v60 = vadd.f32 %v2649_v32, %v7384_v26  ;;  %v5686_v34 = vpop.f32.mrb[109].mxu0  ;;  %6136 = vtanh.f32 %v2762_v23  ;;  %v6043_v61 = vld [vmem:[%s6378_s8 + $0x34] ss:$0 sps:$4 sm:$0x11]   ;;  %v6049_v1 = vld [vmem:[%s6383_s14 + $0x18] sm:$0xff]   ;;  %v6050_v57 = vld [vmem:[%s6383_s14] sm:$0xff]  }
 0x516   : > { %v2652_v62 = vpop.f32.mrb[110].mxu0  ;;  %5692 = vmatprep.subr.bf16.mxu0 %v2807_v22  ;;  %5714 = vmatprep.subr.bf16.mxu1 %v2807_v22  ;;  %v2785_v41 = vadd.f32 1.0, %v6131_v18  ;;  %v2695_v26 = vmul.f32 0.5, %v7455_v43  ;;  %v2696_v43 = vmul.f32 0.5, %v7465_v9 }
 0x517   : > { %v6133_v4 = vpop.eup %6132  ;;  %v2750_v53 = vadd.f32 %v2737_v16, %v7483_v50  ;;  %v2738_v38 = vmul.f32 %v2725_v14, %v7491_v28  ;;  %v2687_v29 = vadd.f32 %v7410_v19, %v2667_v60  ;;  %v5687_v30 = vpop.f32.mrb[111].mxu0  ;;  %5693 = vmatpush3.bf16.msra.mxu0 %v2807_v22  ;;  %5715 = vmatpush3.bf16.msra.mxu1 %v2807_v22  ;;  %v6047_v56 = vld [vmem:[%s6378_s8 + $0x18] ss:$0 sps:$4 sm:$0x11]  }
 0x518   : > { %v2786_v63 = vadd.f32 1.0, %v6133_v4  ;;  %v2798_v5 = vmul.f32 %v2785_v41, %v2694_v46 }
 0x519   : > { %v2751_v55 = vadd.f32 %v2738_v38, %v7491_v28  ;;  %v2713_v7 = vmul.f32 0.044715, %v2687_v29  ;;  %v2763_v36 = vmul.f32 0.7978846, %v2750_v53  ;;  %v2700_v59 = vmul.f32 0.5, %v2687_v29  ;;  %v6042_v28 = vld [vmem:[%s6378_s8 + $0x2c] sm:$0xff]  }
 0x51a   : > { %v2799_v40 = vmul.f32 %v2786_v63, %v2695_v26  ;;  %v6051_v38 = vld [vmem:[%s6383_s14 + $0x8] sm:$0xff]  }
 0x51b   : > { %v2726_v15 = vmul.f32 %v2713_v7, %v2687_v29  ;;  %v2764_v25 = vmul.f32 0.7978846, %v2751_v55  ;;  %6138 = vtanh.f32 %v2763_v36 }
 0x51c   : > { %v2808_v33 = vpack.c.bf16 %v2799_v40, %v2798_v5 }
 0x51d   : > { %v6135_v44 = vpop.eup %6134  ;;  %v2739_v19 = vmul.f32 %v2726_v15, %v2687_v29  ;;  %6140 = vtanh.f32 %v2764_v25 }
 0x51e   : > { %5694 = vmatprep.subr.bf16.mxu0 %v2808_v33  ;;  %5716 = vmatprep.subr.bf16.mxu1 %v2808_v33  ;;  %v2787_v31 = vadd.f32 1.0, %v6135_v44 }
 0x51f   : > { %v6137_v11 = vpop.eup %6136  ;;  %v2752_v45 = vadd.f32 %v2739_v19, %v2687_v29  ;;  %5695 = vmatpush3.bf16.msra.mxu0 %v2808_v33  ;;  %5717 = vmatpush3.bf16.msra.mxu1 %v2808_v33 }
 0x520   : > { %v2788_v47 = vadd.f32 1.0, %v6137_v11  ;;  %v2800_v17 = vmul.f32 %v2787_v31, %v2696_v43  ;;  %v5327_v11 = vld [vmem:[%s6388_s19] ss:$0 sm:$0xff] }
 0x521   : > { %v2765_v42 = vmul.f32 0.7978846, %v2752_v45 }
 0x522   : > { %v2801_v52 = vmul.f32 %v2788_v47, %v2697_v49 }
 0x523   : > { %6142 = vtanh.f32 %v2765_v42 }
 0x524   : > { %v2809_v10 = vpack.c.bf16 %v2801_v52, %v2800_v17 }
 0x525   : > { %v6139_v6 = vpop.eup %6138 }
 0x526   : > { %5696 = vmatprep.subr.bf16.mxu0 %v2809_v10  ;;  %5718 = vmatprep.subr.bf16.mxu1 %v2809_v10  ;;  %v2789_v27 = vadd.f32 1.0, %v6139_v6 }
 0x527   : > { %v6141_v21 = vpop.eup %6140  ;;  %5697 = vmatpush3.bf16.msra.mxu0 %v2809_v10  ;;  %5719 = vmatpush3.bf16.msra.mxu1 %v2809_v10 }
 0x528   : > { %v2790_v9 = vadd.f32 1.0, %v6141_v21  ;;  %v2802_v39 = vmul.f32 %v2789_v27, %v2698_v2 }
 0x52a   : > { %v2803_v3 = vmul.f32 %v2790_v9, %v2699_v51 }
 0x52c   : > { %v2810_v8 = vpack.c.bf16 %v2803_v3, %v2802_v39 }
 0x52d   : > { %v6143_v20 = vpop.eup %6142 }
 0x52e   : > { %5698 = vmatprep.subr.bf16.mxu0 %v2810_v8  ;;  %5720 = vmatprep.subr.bf16.mxu1 %v2810_v8  ;;  %v2791_v50 = vadd.f32 1.0, %v6143_v20 }
 0x52f   : > { %5699 = vmatpush3.bf16.msra.mxu0 %v2810_v8  ;;  %5721 = vmatpush3.bf16.msra.mxu1 %v2810_v8 }
 0x530   : > { %v2804_v0 = vmul.f32 %v2791_v50, %v2700_v59 }
 0x532   : > { %v2811_v37 = vpack.c.bf16 %v2804_v0, %v2804_v0 }
 0x534   : > { %v2855_v13 = vand.u32 %v2853_v12, %v2811_v37 }
 0x536   : > { %5700 = vmatprep.subr.bf16.mxu0 %v2855_v13  ;;  %5722 = vmatprep.subr.bf16.mxu1 %v2855_v13 }
 0x537   : > { %5701 = vmatpush3.bf16.msra.mxu0 %v2855_v13  ;;  %5723 = vmatpush3.bf16.msra.mxu1 %v2855_v13 }
 0x538   : > { %5732 = vmatprep.subr.bf16.mxu1 %v6048_v35 }
 0x53a   : > { %5725 = vmatmul.mubr.msk.bf16.vlgmr.msra.gmra.mrb[108].mxu1 %vm2837_vm7, %v6041_v54  ;;  %5703 = vmatmul.mubr.msk.bf16.vlgmr.msra.gmra.mrb[112].mxu0 %vm2837_vm7, %v6045_v58 }
 0x53b   : > { %5728 = vmatprep.mubr.msk.bf16.mxu1 %vm2837_vm7, %v6042_v28  ;;  %5706 = vmatprep.mubr.msk.bf16.mxu0 %vm2837_vm7, %v6046_v48 }
 0x53c   : > { %5733 = vmatpush3.bf16.msra.mxu1 %v6048_v35 }
 0x53d   : > { %5734 = vmatprep.subr.bf16.mxu1 %v6049_v1 }
 0x540   : > { %5735 = vmatpush3.bf16.msra.mxu1 %v6049_v1 }
 0x541   : > { %5744 = vmatprep.subr.bf16.mxu1 %v6050_v57 }
 0x542   : > { %5729 = vmatmul.mubr.msk.bf16.gmra.mrb[112].mxu1 %vm2837_vm7, %v6043_v61  ;;  %5707 = vmatmul.mubr.msk.bf16.gmra.mrb[116].mxu0 %vm2837_vm7, %v6047_v56 }
 0x60d   : > { %v5726_v23 = vpop.f32.mrb[108].mxu1  ;;  %v5704_v32 = vpop.f32.mrb[112].mxu0 }
 0x60e   : > { %v3001_v22 = vpop.f32.mrb[109].mxu1  ;;  %v2891_v18 = vpop.f32.mrb[113].mxu0 }
 0x60f   : > { %v5727_v16 = vpop.f32.mrb[110].mxu1  ;;  %v5705_v14 = vpop.f32.mrb[114].mxu0 }
 0x610   : > { %v3037_v60 = vpack.c.bf16 %v5727_v16, %v5726_v23  ;;  %v3004_v34 = vpop.f32.mrb[111].mxu1  ;;  %v2926_v62 = vpack.c.bf16 %v5705_v14, %v5704_v32  ;;  %v2894_v41 = vpop.f32.mrb[115].mxu0 }
 0x611   : > { %v3036_v4 = vpack.c.bf16 %v3004_v34, %v3001_v22  ;;  %v2925_v53 = vpack.c.bf16 %v2894_v41, %v2891_v18 }
 0x613   : > { %5736 = vmatprep.mubr.msk.bf16.mxu1 %vm1190_vm3, %v3036_v4 }
 0x614   : > { %5737 = vmatmul.mubr.msk.bf16.vlgmr.msra.gmra.mrb[116].mxu1 %vm1190_vm3, %v3037_v60 }
 0x615   : > { %v5730_v29 = vpop.f32.mrb[112].mxu1  ;;  %5745 = vmatpush3.bf16.msra.mxu1 %v6050_v57  ;;  %v5708_v30 = vpop.f32.mrb[116].mxu0 }
 0x616   : > { %v3017_v46 = vpop.f32.mrb[113].mxu1  ;;  %5746 = vmatprep.subr.bf16.mxu1 %v6051_v38  ;;  %v2907_v26 = vpop.f32.mrb[117].mxu0  ;;  %v3039_v15 = vpack.c.bf16 %v5730_v29, %v5730_v29  ;;  %v2928_v25 = vpack.c.bf16 %v5708_v30, %v5708_v30 }
 0x617   : > { %v5731_v63 = vpop.f32.mrb[114].mxu1  ;;  %v5709_v55 = vpop.f32.mrb[118].mxu0 }
 0x618   : > { %v3020_v7 = vpop.f32.mrb[115].mxu1  ;;  %v2910_v36 = vpop.f32.mrb[119].mxu0 }
 0x619   : > { %v3038_v5 = vpack.c.bf16 %v3020_v7, %v3017_v46  ;;  %5747 = vmatpush3.bf16.msra.mxu1 %v6051_v38  ;;  %v2927_v40 = vpack.c.bf16 %v2910_v36, %v2907_v26 }
 0x61b   : > { %5740 = vmatprep.mubr.msk.bf16.mxu1 %vm1190_vm3, %v3038_v5 }
 0x61c   : > { %5741 = vmatmul.mubr.msk.bf16.gmra.mrb[120].mxu1 %vm1190_vm3, %v3039_v15 }
 0x61d   : > { %5748 = vmatprep.mubr.msk.bf16.mxu1 %vm1190_vm3, %v2925_v53 }
 0x624   : > { %5749 = vmatmul.mubr.msk.bf16.vlgmr.msra.gmra.mrb[116].mxu1 %vm1190_vm3, %v2926_v62 }
 0x625   : > { %5752 = vmatprep.mubr.msk.bf16.mxu1 %vm1190_vm3, %v2927_v40 }
 0x62c   : > { %5753 = vmatmul.mubr.msk.bf16.gmra.mrb[124].mxu1 %vm1190_vm3, %v2928_v25 }
 0x6ef   : > { %v5742_v33 = vpop.f32.mrb[120].mxu1 }
 0x6f0   : > { %v3114_v44 = vpop.f32.mrb[121].mxu1 }
 0x6f1   : > { %v5743_v19 = vpop.f32.mrb[122].mxu1 }
 0x6f2   : > { %v3117_v31 = vpop.f32.mrb[123].mxu1 }
 0x6f7   : > { %v5750_v45 = vpop.f32.mrb[116].mxu1 }
 0x6f8   : > { %v3225_v43 = vadd.f32 %v5750_v45, %v5327_v11  ;;  %v3186_v49 = vpop.f32.mrb[117].mxu1 }
 0x6f9   : > { %v3223_v47 = vadd.f32 %v5327_v11, %v3186_v49  ;;  %v5751_v42 = vpop.f32.mrb[118].mxu1 }
 0x6fa   : > { %v3239_v17 = vmul.f32 0.044715, %v3225_v43  ;;  %v3226_v52 = vadd.f32 %v5751_v42, %v5327_v11  ;;  %v3189_v10 = vpop.f32.mrb[119].mxu1  ;;  %v3232_v36 = vmul.f32 0.5, %v3225_v43 }
 0x6fb   : > { %v3237_v6 = vmul.f32 0.044715, %v3223_v47  ;;  %v7534_v27 = vadd.f32 %v5327_v11, %v3189_v10  ;;  %v3230_v25 = vmul.f32 0.5, %v3223_v47 }
 0x6fc   : > { %v3240_v21 = vmul.f32 0.044715, %v3226_v52  ;;  %v3246_v2 = vmul.f32 %v3239_v17, %v3225_v43 }
 0x6fd   : > { %v3238_v51 = vmul.f32 0.044715, %v7534_v27  ;;  %v3244_v9 = vmul.f32 %v3237_v6, %v3223_v47  ;;  %v3231_v49 = vmul.f32 0.5, %v7534_v27 }
 0x6fe   : > { %v3253_v39 = vmul.f32 %v3246_v2, %v3225_v43  ;;  %v3247_v3 = vmul.f32 %v3240_v21, %v3226_v52 }
 0x6ff   : > { %v5754_v8 = vpop.f32.mrb[124].mxu1  ;;  %v3251_v20 = vmul.f32 %v3244_v9, %v3223_v47  ;;  %v3245_v24 = vmul.f32 %v3238_v51, %v7534_v27 }
 0x700   : > { %v3211_v59 = vadd.f32 %v5754_v8, %v5742_v33  ;;  %v3202_v50 = vpop.f32.mrb[125].mxu1  ;;  %v3260_v0 = vadd.f32 %v3253_v39, %v3225_v43  ;;  %v3254_v12 = vmul.f32 %v3247_v3, %v3226_v52 }
 0x701   : > { %v3203_v37 = vadd.f32 %v3202_v50, %v3114_v44  ;;  %v5755_v13 = vpop.f32.mrb[126].mxu1  ;;  %v3258_v35 = vadd.f32 %v3251_v20, %v3223_v47  ;;  %v3252_v54 = vmul.f32 %v3245_v24, %v7534_v27 }
 0x702   : > { %v7539_v58 = vadd.f32 %v5327_v11, %v3211_v59  ;;  %v3205_v28 = vpop.f32.mrb[127].mxu1  ;;  %v3267_v48 = vmul.f32 0.7978846, %v3260_v0  ;;  %v3261_v61 = vadd.f32 %v3254_v12, %v3226_v52 }
 0x703   : > { %v3227_v56 = vadd.f32 %v5327_v11, %v3203_v37  ;;  %v3206_v1 = vadd.f32 %v3205_v28, %v3117_v31  ;;  %v3265_v57 = vmul.f32 0.7978846, %v3258_v35  ;;  %v3259_v23 = vadd.f32 %v3252_v54, %v7534_v27 }
 0x704   : > { %6144 = vtanh.f32 %v3267_v48  ;;  %v3268_v32 = vmul.f32 0.7978846, %v3261_v61  ;;  %v3243_v22 = vmul.f32 0.044715, %v7539_v58  ;;  %v3233_v31 = vmul.f32 0.5, %v3226_v52 }
 0x705   : > { %v3228_v18 = vadd.f32 %v5327_v11, %v3206_v1  ;;  %6146 = vtanh.f32 %v3265_v57  ;;  %v3266_v16 = vmul.f32 0.7978846, %v3259_v23  ;;  %v3241_v14 = vmul.f32 0.044715, %v3227_v56 }
 0x706   : > { %6148 = vtanh.f32 %v3268_v32  ;;  %v3250_v60 = vmul.f32 %v3243_v22, %v7539_v58  ;;  %v3234_v9 = vmul.f32 0.5, %v3227_v56  ;;  %v3236_v24 = vmul.f32 0.5, %v7539_v58 }
 0x707   : > { %6150 = vtanh.f32 %v3266_v16  ;;  %v3242_v34 = vmul.f32 0.044715, %v3228_v18  ;;  %v3248_v62 = vmul.f32 %v3241_v14, %v3227_v56  ;;  %v3235_v3 = vmul.f32 0.5, %v3228_v18 }
 0x708   : > { %v3257_v41 = vmul.f32 %v3250_v60, %v7539_v58 }
 0x709   : > { %v3249_v4 = vmul.f32 %v3242_v34, %v3228_v18  ;;  %v3255_v53 = vmul.f32 %v3248_v62, %v3227_v56 }
 0x70a   : > { %v3264_v38 = vadd.f32 %v3257_v41, %v7539_v58 }
 0x70b   : > { %v3256_v29 = vmul.f32 %v3249_v4, %v3228_v18  ;;  %v3262_v30 = vadd.f32 %v3255_v53, %v3227_v56 }
 0x70c   : > { %v3271_v46 = vmul.f32 0.7978846, %v3264_v38 }
 0x70d   : > { %v3263_v26 = vadd.f32 %v3256_v29, %v3228_v18  ;;  %v3269_v55 = vmul.f32 0.7978846, %v3262_v30 }
 0x70e   : > { %v6145_v63 = vpop.eup %6144  ;;  %6152 = vtanh.f32 %v3271_v46 }
 0x70f   : > { %v6147_v7 = vpop.eup %6146  ;;  %v3281_v5 = vadd.f32 1.0, %v6145_v63  ;;  %v3270_v40 = vmul.f32 0.7978846, %v3263_v26  ;;  %6154 = vtanh.f32 %v3269_v55 }
 0x710   : > { %v6149_v15 = vpop.eup %6148  ;;  %v3279_v33 = vadd.f32 1.0, %v6147_v7 }
 0x711   : > { %v6151_v44 = vpop.eup %6150  ;;  %v3288_v19 = vmul.f32 %v3281_v5, %v3232_v36  ;;  %v3282_v11 = vadd.f32 1.0, %v6149_v15  ;;  %6156 = vtanh.f32 %v3270_v40 }
 0x712   : > { %v3286_v45 = vmul.f32 %v3279_v33, %v3230_v25  ;;  %v3280_v42 = vadd.f32 1.0, %v6151_v44  ;;  %v6052_v33 = vld [vmem:[%s6403_s6] sm:$0xff]   ;;  %v6053_v44 = vld [vmem:[%s6403_s6 + $0x8] sm:$0xff]  }
 0x713   : > { %v3301_v17 = vsel %vm1190_vm3, %v3288_v19, 0.0  ;;  %v3289_v10 = vmul.f32 %v3282_v11, %v3233_v31  ;;  %5756 = vmatprep.subr.bf16.mxu0 %v6052_v33 }
 0x714   : > { %3302 = vadd.xlane.f32.xlu1 %v3301_v17  ;;  %v3295_v43 = vsel %vm1190_vm3, %v3286_v45, 0.0  ;;  %v3287_v6 = vmul.f32 %v3280_v42, %v3231_v49  ;;  %5757 = vmatpush3.bf16.msra.mxu0 %v6052_v33 }
 0x715   : > { %3296 = vadd.xlane.f32.xlu0 %v3295_v43  ;;  %v3304_v47 = vsel %vm1190_vm3, %v3289_v10, 0.0  ;;  %5758 = vmatprep.subr.bf16.mxu0 %v6053_v44 }
 0x716   : > { %v3298_v52 = vsel %vm1190_vm3, %v3287_v6, 0.0 }
 0x718   : > { %v6153_v21 = vpop.eup %6152  ;;  %3305 = vadd.xlane.f32.xlu1 %v3304_v47  ;;  %5759 = vmatpush3.bf16.msra.mxu0 %v6053_v44 }
 0x719   : > { %3299 = vadd.xlane.f32.xlu0 %v3298_v52  ;;  %v6155_v2 = vpop.eup %6154  ;;  %v3285_v39 = vadd.f32 1.0, %v6153_v21 }
 0x71a   : > { %v3283_v27 = vadd.f32 1.0, %v6155_v2 }
 0x71b   : > { %v6157_v51 = vpop.eup %6156  ;;  %v3292_v0 = vmul.f32 %v3285_v39, %v3236_v24 }
 0x71c   : > { %v3284_v8 = vadd.f32 1.0, %v6157_v51  ;;  %v3290_v20 = vmul.f32 %v3283_v27, %v3234_v9 }
 0x71d   : > { %v3314_v37 = vsel %vm3313_vm10, %v3292_v0, 0.0 }
 0x71e   : > { %v3291_v59 = vmul.f32 %v3284_v8, %v3235_v3  ;;  %v3307_v50 = vsel %vm1190_vm3, %v3290_v20, 0.0 }
 0x71f   : > { %3308 = vadd.xlane.f32.xlu0 %v3307_v50 }
 0x720   : > { %v3310_v12 = vsel %vm1190_vm3, %v3291_v59, 0.0 }
 0x721   : > { %3311 = vadd.xlane.f32.xlu1 %v3310_v12 }
 0x723   : > { %3315 = vadd.xlane.f32.xlu0 %v3314_v37 }
 0x7a1   : > { %v3303_v13 = vpop.xlane.xlu1 %3302 }
 0x7a2   : > { %v3320_v35 = vmul.f32 0.03125, %v3303_v13  ;;  %v3297_v54 = vpop.xlane.xlu0 %3296 }
 0x7a3   : > { %v3318_v28 = vmul.f32 0.03125, %v3297_v54  ;;  %v5329_v54 = vld [vmem:[%s6398_s30] ss:$0 sm:$0xff] }
 0x7a4   : > { %v7555_v48 = vsub.f32 %v3288_v19, %v3320_v35 }
 0x7a5   : > { %v7557_v61 = vsub.f32 %v3286_v45, %v3318_v28  ;;  %v3306_v58 = vpop.xlane.xlu1 %3305 }
 0x7a6   : > { %v3321_v56 = vmul.f32 0.03125, %v3306_v58  ;;  %v3300_v1 = vpop.xlane.xlu0 %3299  ;;  %v3334_v16 = vmul.f32 %v7555_v48, %v7555_v48 }
 0x7a7   : > { %v3319_v57 = vmul.f32 0.03125, %v3300_v1  ;;  %v3332_v23 = vmul.f32 %v7557_v61, %v7557_v61 }
 0x7a8   : > { %v7561_v32 = vsub.f32 %v3289_v10, %v3321_v56  ;;  %v3345_v34 = vsel %vm1190_vm3, %v3334_v16, 0.0 }
 0x7a9   : > { %v7563_v22 = vsub.f32 %v3287_v6, %v3319_v57  ;;  %v3339_v18 = vsel %vm1190_vm3, %v3332_v23, 0.0 }
 0x7aa   : > { %3340 = vadd.xlane.f32.xlu1 %v3339_v18  ;;  %v3335_v41 = vmul.f32 %v7561_v32, %v7561_v32 }
 0x7ab   : > { %v3333_v14 = vmul.f32 %v7563_v22, %v7563_v22 }
 0x7ac   : > { %v3309_v60 = vpop.xlane.xlu0 %3308  ;;  %v3348_v26 = vsel %vm1190_vm3, %v3335_v41, 0.0 }
 0x7ad   : > { %v3342_v62 = vsel %vm1190_vm3, %v3333_v14, 0.0  ;;  %v3322_v4 = vmul.f32 0.03125, %v3309_v60 }
 0x7ae   : > { %3346 = vadd.xlane.f32.xlu1 %v3345_v34  ;;  %v3312_v53 = vpop.xlane.xlu1 %3311  ;;  %3343 = vadd.xlane.f32.xlu0 %v3342_v62 }
 0x7af   : > { %v3323_v38 = vmul.f32 0.03125, %v3312_v53  ;;  %v7574_v29 = vsub.f32 %v3290_v20, %v3322_v4 }
 0x7b0   : > { %v3316_v46 = vpop.xlane.xlu0 %3315 }
 0x7b1   : > { %v7576_v30 = vsub.f32 %v3291_v59, %v3323_v38  ;;  %v3324_v63 = vmul.f32 0.03125, %v3316_v46  ;;  %v3336_v55 = vmul.f32 %v7574_v29, %v7574_v29  ;;  %v5328_v59 = vld [vmem:[%s6393_s24] ss:$0 sm:$0xff] }
 0x7b2   : > { %3349 = vadd.xlane.f32.xlu0 %v3348_v26 }
 0x7b3   : > { %v3337_v7 = vmul.f32 %v7576_v30, %v7576_v30  ;;  %v7583_v36 = vsub.f32 %v3292_v0, %v3324_v63  ;;  %v3351_v5 = vsel %vm1190_vm3, %v3336_v55, 0.0 }
 0x7b4   : > { %3352 = vadd.xlane.f32.xlu1 %v3351_v5 }
 0x7b5   : > { %v3354_v40 = vsel %vm1190_vm3, %v3337_v7, 0.0  ;;  %v3338_v15 = vmul.f32 %v7583_v36, %v7583_v36 }
 0x7b6   : > { %3355 = vadd.xlane.f32.xlu0 %v3354_v40 }
 0x7b7   : > { %v3357_v25 = vsel %vm3313_vm10, %v3338_v15, 0.0 }
 0x7b8   : > { %3358 = vadd.xlane.f32.xlu1 %v3357_v25 }
 0x837   : > { %v3341_v19 = vpop.xlane.xlu1 %3340 }
 0x838   : > { %v3360_v31 = vmul.f32 0.03125, %v3341_v19 }
 0x83a   : > { %v3367_v11 = vadd.f32 1e-05, %v3360_v31 }
 0x83b   : > { %v3347_v45 = vpop.xlane.xlu1 %3346  ;;  %v3344_v49 = vpop.xlane.xlu0 %3343 }
 0x83c   : > { %6158 = vrsqrt.f32 %v3367_v11  ;;  %v3362_v42 = vmul.f32 0.03125, %v3347_v45  ;;  %v3361_v17 = vmul.f32 0.03125, %v3344_v49 }
 0x83e   : > { %v3369_v10 = vadd.f32 1e-05, %v3362_v42  ;;  %v3368_v43 = vadd.f32 1e-05, %v3361_v17 }
 0x83f   : > { %v3350_v6 = vpop.xlane.xlu0 %3349 }
 0x840   : > { %6160 = vrsqrt.f32 %v3369_v10  ;;  %v3363_v47 = vmul.f32 0.03125, %v3350_v6 }
 0x841   : > { %6162 = vrsqrt.f32 %v3368_v43  ;;  %v3353_v52 = vpop.xlane.xlu1 %3352 }
 0x842   : > { %v3370_v21 = vadd.f32 1e-05, %v3363_v47  ;;  %v3364_v2 = vmul.f32 0.03125, %v3353_v52 }
 0x843   : > { %v3356_v51 = vpop.xlane.xlu0 %3355 }
 0x844   : > { %6164 = vrsqrt.f32 %v3370_v21  ;;  %v3365_v9 = vmul.f32 0.03125, %v3356_v51  ;;  %v3371_v27 = vadd.f32 1e-05, %v3364_v2 }
 0x845   : > { %v3359_v8 = vpop.xlane.xlu1 %3358 }
 0x846   : > { %v6159_v39 = vpop.eup %6158  ;;  %v3372_v3 = vadd.f32 1e-05, %v3365_v9  ;;  %6166 = vrsqrt.f32 %v3371_v27  ;;  %v3366_v20 = vmul.f32 0.03125, %v3359_v8 }
 0x847   : > { %v3381_v24 = vmul.f32 %v6159_v39, %v7557_v61 }
 0x848   : > { %6168 = vrsqrt.f32 %v3372_v3  ;;  %v3373_v50 = vadd.f32 1e-05, %v3366_v20 }
 0x849   : > { %v3394_v35 = vmul.f32 %v5328_v59, %v3381_v24 }
 0x84a   : > { %v6161_v0 = vpop.eup %6160  ;;  %6170 = vrsqrt.f32 %v3373_v50 }
 0x84b   : > { %v6163_v12 = vpop.eup %6162  ;;  %v3383_v37 = vmul.f32 %v6161_v0, %v7555_v48  ;;  %v3407_v57 = vadd.f32 %v5329_v54, %v3394_v35 }
 0x84c   : > { %v3382_v13 = vmul.f32 %v6163_v12, %v7563_v22 }
 0x84d   : > { %v3396_v56 = vmul.f32 %v5328_v59, %v3383_v37 }
 0x84e   : > { %v6165_v28 = vpop.eup %6164  ;;  %v3395_v58 = vmul.f32 %v5328_v59, %v3382_v13 }
 0x84f   : > { %v3384_v1 = vmul.f32 %v6165_v28, %v7561_v32  ;;  %v3409_v34 = vadd.f32 %v5329_v54, %v3396_v56 }
 0x850   : > { %v3408_v23 = vadd.f32 %v5329_v54, %v3395_v58  ;;  %v6167_v61 = vpop.eup %6166 }
 0x851   : > { %v3397_v18 = vmul.f32 %v5328_v59, %v3384_v1  ;;  %v3385_v14 = vmul.f32 %v6167_v61, %v7574_v29 }
 0x852   : > { %v6169_v16 = vpop.eup %6168  ;;  %v3418_v60 = vpack.c.bf16 %v3408_v23, %v3407_v57 }
 0x853   : > { %v3410_v48 = vadd.f32 %v5329_v54, %v3397_v18  ;;  %v3386_v62 = vmul.f32 %v6169_v16, %v7576_v30  ;;  %v3398_v22 = vmul.f32 %v5328_v59, %v3385_v14  ;;  %v5330_v30 = vld [vmem:[%s8015_s15] ss:$0 sm:$0xff]  ;;  %s8021_s15 = sld [smem:[#allocation8_spill]] }
 0x854   : > { %5760 = vmatprep.mubr.msk.bf16.mxu0 %vm1190_vm3, %v3418_v60  ;;  %v6171_v41 = vpop.eup %6170 }
 0x855   : > { %v3419_v4 = vpack.c.bf16 %v3410_v48, %v3409_v34  ;;  %v3399_v53 = vmul.f32 %v5328_v59, %v3386_v62  ;;  %v3387_v32 = vmul.f32 %v6171_v41, %v7583_v36  ;;  %v3411_v38 = vadd.f32 %v5329_v54, %v3398_v22 }
 0x857   : > { %5761 = vmatmul.mubr.msk.bf16.vlgmr.msra.gmra.mrb[120].mxu0 %vm1190_vm3, %v3419_v4  ;;  %v3412_v46 = vadd.f32 %v5329_v54, %v3399_v53  ;;  %v3400_v26 = vmul.f32 %v5328_v59, %v3387_v32 }
 0x859   : > { %v3420_v29 = vpack.c.bf16 %v3412_v46, %v3411_v38  ;;  %v3413_v63 = vadd.f32 %v5329_v54, %v3400_v26  ;;  %v6054_v38 = vld [vmem:[%s8016_s16] sm:$0xff]   ;;  %v6055_v46 = vld [vmem:[%s8016_s16 + $0x8] sm:$0xff]  }
 0x85a   : > { %5768 = vmatprep.subr.bf16.mxu0 %v6054_v38 }
 0x85b   : > { %5764 = vmatprep.mubr.msk.bf16.mxu0 %vm1190_vm3, %v3420_v29  ;;  %v3421_v55 = vpack.c.bf16 %v3413_v63, %v3413_v63  ;;  %5769 = vmatpush3.bf16.msra.mxu0 %v6054_v38 }
 0x85c   : > { %5770 = vmatprep.subr.bf16.mxu0 %v6055_v46 }
 0x85f   : > { %5765 = vmatmul.mubr.msk.bf16.gmra.mrb[124].mxu0 %vm1190_vm3, %v3421_v55 }
 0x860   : > { %5771 = vmatpush3.bf16.msra.mxu0 %v6055_v46 }
 0x92a   : > { %v5762_v7 = vpop.f32.mrb[120].mxu0 }
 0x92b   : > { %v3487_v5 = vpop.f32.mrb[121].mxu0  ;;  %v3496_v33 = vadd.f32 %v5762_v7, %v5330_v30 }
 0x92c   : > { %v3488_v40 = vadd.f32 %v5330_v30, %v3487_v5  ;;  %v5763_v15 = vpop.f32.mrb[122].mxu0 }
 0x92d   : > { %v3490_v25 = vpop.f32.mrb[123].mxu0  ;;  %v3499_v19 = vadd.f32 %v5763_v15, %v5330_v30  ;;  %v3525_v45 = vsel %vm1190_vm3, %v3496_v33, 0.0 }
 0x92e   : > { %v3491_v36 = vadd.f32 %v5330_v30, %v3490_v25  ;;  %v3519_v44 = vsel %vm1190_vm3, %v3488_v40, 0.0 }
 0x92f   : > { %3520 = vadd.xlane.f32.xlu0 %v3519_v44  ;;  %v3528_v10 = vsel %vm1190_vm3, %v3499_v19, 0.0 }
 0x930   : > { %v3522_v31 = vsel %vm1190_vm3, %v3491_v36, 0.0 }
 0x931   : > { %3523 = vadd.xlane.f32.xlu1 %v3522_v31 }
 0x932   : > { %v5766_v11 = vpop.f32.mrb[124].mxu0 }
 0x933   : > { %3526 = vadd.xlane.f32.xlu0 %v3525_v45  ;;  %v3503_v49 = vpop.f32.mrb[125].mxu0  ;;  %v3512_v6 = vadd.f32 %v5766_v11, %v5330_v30 }
 0x934   : > { %v3504_v42 = vadd.f32 %v5330_v30, %v3503_v49  ;;  %v5767_v17 = vpop.f32.mrb[126].mxu0 }
 0x935   : > { %3529 = vadd.xlane.f32.xlu1 %v3528_v10  ;;  %v3506_v43 = vpop.f32.mrb[127].mxu0  ;;  %v3537_v2 = vsel %vm3313_vm10, %v3512_v6, 0.0 }
 0x936   : > { %v3507_v47 = vadd.f32 %v5330_v30, %v3506_v43  ;;  %v3531_v21 = vsel %vm1190_vm3, %v3504_v42, 0.0  ;;  %v5337_v43 = vld [vmem:[%s8017_s18] ss:$0 sm:$0xff]  ;;  %s8022_s18 = sld [smem:[#allocation11_spill]] }
 0x937   : > { %3532 = vadd.xlane.f32.xlu0 %v3531_v21 }
 0x938   : > { %v3534_v52 = vsel %vm1190_vm3, %v3507_v47, 0.0 }
 0x939   : > { %3535 = vadd.xlane.f32.xlu1 %v3534_v52 }
 0x93b   : > { %3538 = vadd.xlane.f32.xlu0 %v3537_v2 }
 0x9bc   : > { %v3521_v51 = vpop.xlane.xlu0 %3520 }
 0x9bd   : > { %v3540_v9 = vmul.f32 0.03125, %v3521_v51 }
 0x9be   : > { %v3524_v27 = vpop.xlane.xlu1 %3523 }
 0x9bf   : > { %v7613_v39 = vsub.f32 %v3488_v40, %v3540_v9  ;;  %v3541_v3 = vmul.f32 0.03125, %v3524_v27  ;;  %v5338_v9 = vld [vmem:[%s8018_s22] ss:$0 sm:$0xff]  ;;  %s8023_s22 = sld [smem:[#allocation9_spill]] }
 0x9c0   : > { %v3527_v8 = vpop.xlane.xlu0 %3526 }
 0x9c1   : > { %v7615_v20 = vsub.f32 %v3491_v36, %v3541_v3  ;;  %v3542_v24 = vmul.f32 0.03125, %v3527_v8  ;;  %v3554_v59 = vmul.f32 %v7613_v39, %v7613_v39 }
 0x9c2   : > { %v3530_v50 = vpop.xlane.xlu1 %3529 }
 0x9c3   : > { %v7619_v0 = vsub.f32 %v3496_v33, %v3542_v24  ;;  %v3543_v12 = vmul.f32 0.03125, %v3530_v50  ;;  %v3561_v37 = vsel %vm1190_vm3, %v3554_v59, 0.0  ;;  %v3555_v13 = vmul.f32 %v7615_v20, %v7615_v20 }
 0x9c4   : > { %3562 = vadd.xlane.f32.xlu1 %v3561_v37  ;;  %v3533_v35 = vpop.xlane.xlu0 %3532 }
 0x9c5   : > { %v7624_v54 = vsub.f32 %v3499_v19, %v3543_v12  ;;  %v3544_v28 = vmul.f32 0.03125, %v3533_v35  ;;  %v3564_v58 = vsel %vm1190_vm3, %v3555_v13, 0.0  ;;  %v3556_v56 = vmul.f32 %v7619_v0, %v7619_v0 }
 0x9c6   : > { %v3536_v1 = vpop.xlane.xlu1 %3535  ;;  %3565 = vadd.xlane.f32.xlu0 %v3564_v58 }
 0x9c7   : > { %v7629_v57 = vsub.f32 %v3504_v42, %v3544_v28  ;;  %v3545_v23 = vmul.f32 0.03125, %v3536_v1  ;;  %v3567_v61 = vsel %vm1190_vm3, %v3556_v56, 0.0  ;;  %v3557_v18 = vmul.f32 %v7624_v54, %v7624_v54 }
 0x9c8   : > { %3568 = vadd.xlane.f32.xlu1 %v3567_v61  ;;  %v3539_v16 = vpop.xlane.xlu0 %3538 }
 0x9c9   : > { %v7634_v14 = vsub.f32 %v3507_v47, %v3545_v23  ;;  %v3546_v60 = vmul.f32 0.03125, %v3539_v16  ;;  %v3570_v34 = vsel %vm1190_vm3, %v3557_v18, 0.0  ;;  %v3558_v48 = vmul.f32 %v7629_v57, %v7629_v57 }
 0x9ca   : > { %3571 = vadd.xlane.f32.xlu0 %v3570_v34 }
 0x9cb   : > { %v7639_v62 = vsub.f32 %v3512_v6, %v3546_v60  ;;  %v3573_v22 = vsel %vm1190_vm3, %v3558_v48, 0.0  ;;  %v3559_v41 = vmul.f32 %v7634_v14, %v7634_v14 }
 0x9cc   : > { %3574 = vadd.xlane.f32.xlu1 %v3573_v22 }
 0x9cd   : > { %v3576_v4 = vsel %vm1190_vm3, %v3559_v41, 0.0  ;;  %v3560_v53 = vmul.f32 %v7639_v62, %v7639_v62 }
 0x9ce   : > { %3577 = vadd.xlane.f32.xlu0 %v3576_v4 }
 0x9cf   : > { %v3579_v32 = vsel %vm3313_vm10, %v3560_v53, 0.0 }
 0x9d0   : > { %3580 = vadd.xlane.f32.xlu1 %v3579_v32 }
 0xa51   : > { %v3563_v26 = vpop.xlane.xlu1 %3562 }
 0xa52   : > { %v3582_v29 = vmul.f32 0.03125, %v3563_v26 }
 0xa53   : > { %v3566_v63 = vpop.xlane.xlu0 %3565 }
 0xa54   : > { %v3589_v55 = vadd.f32 1e-05, %v3582_v29  ;;  %v3583_v30 = vmul.f32 0.03125, %v3566_v63 }
 0xa55   : > { %v3569_v7 = vpop.xlane.xlu1 %3568 }
 0xa56   : > { %6172 = vrsqrt.f32 %v3589_v55  ;;  %v3590_v5 = vadd.f32 1e-05, %v3583_v30  ;;  %v3584_v40 = vmul.f32 0.03125, %v3569_v7 }
 0xa57   : > { %v3572_v15 = vpop.xlane.xlu0 %3571 }
 0xa58   : > { %6174 = vrsqrt.f32 %v3590_v5  ;;  %v3591_v25 = vadd.f32 1e-05, %v3584_v40  ;;  %v3585_v33 = vmul.f32 0.03125, %v3572_v15 }
 0xa59   : > { %v3575_v36 = vpop.xlane.xlu1 %3574 }
 0xa5a   : > { %6176 = vrsqrt.f32 %v3591_v25  ;;  %v3592_v44 = vadd.f32 1e-05, %v3585_v33  ;;  %v3586_v19 = vmul.f32 0.03125, %v3575_v36 }
 0xa5b   : > { %v3578_v31 = vpop.xlane.xlu0 %3577 }
 0xa5c   : > { %6178 = vrsqrt.f32 %v3592_v44  ;;  %v3593_v11 = vadd.f32 1e-05, %v3586_v19  ;;  %v3587_v45 = vmul.f32 0.03125, %v3578_v31 }
 0xa5d   : > { %v3581_v49 = vpop.xlane.xlu1 %3580 }
 0xa5e   : > { %6180 = vrsqrt.f32 %v3593_v11  ;;  %v3594_v42 = vadd.f32 1e-05, %v3587_v45  ;;  %v3588_v17 = vmul.f32 0.03125, %v3581_v49 }
 0xa60   : > { %v6173_v10 = vpop.eup %6172  ;;  %6182 = vrsqrt.f32 %v3594_v42  ;;  %v3595_v6 = vadd.f32 1e-05, %v3588_v17 }
 0xa61   : > { %v3603_v47 = vmul.f32 %v6173_v10, %v7613_v39 }
 0xa62   : > { %v6175_v21 = vpop.eup %6174  ;;  %6184 = vrsqrt.f32 %v3595_v6 }
 0xa63   : > { %v3604_v52 = vmul.f32 %v6175_v21, %v7615_v20  ;;  %v3616_v2 = vmul.f32 %v5337_v43, %v3603_v47 }
 0xa64   : > { %v6177_v51 = vpop.eup %6176 }
 0xa65   : > { %v3605_v27 = vmul.f32 %v6177_v51, %v7619_v0  ;;  %v3617_v3 = vmul.f32 %v5337_v43, %v3604_v52  ;;  %v7656_v50 = vadd.f32 %v5338_v9, %v3616_v2 }
 0xa66   : > { %v6179_v8 = vpop.eup %6178 }
 0xa67   : > { %v3618_v24 = vmul.f32 %v5337_v43, %v3605_v27  ;;  %v3606_v59 = vmul.f32 %v6179_v8, %v7624_v54  ;;  %v7658_v12 = vadd.f32 %v5338_v9, %v3617_v3 }
 0xa68   : > { %v6181_v37 = vpop.eup %6180 }
 0xa69   : > { %v3619_v39 = vmul.f32 %v5337_v43, %v3606_v59  ;;  %v3607_v13 = vmul.f32 %v6181_v37, %v7629_v57  ;;  %v3640_v20 = vpack.c.bf16 %v7658_v12, %v7656_v50  ;;  %v7663_v28 = vadd.f32 %v5338_v9, %v3618_v24 }
 0xa6a   : > { %v6183_v35 = vpop.eup %6182 }
 0xa6b   : > { %v7665_v0 = vadd.f32 %v5338_v9, %v3619_v39  ;;  %v3608_v58 = vmul.f32 %v6183_v35, %v7634_v14  ;;  %5772 = vmatprep.mubr.msk.bf16.mxu0 %vm1190_vm3, %v3640_v20  ;;  %v3620_v54 = vmul.f32 %v5337_v43, %v3607_v13 }
 0xa6c   : > { %v6185_v56 = vpop.eup %6184 }
 0xa6d   : > { %v3609_v1 = vmul.f32 %v6185_v56, %v7639_v62  ;;  %v3641_v57 = vpack.c.bf16 %v7665_v0, %v7663_v28  ;;  %v3621_v23 = vmul.f32 %v5337_v43, %v3608_v58  ;;  %v7673_v61 = vadd.f32 %v5338_v9, %v3620_v54  ;;  %v5339_v62 = vld [vmem:[%s8019_s23] ss:$0 sm:$0xff]  ;;  %s8024_s23 = sld [smem:[#allocation10_spill]] }
 0xa6f   : > { %5773 = vmatmul.mubr.msk.bf16.vlgmr.msra.gmra.mrb[128].mxu0 %vm1190_vm3, %v3641_v57  ;;  %v7675_v18 = vadd.f32 %v5338_v9, %v3621_v23  ;;  %v3622_v16 = vmul.f32 %v5337_v43, %v3609_v1 }
 0xa71   : > { %v3642_v14 = vpack.c.bf16 %v7675_v18, %v7673_v61  ;;  %v7679_v60 = vadd.f32 %v5338_v9, %v3622_v16 }
 0xa73   : > { %5776 = vmatprep.mubr.msk.bf16.mxu0 %vm1190_vm3, %v3642_v14  ;;  %v3643_v34 = vpack.c.bf16 %v7679_v60, %v7679_v60 }
 0xa77   : > { %5777 = vmatmul.mubr.msk.bf16.gmra.mrb[132].mxu0 %vm1190_vm3, %v3643_v34 }
 0xb42   : > { %v5774_v48 = vpop.f32.mrb[128].mxu0 }
 0xb43   : > { %v3709_v22 = vpop.f32.mrb[129].mxu0  ;;  %v3718_v4 = vadd.f32 %v5774_v48, %v5339_v62 }
 0xb44   : > { %v5775_v41 = vpop.f32.mrb[130].mxu0  ;;  %v3710_v38 = vadd.f32 %v5339_v62, %v3709_v22 }
 0xb45   : > { %v3721_v53 = vadd.f32 %v5775_v41, %v5339_v62  ;;  %v3712_v32 = vpop.f32.mrb[131].mxu0 }
 0xb46   : > { %v3713_v46 = vadd.f32 %v5339_v62, %v3712_v32 }
 0xb47   : > { %v7686_v26 = vpack.c.bf16 %v3721_v53, %v3718_v4 }
 0xb48   : > { %v7688_v29 = vpack.c.bf16 %v3713_v46, %v3710_v38 }
 0xb49   : > { %3753 = vrot.lane.b32.xlu1 %v7686_v26, %s6325_s26 }
 0xb4a   : > { %3751 = vrot.lane.b32.xlu0 %v7688_v29, %s6325_s26  ;;  %v5778_v63 = vpop.f32.mrb[132].mxu0  ;;  %5788 = vmatprep.mubr.msk.bf16.mxu1 %vm3759_vm11, %v7688_v29 }
 0xb4b   : > { %v3725_v55 = vpop.f32.mrb[133].mxu0  ;;  %v3734_v15 = vadd.f32 %v5778_v63, %v5339_v62 }
 0xb4c   : > { %v5779_v30 = vpop.f32.mrb[134].mxu0  ;;  %v3726_v5 = vadd.f32 %v5339_v62, %v3725_v55 }
 0xb4d   : > { %v3728_v7 = vpop.f32.mrb[135].mxu0  ;;  %v7697_v33 = vpack.c.bf16 %v3734_v15, %v3734_v15 }
 0xb4e   : > { %v3729_v40 = vadd.f32 %v5339_v62, %v3728_v7 }
 0xb50   : > { %v7694_v25 = vpack.c.bf16 %v3729_v40, %v3726_v5 }
 0xb52   : > { %3755 = vrot.lane.b32.xlu1 %v7694_v25, %s6325_s26 }
 0xb56   : > { %3757 = vrot.lane.b32.xlu1 %v7697_v33, %s6325_s26  ;;  %s8025_s26 = sld [smem:[#allocation13_spill]] }
 0xbbb   : > { %v3754_v19 = vpop.permute.xlu1 %3753 }
 0xbbc   : > { %v3752_v36 = vpop.permute.xlu0 %3751  ;;  %v3776_v31 = vsel %vm3759_vm11, %v3754_v19, 0 }
 0xbbd   : > { %v3773_v44 = vsel %vm3759_vm11, %v3752_v36, 0  ;;  %5902 = vmatprep.subr.msk.bf16.mxu1 %vm3759_vm11, %v3752_v36 }
 0xbbe   : > { %5781 = vmatpush3.bf16.xpose.msra.mxu1 %v3773_v44 }
 0xbbf   : > { %5903 = vmatprep.subr.msk.bf16.mxu1 %vm3759_vm11, %v3754_v19 }
 0xbc4   : > { %v3756_v11 = vpop.permute.xlu1 %3755 }
 0xbc5   : > { %v3779_v45 = vsel %vm3759_vm11, %v3756_v11, 0 }
 0xbc6   : > { %5783 = vmatpush3.bf16.xpose.msra.mxu1 %v3776_v31 }
 0xbc7   : > { %5904 = vmatprep.subr.msk.bf16.mxu1 %vm3759_vm11, %v3756_v11 }
 0xbc8   : > { %v3758_v49 = vpop.permute.xlu1 %3757 }
 0xbc9   : > { %v3782_v42 = vsel %vm3759_vm11, %v3758_v49, 0 }
 0xbce   : > { %5785 = vmatpush3.bf16.xpose.msra.mxu1 %v3779_v45 }
 0xbcf   : > { %5905 = vmatprep.subr.msk.bf16.mxu1 %vm3759_vm11, %v3758_v49 }
 0xbd6   : > { %5787 = vmatpush3.bf16.xpose.msra.mxu1 %v3782_v42 }
 0xbdd   : > { %5789 = vmatmul.mubr.msk.bf16.vlgmr.msra.gmra.mrb[128].mxu1 %vm3759_vm11, %v7686_v26 }
 0xbde   : > { %5792 = vmatprep.mubr.msk.bf16.mxu1 %vm3759_vm11, %v7694_v25 }
 0xbe5   : > { %5793 = vmatmul.mubr.msk.bf16.gmra.mrb[132].mxu1 %vm3759_vm11, %v7697_v33 }
 0xcb0   : > { %v5790_v17 = vpop.f32.mrb[128].mxu1 }
 0xcb1   : > { %v3818_v10 = vpop.f32.mrb[129].mxu1  ;;  %v3850_v21 = vmul.f32 0.25, %v5790_v17 }
 0xcb2   : > { %v3848_v43 = vmul.f32 0.25, %v3818_v10  ;;  %v5791_v6 = vpop.f32.mrb[130].mxu1 }
 0xcb3   : > { %v3821_v47 = vpop.f32.mrb[131].mxu1  ;;  %v3851_v9 = vmul.f32 0.25, %v5791_v6  ;;  %v3862_v3 = vsel %vm3855_vm12, %v3850_v21, -inf }
 0xcb4   : > { %v3849_v52 = vmul.f32 0.25, %v3821_v47  ;;  %v3856_v2 = vsel %vm3855_vm12, %v3848_v43, -inf }
 0xcb5   : > { %3857 = vmax.xlane.f32.xlu0 %v3856_v2  ;;  %v3865_v13 = vsel %vm3855_vm12, %v3851_v9, -inf }
 0xcb6   : > { %v3859_v51 = vsel %vm3855_vm12, %v3849_v52, -inf }
 0xcb7   : > { %3860 = vmax.xlane.f32.xlu1 %v3859_v51 }
 0xcb8   : > { %v5794_v27 = vpop.f32.mrb[132].mxu1 }
 0xcb9   : > { %3863 = vmax.xlane.f32.xlu0 %v3862_v3  ;;  %v3834_v8 = vpop.f32.mrb[133].mxu1  ;;  %v3854_v37 = vmul.f32 0.25, %v5794_v27 }
 0xcba   : > { %v5795_v24 = vpop.f32.mrb[134].mxu1  ;;  %v3852_v35 = vmul.f32 0.25, %v3834_v8 }
 0xcbb   : > { %v3837_v59 = vpop.f32.mrb[135].mxu1  ;;  %v3875_v58 = vsel %vm3874_vm13, %v3854_v37, -inf }
 0xcbc   : > { %v3853_v39 = vmul.f32 0.25, %v3837_v59  ;;  %v3868_v54 = vsel %vm3855_vm12, %v3852_v35, -inf }
 0xcbd   : > { %3866 = vmax.xlane.f32.xlu0 %v3865_v13 }
 0xcbe   : > { %v3871_v20 = vsel %vm3855_vm12, %v3853_v39, -inf }
 0xcbf   : > { %3872 = vmax.xlane.f32.xlu1 %v3871_v20 }
 0xcc1   : > { %3876 = vmax.xlane.f32.xlu0 %v3875_v58 }
 0xcc5   : > { %3869 = vmax.xlane.f32.xlu0 %v3868_v54 }
 0xcd0   : > { %3938 = vrot.lane.b32.xlu1 %v7688_v29, %s6326_s28 }
 0xcd4   : > { %3942 = vrot.lane.b32.xlu1 %v7694_v25, %s6326_s28 }
 0xcd8   : > { %3944 = vrot.lane.b32.xlu1 %v7697_v33, %s6326_s28 }
 0xcdb   : > { %3940 = vrot.lane.b32.xlu0 %v7686_v26, %s6326_s28  ;;  %s8026_s28 = sld [smem:[#allocation12_spill]] }
 0xd42   : > { %v3858_v56 = vpop.xlane.xlu0 %3857 }
 0xd43   : > { %v3878_v1 = vsub.f32 %v3848_v43, %v3858_v56 }
 0xd44   : > { %v3861_v57 = vpop.xlane.xlu1 %3860 }
 0xd45   : > { %v3885_v14 = vmul.f32 1.442695, %v3878_v1  ;;  %v3879_v34 = vsub.f32 %v3849_v52, %v3861_v57 }
 0xd46   : > { %v3864_v23 = vpop.xlane.xlu0 %3863 }
 0xd47   : > { %v3880_v16 = vsub.f32 %v3850_v21, %v3864_v23  ;;  %v3887_v4 = vmul.f32 1.442695, %v3879_v34 }
 0xd49   : > { %v3889_v48 = vmul.f32 1.442695, %v3880_v16 }
 0xd4a   : > { %v3867_v62 = vpop.xlane.xlu0 %3866 }
 0xd4b   : > { %6186 = vpow2.f32 %v3889_v48  ;;  %v3881_v22 = vsub.f32 %v3851_v9, %v3867_v62 }
 0xd4c   : > { %v3873_v41 = vpop.xlane.xlu1 %3872  ;;  %6188 = vpow2.f32 %v3885_v14 }
 0xd4d   : > { %v3891_v53 = vmul.f32 1.442695, %v3881_v22  ;;  %v3883_v63 = vsub.f32 %v3853_v39, %v3873_v41 }
 0xd4e   : > { %v3877_v32 = vpop.xlane.xlu0 %3876 }
 0xd4f   : > { %6190 = vpow2.f32 %v3891_v53  ;;  %v3884_v38 = vsub.f32 %v3854_v37, %v3877_v32  ;;  %v3895_v40 = vmul.f32 1.442695, %v3883_v63 }
 0xd50   : > { %v3939_v46 = vpop.permute.xlu1 %3938  ;;  %6192 = vpow2.f32 %v3887_v4 }
 0xd51   : > { %v3897_v55 = vmul.f32 1.442695, %v3884_v38  ;;  %5796 = vmatprep.subr.bf16.mxu0 %v3939_v46 }
 0xd52   : > { %v3870_v30 = vpop.xlane.xlu0 %3869  ;;  %5797 = vmatpush3.bf16.msra.mxu0 %v3939_v46 }
 0xd53   : > { %v3882_v7 = vsub.f32 %v3852_v35, %v3870_v30  ;;  %6194 = vpow2.f32 %v3897_v55 }
 0xd54   : > { %v3943_v36 = vpop.permute.xlu1 %3942 }
 0xd55   : > { %v7725_v5 = vpop.eup %6186  ;;  %v3893_v15 = vmul.f32 1.442695, %v3882_v7 }
 0xd56   : > { %v3941_v44 = vpop.permute.xlu0 %3940  ;;  %v3905_v19 = vsel %vm3855_vm12, %v7725_v5, 0.0  ;;  %v6189_v31 = vpop.eup %6188 }
 0xd57   : > { %6196 = vpow2.f32 %v3893_v15  ;;  %3906 = vadd.xlane.f32.xlu1 %v3905_v19  ;;  %5798 = vmatprep.subr.bf16.mxu0 %v3941_v44  ;;  %v3899_v49 = vsel %vm3855_vm12, %v6189_v31, 0.0 }
 0xd58   : > { %5799 = vmatpush3.bf16.msra.mxu0 %v3941_v44  ;;  %6198 = vpow2.f32 %v3895_v40  ;;  %v3945_v17 = vpop.permute.xlu1 %3944 }
 0xd59   : > { %v6191_v11 = vpop.eup %6190  ;;  %5800 = vmatprep.subr.bf16.mxu0 %v3943_v36  ;;  %v3963_v6 = vsel %vm3961_vm14, %v3945_v17, 0 }
 0xd5a   : > { %v3908_v45 = vsel %vm3855_vm12, %v6191_v11, 0.0  ;;  %v6193_v42 = vpop.eup %6192 }
 0xd5b   : > { %3909 = vadd.xlane.f32.xlu0 %v3908_v45  ;;  %3900 = vadd.xlane.f32.xlu1 %v3899_v49  ;;  %v3902_v10 = vsel %vm3855_vm12, %v6193_v42, 0.0 }
 0xd5c   : > { %5801 = vmatpush3.bf16.msra.mxu0 %v3943_v36 }
 0xd5d   : > { %5906 = vmatprep.subr.msk.bf16.mxu0 %vm3961_vm14, %v3945_v17  ;;  %v6195_v43 = vpop.eup %6194 }
 0xd5e   : > { %v3917_v21 = vsel %vm3874_vm13, %v6195_v43, 0.0 }
 0xd5f   : > { %3903 = vadd.xlane.f32.xlu0 %v3902_v10 }
 0xd60   : > { %5803 = vmatpush3.bf16.msra.mxu0 %v3963_v6 }
 0xd61   : > { %v6197_v47 = vpop.eup %6196 }
 0xd62   : > { %v3911_v52 = vsel %vm3855_vm12, %v6197_v47, 0.0  ;;  %v6199_v2 = vpop.eup %6198 }
 0xd63   : > { %3918 = vadd.xlane.f32.xlu0 %v3917_v21  ;;  %3912 = vadd.xlane.f32.xlu1 %v3911_v52  ;;  %v3914_v51 = vsel %vm3855_vm12, %v6199_v2, 0.0 }
 0xd67   : > { %3915 = vadd.xlane.f32.xlu0 %v3914_v51 }
 0xd74   : > { %4043 = vrot.lane.b32.xlu1 %v7686_v26, %s6327_s1 }
 0xd78   : > { %4045 = vrot.lane.b32.xlu1 %v7694_v25, %s6327_s1 }
 0xd7c   : > { %4047 = vrot.lane.b32.xlu1 %v7697_v33, %s6327_s1 }
 0xd7d   : > { %4041 = vrot.lane.b32.xlu0 %v7688_v29, %s6327_s1  ;;  %s5913_s1 = smul.u32 56, %s8028_s10 }
 0xd80   : > { %4035 = vrot.lane.b32.xlu1 %v7686_v26, %s6328_s2 }
 0xd81   : > { %4033 = vrot.lane.b32.xlu0 %v7688_v29, %s6328_s2 }
 0xd84   : > { %4039 = vrot.lane.b32.xlu1 %v7697_v33, %s6328_s2 }
 0xd85   : > { %4037 = vrot.lane.b32.xlu0 %v7694_v25, %s6328_s2  ;;  %s902_s2 = scalar_lea.vmem %s6483_s4, %s5913_s1 }
 0xde4   : > { %v3907_v9 = vpop.xlane.xlu1 %3906 }
 0xde8   : > { %v3910_v27 = vpop.xlane.xlu0 %3909  ;;  %v3901_v3 = vpop.xlane.xlu1 %3900 }
 0xde9   : > { %6200 = vrcp.f32 %v3910_v27 }
 0xdea   : > { %6202 = vrcp.f32 %v3901_v3 }
 0xdeb   : > { %6204 = vrcp.f32 %v3907_v9 }
 0xdec   : > { %v3904_v8 = vpop.xlane.xlu0 %3903 }
 0xded   : > { %6206 = vrcp.f32 %v3904_v8 }
 0xdf0   : > { %v3919_v24 = vpop.xlane.xlu0 %3918  ;;  %v3913_v59 = vpop.xlane.xlu1 %3912 }
 0xdf1   : > { %6208 = vrcp.f32 %v3919_v24 }
 0xdf2   : > { %6210 = vrcp.f32 %v3913_v59 }
 0xdf3   : > { %v6201_v37 = vpop.eup %6200 }
 0xdf4   : > { %v3916_v39 = vpop.xlane.xlu0 %3915  ;;  %v6203_v13 = vpop.eup %6202  ;;  %v3930_v58 = vmul.f32 %v6201_v37, %v6191_v11 }
 0xdf5   : > { %6212 = vrcp.f32 %v3916_v39  ;;  %v6205_v20 = vpop.eup %6204  ;;  %v3927_v56 = vmul.f32 %v6203_v13, %v6189_v31  ;;  %v4044_v62 = vpop.permute.xlu1 %4043 }
 0xdf6   : > { %v3929_v57 = vmul.f32 %v6205_v20, %v7725_v5  ;;  %v4065_v46 = vsel %vm3759_vm11, %v4044_v62, 0 }
 0xdf7   : > { %v6207_v35 = vpop.eup %6206 }
 0xdf8   : > { %v4042_v54 = vpop.permute.xlu0 %4041  ;;  %v3928_v1 = vmul.f32 %v6207_v35, %v6193_v42  ;;  %v3935_v16 = vpack.c.bf16 %v3930_v58, %v3929_v57 }
 0xdf9   : > { %5907 = vmatprep.subr.msk.bf16.mxu0 %vm3759_vm11, %v4042_v54  ;;  %v4062_v48 = vsel %vm3759_vm11, %v4042_v54, 0  ;;  %v4046_v55 = vpop.permute.xlu1 %4045 }
 0xdfa   : > { %v3934_v23 = vpack.c.bf16 %v3928_v1, %v3927_v56  ;;  %v4068_v30 = vsel %vm3759_vm11, %v4046_v55, 0 }
 0xdfb   : > { %v6209_v14 = vpop.eup %6208 }
 0xdfc   : > { %5804 = vmatprep.mubr.msk.bf16.mxu0 %vm3855_vm12, %v3934_v23  ;;  %v6211_v34 = vpop.eup %6210  ;;  %v3933_v41 = vmul.f32 %v6209_v14, %v6195_v43  ;;  %v4034_v63 = vpop.permute.xlu0 %4033 }
 0xdfd   : > { %5805 = vmatmul.mubr.msk.bf16.vlgmr.msra.gmra.mrb[136].mxu0 %vm3855_vm12, %v3935_v16  ;;  %v3931_v4 = vmul.f32 %v6211_v34, %v6197_v47  ;;  %v4048_v7 = vpop.permute.xlu1 %4047 }
 0xdfe   : > { %5813 = vmatpush3.bf16.xpose.msra.mxu0 %v4062_v48  ;;  %v3937_v38 = vpack.c.bf16 %v3933_v41, %v3933_v41  ;;  %v4071_v5 = vsel %vm3759_vm11, %v4048_v7, 0 }
 0xdff   : > { %v6213_v22 = vpop.eup %6212  ;;  %5908 = vmatprep.subr.msk.bf16.mxu0 %vm3759_vm11, %v4044_v62 }
 0xe00   : > { %v3932_v53 = vmul.f32 %v6213_v22, %v6199_v2  ;;  %v4038_v15 = vpop.permute.xlu0 %4037 }
 0xe01   : > { %v4036_v40 = vpop.permute.xlu1 %4035 }
 0xe02   : > { %v3936_v32 = vpack.c.bf16 %v3932_v53, %v3931_v4 }
 0xe04   : > { %5808 = vmatprep.mubr.msk.bf16.mxu0 %vm3855_vm12, %v3936_v32 }
 0xe05   : > { %5809 = vmatmul.mubr.msk.bf16.gmra.mrb[140].mxu0 %vm3855_vm12, %v3937_v38  ;;  %v4040_v36 = vpop.permute.xlu1 %4039 }
 0xe06   : > { %5815 = vmatpush3.bf16.xpose.msra.mxu0 %v4065_v46  ;;  %5820 = vmatprep.mubr.msk.bf16.mxu0 %vm3759_vm11, %v4034_v63 }
 0xe07   : > { %5909 = vmatprep.subr.msk.bf16.mxu0 %vm3759_vm11, %v4046_v55 }
 0xe0e   : > { %5817 = vmatpush3.bf16.xpose.msra.mxu0 %v4068_v30 }
 0xe0f   : > { %5910 = vmatprep.subr.msk.bf16.mxu0 %vm3759_vm11, %v4048_v7 }
 0xe16   : > { %5819 = vmatpush3.bf16.xpose.msra.mxu0 %v4071_v5 }
 0xe1d   : > { %5821 = vmatmul.mubr.msk.bf16.vlgmr.msra.gmra.mrb[144].mxu0 %vm3759_vm11, %v4036_v40 }
 0xe1e   : > { %5824 = vmatprep.mubr.msk.bf16.mxu0 %vm3759_vm11, %v4038_v15 }
 0xe25   : > { %5825 = vmatmul.mubr.msk.bf16.gmra.mrb[148].mxu0 %vm3759_vm11, %v4040_v36 }
 0xed0   : > { %v7762_v44 = vpop.f32.mrb[136].mxu0 }
 0xed1   : > { %v7764_v19 = vpop.f32.mrb[137].mxu0 }
 0xed2   : > { %v7766_v31 = vpop.f32.mrb[138].mxu0 }
 0xed3   : > { %v4030_v11 = vpack.c.bf16 %v7766_v31, %v7762_v44  ;;  %v7770_v45 = vpop.f32.mrb[139].mxu0 }
 0xed4   : > { %v4029_v49 = vpack.c.bf16 %v7770_v45, %v7764_v19 }
 0xed8   : > { %v7774_v42 = vpop.f32.mrb[140].mxu0 }
 0xed9   : > { %v7776_v17 = vpop.f32.mrb[141].mxu0 }
 0xeda   : > { %v5811_v10 = vpop.f32.mrb[142].mxu0 }
 0xedb   : > { %v7778_v43 = vpop.f32.mrb[143].mxu0 }
 0xedc   : > { %v4031_v6 = vpack.c.bf16 %v7778_v43, %v7776_v17 }
 0xef0   : > { %v5822_v47 = vpop.f32.mrb[144].mxu0 }
 0xef1   : > { %v4107_v21 = vpop.f32.mrb[145].mxu0  ;;  %v4139_v9 = vmul.f32 0.25, %v5822_v47 }
 0xef2   : > { %v4137_v52 = vmul.f32 0.25, %v4107_v21  ;;  %v5823_v2 = vpop.f32.mrb[146].mxu0 }
 0xef3   : > { %v4110_v51 = vpop.f32.mrb[147].mxu0  ;;  %v4140_v24 = vmul.f32 0.25, %v5823_v2  ;;  %v4150_v37 = vsel %vm3855_vm12, %v4139_v9, -inf }
 0xef4   : > { %v4138_v27 = vmul.f32 0.25, %v4110_v51  ;;  %v4144_v3 = vsel %vm3855_vm12, %v4137_v52, -inf }
 0xef5   : > { %4145 = vmax.xlane.f32.xlu0 %v4144_v3  ;;  %v4153_v54 = vsel %vm3855_vm12, %v4140_v24, -inf }
 0xef6   : > { %v4147_v8 = vsel %vm3855_vm12, %v4138_v27, -inf }
 0xef7   : > { %4148 = vmax.xlane.f32.xlu1 %v4147_v8 }
 0xef8   : > { %v5826_v59 = vpop.f32.mrb[148].mxu0 }
 0xef9   : > { %4151 = vmax.xlane.f32.xlu0 %v4150_v37  ;;  %v4123_v39 = vpop.f32.mrb[149].mxu0  ;;  %v4143_v1 = vmul.f32 0.25, %v5826_v59 }
 0xefa   : > { %v5827_v13 = vpop.f32.mrb[150].mxu0  ;;  %v4141_v35 = vmul.f32 0.25, %v4123_v39 }
 0xefb   : > { %v4126_v20 = vpop.f32.mrb[151].mxu0  ;;  %v4162_v23 = vsel %vm3874_vm13, %v4143_v1, -inf }
 0xefc   : > { %v4142_v58 = vmul.f32 0.25, %v4126_v20  ;;  %v4156_v57 = vsel %vm3855_vm12, %v4141_v35, -inf }
 0xefd   : > { %4154 = vmax.xlane.f32.xlu0 %v4153_v54 }
 0xefe   : > { %v4159_v56 = vsel %vm3855_vm12, %v4142_v58, -inf }
 0xeff   : > { %4160 = vmax.xlane.f32.xlu1 %v4159_v56 }
 0xf01   : > { %4157 = vmax.xlane.f32.xlu0 %v4156_v57 }
 0xf05   : > { %4163 = vmax.xlane.f32.xlu0 %v4162_v23 }
 0xf82   : > { %v4146_v16 = vpop.xlane.xlu0 %4145 }
 0xf83   : > { %v4165_v14 = vsub.f32 %v4137_v52, %v4146_v16 }
 0xf84   : > { %v4149_v34 = vpop.xlane.xlu1 %4148 }
 0xf85   : > { %v4172_v22 = vmul.f32 1.442695, %v4165_v14  ;;  %v4166_v41 = vsub.f32 %v4138_v27, %v4149_v34 }
 0xf86   : > { %v4152_v48 = vpop.xlane.xlu0 %4151 }
 0xf87   : > { %v4167_v62 = vsub.f32 %v4139_v9, %v4152_v48  ;;  %v4174_v46 = vmul.f32 1.442695, %v4166_v41 }
 0xf89   : > { %v4176_v4 = vmul.f32 1.442695, %v4167_v62 }
 0xf8a   : > { %v4155_v53 = vpop.xlane.xlu0 %4154 }
 0xf8b   : > { %6214 = vpow2.f32 %v4176_v4  ;;  %v4168_v32 = vsub.f32 %v4140_v24, %v4155_v53  ;;  %v6056_v53 = vld [vmem:[%s8020_s11 + $0x8] sm:$0xff]  }
 0xf8c   : > { %v4161_v38 = vpop.xlane.xlu1 %4160  ;;  %6216 = vpow2.f32 %v4172_v22 }
 0xf8d   : > { %v4178_v63 = vmul.f32 1.442695, %v4168_v32  ;;  %v4170_v55 = vsub.f32 %v4142_v58, %v4161_v38 }
 0xf8e   : > { %v4158_v30 = vpop.xlane.xlu0 %4157 }
 0xf8f   : > { %6218 = vpow2.f32 %v4178_v63  ;;  %v4182_v7 = vmul.f32 1.442695, %v4170_v55  ;;  %v4169_v5 = vsub.f32 %v4141_v35, %v4158_v30 }
 0xf90   : > { %6220 = vpow2.f32 %v4174_v46 }
 0xf91   : > { %6222 = vpow2.f32 %v4182_v7  ;;  %v4180_v10 = vmul.f32 1.442695, %v4169_v5 }
 0xf92   : > { %v4164_v40 = vpop.xlane.xlu0 %4163 }
 0xf93   : > { %v4171_v15 = vsub.f32 %v4143_v1, %v4164_v40 }
 0xf95   : > { %v7789_v36 = vpop.eup %6214  ;;  %v4184_v47 = vmul.f32 1.442695, %v4171_v15 }
 0xf96   : > { %v4192_v21 = vsel %vm3855_vm12, %v7789_v36, 0.0  ;;  %v6217_v52 = vpop.eup %6216 }
 0xf97   : > { %6224 = vpow2.f32 %v4184_v47  ;;  %4193 = vadd.xlane.f32.xlu1 %v4192_v21  ;;  %v4186_v9 = vsel %vm3855_vm12, %v6217_v52, 0.0 }
 0xf98   : > { %6226 = vpow2.f32 %v4180_v10 }
 0xf99   : > { %v6219_v2 = vpop.eup %6218 }
 0xf9a   : > { %v4195_v51 = vsel %vm3855_vm12, %v6219_v2, 0.0  ;;  %v6221_v27 = vpop.eup %6220 }
 0xf9b   : > { %4196 = vadd.xlane.f32.xlu0 %v4195_v51  ;;  %4187 = vadd.xlane.f32.xlu1 %v4186_v9  ;;  %v4189_v3 = vsel %vm3855_vm12, %v6221_v27, 0.0  ;;  %v6223_v8 = vpop.eup %6222 }
 0xf9c   : > { %v4201_v37 = vsel %vm3855_vm12, %v6223_v8, 0.0 }
 0xf9f   : > { %4190 = vadd.xlane.f32.xlu0 %v4189_v3 }
 0xfa1   : > { %v6225_v24 = vpop.eup %6224 }
 0xfa2   : > { %v4204_v59 = vsel %vm3874_vm13, %v6225_v24, 0.0  ;;  %v6227_v39 = vpop.eup %6226 }
 0xfa3   : > { %4205 = vadd.xlane.f32.xlu1 %v4204_v59  ;;  %4202 = vadd.xlane.f32.xlu0 %v4201_v37  ;;  %v4198_v13 = vsel %vm3855_vm12, %v6227_v39, 0.0  ;;  %v4032_v37 = vpack.c.bf16 %v7774_v42, %v7774_v42 }
 0xfa7   : > { %4199 = vadd.xlane.f32.xlu1 %v4198_v13 }
 0xfb8   : > { %4227 = vrot.lane.b32.xlu1 %v7686_v26, %s6329_s0 }
 0xfb9   : > { %4225 = vrot.lane.b32.xlu0 %v7688_v29, %s6329_s0 }
 0xfbc   : > { %4229 = vrot.lane.b32.xlu1 %v7694_v25, %s6329_s0 }
 0xfc0   : > { %4231 = vrot.lane.b32.xlu1 %v7697_v33, %s6329_s0 }
0x1024   : > { %v4194_v20 = vpop.xlane.xlu1 %4193 }
0x1028   : > { %v4197_v35 = vpop.xlane.xlu0 %4196  ;;  %v4188_v58 = vpop.xlane.xlu1 %4187 }
0x1029   : > { %6228 = vrcp.f32 %v4188_v58 }
0x102c   : > { %v4191_v54 = vpop.xlane.xlu0 %4190 }
0x102d   : > { %6230 = vrcp.f32 %v4191_v54 }
0x102e   : > { %6232 = vrcp.f32 %v4197_v35  ;;  %v5372_v35 = vld [vmem:[%s8021_s15] ss:$0 sm:$0xff] }
0x102f   : > { %6234 = vrcp.f32 %v4194_v20 }
0x1030   : > { %v4203_v56 = vpop.xlane.xlu0 %4202  ;;  %v4206_v1 = vpop.xlane.xlu1 %4205 }
0x1031   : > { %6236 = vrcp.f32 %v4203_v56 }
0x1033   : > { %v6229_v26 = vpop.eup %6228 }
0x1034   : > { %v4226_v57 = vpop.permute.xlu0 %4225  ;;  %v4200_v23 = vpop.xlane.xlu1 %4199  ;;  %v4214_v33 = vmul.f32 %v6229_v26, %v6217_v52 }
0x1035   : > { %6238 = vrcp.f32 %v4200_v23  ;;  %5828 = vmatprep.subr.bf16.mxu1 %v4226_v57 }
0x1036   : > { %5829 = vmatpush3.bf16.msra.mxu1 %v4226_v57  ;;  %6240 = vrcp.f32 %v4206_v1 }
0x1037   : > { %v6231_v29 = vpop.eup %6230 }
0x1038   : > { %v4228_v25 = vpop.permute.xlu1 %4227  ;;  %v4215_v16 = vmul.f32 %v6231_v29, %v6221_v27  ;;  %v6233_v34 = vpop.eup %6232 }
0x1039   : > { %5830 = vmatprep.subr.bf16.mxu1 %v4228_v25  ;;  %v6235_v62 = vpop.eup %6234  ;;  %v4217_v4 = vmul.f32 %v6233_v34, %v6219_v2 }
0x103a   : > { %5831 = vmatpush3.bf16.msra.mxu1 %v4228_v25  ;;  %v4221_v14 = vpack.c.bf16 %v4215_v16, %v4214_v33  ;;  %v4216_v46 = vmul.f32 %v6235_v62, %v7789_v36  ;;  %v6057_v36 = vld [vmem:[%s8020_s11] sm:$0xff]  }
0x103b   : > { %v6237_v22 = vpop.eup %6236 }
0x103c   : > { %5836 = vmatprep.mubr.msk.bf16.mxu1 %vm3855_vm12, %v4221_v14  ;;  %v4230_v48 = vpop.permute.xlu1 %4229  ;;  %v4219_v55 = vmul.f32 %v6237_v22, %v6223_v8  ;;  %v4222_v30 = vpack.c.bf16 %v4217_v4, %v4216_v46 }
0x103d   : > { %5832 = vmatprep.subr.bf16.mxu1 %v4230_v48 }
0x103e   : > { %5833 = vmatpush3.bf16.msra.mxu1 %v4230_v48 }
0x103f   : > { %v6239_v41 = vpop.eup %6238 }
0x1040   : > { %v4232_v32 = vpop.permute.xlu1 %4231  ;;  %v4218_v38 = vmul.f32 %v6239_v41, %v6227_v39  ;;  %v6241_v7 = vpop.eup %6240 }
0x1041   : > { %v4249_v63 = vsel %vm3961_vm14, %v4232_v32, 0  ;;  %5911 = vmatprep.subr.msk.bf16.mxu1 %vm3961_vm14, %v4232_v32  ;;  %v4220_v40 = vmul.f32 %v6241_v7, %v6225_v24 }
0x1042   : > { %5835 = vmatpush3.bf16.msra.mxu1 %v4249_v63  ;;  %v4223_v5 = vpack.c.bf16 %v4219_v55, %v4218_v38 }
0x1043   : > { %5844 = vmatprep.subr.bf16.mxu1 %v6056_v53  ;;  %v4224_v15 = vpack.c.bf16 %v4220_v40, %v4220_v40 }
0x1045   : > { %5837 = vmatmul.mubr.msk.bf16.vlgmr.msra.gmra.mrb[136].mxu1 %vm3855_vm12, %v4222_v30 }
0x1046   : > { %5840 = vmatprep.mubr.msk.bf16.mxu1 %vm3855_vm12, %v4223_v5  ;;  %5845 = vmatpush3.bf16.msra.mxu1 %v6056_v53 }
0x1047   : > { %5854 = vmatprep.subr.bf16.mxu1 %v6057_v36 }
0x104d   : > { %5841 = vmatmul.mubr.msk.bf16.gmra.mrb[140].mxu1 %vm3855_vm12, %v4224_v15 }
0x1118   : > { %v5838_v10 = vpop.f32.mrb[136].mxu1 }
0x1119   : > { %v4285_v47 = vpop.f32.mrb[137].mxu1 }
0x111a   : > { %v5839_v21 = vpop.f32.mrb[138].mxu1 }
0x111b   : > { %v4316_v52 = vpack.c.bf16 %v5839_v21, %v5838_v10  ;;  %v4288_v2 = vpop.f32.mrb[139].mxu1 }
0x111c   : > { %v4315_v51 = vpack.c.bf16 %v4288_v2, %v4285_v47 }
0x111e   : > { %5846 = vmatprep.mubr.msk.bf16.mxu1 %vm3759_vm11, %v4315_v51 }
0x111f   : > { %5847 = vmatmul.mubr.msk.bf16.vlgmr.msra.gmra.mrb[144].mxu1 %vm3759_vm11, %v4316_v52 }
0x1120   : > { %v5842_v9 = vpop.f32.mrb[140].mxu1  ;;  %5855 = vmatpush3.bf16.msra.mxu1 %v6057_v36 }
0x1121   : > { %v4301_v27 = vpop.f32.mrb[141].mxu1  ;;  %v4318_v59 = vpack.c.bf16 %v5842_v9, %v5842_v9 }
0x1122   : > { %v5843_v3 = vpop.f32.mrb[142].mxu1 }
0x1123   : > { %v4304_v8 = vpop.f32.mrb[143].mxu1 }
0x1124   : > { %v4317_v24 = vpack.c.bf16 %v4304_v8, %v4301_v27 }
0x1126   : > { %5850 = vmatprep.mubr.msk.bf16.mxu1 %vm3759_vm11, %v4317_v24 }
0x1127   : > { %5851 = vmatmul.mubr.msk.bf16.gmra.mrb[148].mxu1 %vm3759_vm11, %v4318_v59 }
0x1128   : > { %5856 = vmatprep.mubr.msk.bf16.mxu1 %vm3759_vm11, %v4029_v49 }
0x112f   : > { %5857 = vmatmul.mubr.msk.bf16.vlgmr.msra.gmra.mrb[144].mxu1 %vm3759_vm11, %v4030_v11 }
0x1130   : > { %5860 = vmatprep.mubr.msk.bf16.mxu1 %vm3759_vm11, %v4031_v6 }
0x1137   : > { %5861 = vmatmul.mubr.msk.bf16.gmra.mrb[152].mxu1 %vm3759_vm11, %v4032_v37 }
0x11fa   : > { %v5852_v39 = vpop.f32.mrb[148].mxu1 }
0x11fb   : > { %v4387_v13 = vpop.f32.mrb[149].mxu1 }
0x11fc   : > { %v5853_v19 = vpop.f32.mrb[150].mxu1 }
0x11fd   : > { %v4390_v45 = vpop.f32.mrb[151].mxu1 }
0x1202   : > { %v5858_v49 = vpop.f32.mrb[144].mxu1 }
0x1203   : > { %v4453_v20 = vpop.f32.mrb[145].mxu1  ;;  %v4485_v44 = vadd.f32 %v5858_v49, %v7663_v28 }
0x1204   : > { %v4483_v31 = vadd.f32 %v4453_v20, %v7656_v50  ;;  %v5859_v11 = vpop.f32.mrb[146].mxu1 }
0x1205   : > { %v4456_v17 = vpop.f32.mrb[147].mxu1  ;;  %v4486_v42 = vadd.f32 %v5859_v11, %v7665_v0  ;;  %v4499_v56 = vadd.f32 %v5372_v35, %v4485_v44  ;;  %v6059_v11 = vld [vmem:[%s8022_s18 + $0x8] sm:$0xff]  }
0x1206   : > { %v4484_v43 = vadd.f32 %v4456_v17, %v7658_v12  ;;  %v4497_v6 = vadd.f32 %v5372_v35, %v4483_v31  ;;  %v6058_v31 = vld [vmem:[%s8022_s18] sm:$0xff]  }
0x1207   : > { %v4512_v29 = vsel %vm1190_vm3, %v4499_v56, 0.0  ;;  %v4500_v25 = vadd.f32 %v5372_v35, %v4486_v42  ;;  %5864 = vmatprep.subr.bf16.mxu0 %v6058_v31 }
0x1208   : > { %v4506_v58 = vsel %vm1190_vm3, %v4497_v6, 0.0  ;;  %v4498_v54 = vadd.f32 %v5372_v35, %v4484_v43  ;;  %5865 = vmatpush3.bf16.msra.mxu0 %v6058_v31 }
0x1209   : > { %4507 = vadd.xlane.f32.xlu0 %v4506_v58  ;;  %v4515_v34 = vsel %vm1190_vm3, %v4500_v25, 0.0  ;;  %5866 = vmatprep.subr.bf16.mxu0 %v6059_v11 }
0x120a   : > { %v5862_v1 = vpop.f32.mrb[152].mxu1  ;;  %v4509_v57 = vsel %vm1190_vm3, %v4498_v54, 0.0 }
0x120b   : > { %v4478_v23 = vadd.f32 %v5862_v1, %v5852_v39  ;;  %4510 = vadd.xlane.f32.xlu1 %v4509_v57  ;;  %v4469_v28 = vpop.f32.mrb[153].mxu1 }
0x120c   : > { %v4470_v26 = vadd.f32 %v4469_v28, %v4387_v13  ;;  %v5863_v50 = vpop.f32.mrb[154].mxu1  ;;  %5867 = vmatpush3.bf16.msra.mxu0 %v6059_v11 }
0x120d   : > { %4513 = vadd.xlane.f32.xlu0 %v4512_v29  ;;  %v4472_v12 = vpop.f32.mrb[155].mxu1  ;;  %v4489_v16 = vadd.f32 %v4478_v23, %v7679_v60 }
0x120e   : > { %v4487_v0 = vadd.f32 %v4470_v26, %v7673_v61  ;;  %v4473_v33 = vadd.f32 %v4472_v12, %v4390_v45 }
0x120f   : > { %v4503_v4 = vadd.f32 %v5372_v35, %v4489_v16 }
0x1210   : > { %v4488_v14 = vadd.f32 %v4473_v33, %v7675_v18  ;;  %v4501_v48 = vadd.f32 %v5372_v35, %v4487_v0  ;;  %v5373_v33 = vld [vmem:[%s8023_s22] ss:$0 sm:$0xff] }
0x1211   : > { %4516 = vadd.xlane.f32.xlu0 %v4515_v34  ;;  %v4524_v53 = vsel %vm3313_vm10, %v4503_v4, 0.0 }
0x1212   : > { %v4502_v62 = vadd.f32 %v5372_v35, %v4488_v14  ;;  %v4518_v41 = vsel %vm1190_vm3, %v4501_v48, 0.0 }
0x1214   : > { %v4521_v22 = vsel %vm1190_vm3, %v4502_v62, 0.0 }
0x1215   : > { %4522 = vadd.xlane.f32.xlu1 %v4521_v22  ;;  %4519 = vadd.xlane.f32.xlu0 %v4518_v41 }
0x1219   : > { %4525 = vadd.xlane.f32.xlu0 %v4524_v53 }
0x1296   : > { %v4508_v61 = vpop.xlane.xlu0 %4507 }
0x1297   : > { %v4527_v32 = vmul.f32 0.03125, %v4508_v61  ;;  %v5374_v61 = vld [vmem:[%s8024_s23] ss:$0 sm:$0xff] }
0x1298   : > { %v4511_v60 = vpop.xlane.xlu1 %4510 }
0x1299   : > { %v7846_v38 = vsub.f32 %v4497_v6, %v4527_v32  ;;  %v4528_v18 = vmul.f32 0.03125, %v4511_v60 }
0x129a   : > { %v4514_v46 = vpop.xlane.xlu0 %4513 }
0x129b   : > { %v7848_v63 = vsub.f32 %v4498_v54, %v4528_v18  ;;  %v4529_v55 = vmul.f32 0.03125, %v4514_v46  ;;  %v4541_v30 = vmul.f32 %v7846_v38, %v7846_v38 }
0x129d   : > { %v7852_v7 = vsub.f32 %v4499_v56, %v4529_v55  ;;  %v4548_v5 = vsel %vm1190_vm3, %v4541_v30, 0.0  ;;  %v4542_v40 = vmul.f32 %v7848_v63, %v7848_v63 }
0x129e   : > { %v4517_v15 = vpop.xlane.xlu0 %4516  ;;  %4549 = vadd.xlane.f32.xlu1 %v4548_v5 }
0x129f   : > { %v4530_v36 = vmul.f32 0.03125, %v4517_v15  ;;  %v4551_v10 = vsel %vm1190_vm3, %v4542_v40, 0.0  ;;  %v4543_v47 = vmul.f32 %v7852_v7, %v7852_v7 }
0x12a0   : > { %4552 = vadd.xlane.f32.xlu0 %v4551_v10 }
0x12a1   : > { %v7860_v21 = vsub.f32 %v4500_v25, %v4530_v36  ;;  %v4554_v52 = vsel %vm1190_vm3, %v4543_v47, 0.0 }
0x12a2   : > { %4555 = vadd.xlane.f32.xlu1 %v4554_v52  ;;  %v4523_v2 = vpop.xlane.xlu1 %4522  ;;  %v4520_v51 = vpop.xlane.xlu0 %4519 }
0x12a3   : > { %v4532_v9 = vmul.f32 0.03125, %v4523_v2  ;;  %v4531_v27 = vmul.f32 0.03125, %v4520_v51  ;;  %v4544_v3 = vmul.f32 %v7860_v21, %v7860_v21 }
0x12a5   : > { %v7865_v8 = vsub.f32 %v4502_v62, %v4532_v9  ;;  %v7867_v24 = vsub.f32 %v4501_v48, %v4531_v27  ;;  %v4557_v59 = vsel %vm1190_vm3, %v4544_v3, 0.0 }
0x12a6   : > { %4558 = vadd.xlane.f32.xlu0 %v4557_v59  ;;  %v4526_v37 = vpop.xlane.xlu0 %4525 }
0x12a7   : > { %v4533_v39 = vmul.f32 0.03125, %v4526_v37  ;;  %v4546_v13 = vmul.f32 %v7865_v8, %v7865_v8  ;;  %v4545_v19 = vmul.f32 %v7867_v24, %v7867_v24 }
0x12a9   : > { %v7874_v45 = vsub.f32 %v4503_v4, %v4533_v39  ;;  %v4563_v49 = vsel %vm1190_vm3, %v4546_v13, 0.0  ;;  %v4560_v20 = vsel %vm1190_vm3, %v4545_v19, 0.0  ;;  %v6060_v13 = vld [vmem:[%s8025_s26] sm:$0xff]   ;;  %v6061_v19 = vld [vmem:[%s8025_s26 + $0x8] sm:$0xff]  }
0x12aa   : > { %4564 = vadd.xlane.f32.xlu0 %v4563_v49  ;;  %4561 = vadd.xlane.f32.xlu1 %v4560_v20  ;;  %v6063_v49 = vld [vmem:[%s8025_s26 + $0x18] sm:$0xff]   ;;  %v5375_v20 = vld [vmem:[%s8026_s28] ss:$0 sm:$0xff] }
0x12ab   : > { %v4547_v35 = vmul.f32 %v7874_v45, %v7874_v45  ;;  %5876 = vmatprep.subr.bf16.mxu0 %v6060_v13 }
0x12ad   : > { %v4566_v44 = vsel %vm3313_vm10, %v4547_v35, 0.0 }
0x12ae   : > { %4567 = vadd.xlane.f32.xlu1 %v4566_v44 }
0x132b   : > { %v4550_v17 = vpop.xlane.xlu1 %4549 }
0x132c   : > { %v4569_v43 = vmul.f32 0.03125, %v4550_v17 }
0x132d   : > { %v4553_v6 = vpop.xlane.xlu0 %4552 }
0x132e   : > { %v4576_v42 = vadd.f32 1e-05, %v4569_v43  ;;  %v4570_v58 = vmul.f32 0.03125, %v4553_v6 }
0x132f   : > { %v4556_v54 = vpop.xlane.xlu1 %4555 }
0x1330   : > { %6242 = vrsqrt.f32 %v4576_v42  ;;  %v4577_v56 = vadd.f32 1e-05, %v4570_v58  ;;  %v4571_v1 = vmul.f32 0.03125, %v4556_v54 }
0x1332   : > { %6244 = vrsqrt.f32 %v4577_v56  ;;  %v4578_v57 = vadd.f32 1e-05, %v4571_v1 }
0x1333   : > { %v4559_v23 = vpop.xlane.xlu0 %4558 }
0x1334   : > { %6246 = vrsqrt.f32 %v4578_v57  ;;  %v4572_v28 = vmul.f32 0.03125, %v4559_v23 }
0x1336   : > { %v4579_v26 = vadd.f32 1e-05, %v4572_v28 }
0x1337   : > { %v4562_v50 = vpop.xlane.xlu1 %4561  ;;  %v4565_v29 = vpop.xlane.xlu0 %4564 }
0x1338   : > { %6248 = vrsqrt.f32 %v4579_v26  ;;  %v4573_v25 = vmul.f32 0.03125, %v4562_v50  ;;  %v4574_v12 = vmul.f32 0.03125, %v4565_v29 }
0x133a   : > { %v6243_v0 = vpop.eup %6242  ;;  %v4580_v16 = vadd.f32 1e-05, %v4573_v25  ;;  %v4581_v14 = vadd.f32 1e-05, %v4574_v12 }
0x133b   : > { %v4590_v34 = vmul.f32 %v6243_v0, %v7846_v38  ;;  %v4568_v48 = vpop.xlane.xlu1 %4567 }
0x133c   : > { %v6245_v62 = vpop.eup %6244  ;;  %6250 = vrsqrt.f32 %v4580_v16  ;;  %v4575_v22 = vmul.f32 0.03125, %v4568_v48 }
0x133d   : > { %v4591_v41 = vmul.f32 %v6245_v62, %v7848_v63  ;;  %6252 = vrsqrt.f32 %v4581_v14  ;;  %v4603_v4 = vmul.f32 %v5373_v33, %v4590_v34 }
0x133e   : > { %v6247_v53 = vpop.eup %6246  ;;  %v4582_v32 = vadd.f32 1e-05, %v4575_v22 }
0x133f   : > { %v4592_v60 = vmul.f32 %v6247_v53, %v7852_v7  ;;  %v4604_v18 = vmul.f32 %v5373_v33, %v4591_v41  ;;  %v7888_v46 = vadd.f32 %v5374_v61, %v4603_v4 }
0x1340   : > { %6254 = vrsqrt.f32 %v4582_v32 }
0x1341   : > { %v7890_v55 = vadd.f32 %v5374_v61, %v4604_v18  ;;  %v4605_v30 = vmul.f32 %v5373_v33, %v4592_v60 }
0x1342   : > { %v6249_v38 = vpop.eup %6248 }
0x1343   : > { %v4593_v5 = vmul.f32 %v6249_v38, %v7860_v21  ;;  %v4627_v63 = vpack.c.bf16 %v7890_v55, %v7888_v46  ;;  %v7896_v10 = vadd.f32 %v5374_v61, %v4605_v30 }
0x1345   : > { %v4606_v40 = vmul.f32 %v5373_v33, %v4593_v5  ;;  %5868 = vmatprep.mubr.msk.bf16.mxu0 %vm1190_vm3, %v4627_v63 }
0x1346   : > { %v6251_v15 = vpop.eup %6250 }
0x1347   : > { %v6253_v36 = vpop.eup %6252  ;;  %v7898_v7 = vadd.f32 %v5374_v61, %v4606_v40  ;;  %v4594_v47 = vmul.f32 %v6251_v15, %v7867_v24 }
0x1348   : > { %v4595_v52 = vmul.f32 %v6253_v36, %v7865_v8 }
0x1349   : > { %v4628_v21 = vpack.c.bf16 %v7898_v7, %v7896_v10  ;;  %v4607_v2 = vmul.f32 %v5373_v33, %v4594_v47 }
0x134a   : > { %v6255_v51 = vpop.eup %6254  ;;  %v4608_v9 = vmul.f32 %v5373_v33, %v4595_v52 }
0x134b   : > { %v4596_v27 = vmul.f32 %v6255_v51, %v7874_v45  ;;  %5869 = vmatmul.mubr.msk.bf16.vlgmr.msra.gmra.mrb[152].mxu0 %vm1190_vm3, %v4628_v21  ;;  %v7906_v3 = vadd.f32 %v5374_v61, %v4607_v2  ;;  %v6062_v45 = vld [vmem:[%s8025_s26 + $0x10] sm:$0xff]  }
0x134c   : > { %v7908_v59 = vadd.f32 %v5374_v61, %v4608_v9  ;;  %5877 = vmatpush3.bf16.msra.mxu0 %v6060_v13 }
0x134d   : > { %v4609_v24 = vmul.f32 %v5373_v33, %v4596_v27  ;;  %5878 = vmatprep.subr.bf16.mxu0 %v6061_v19 }
0x134e   : > { %v4629_v8 = vpack.c.bf16 %v7908_v59, %v7906_v3 }
0x134f   : > { %v7912_v37 = vadd.f32 %v5374_v61, %v4609_v24 }
0x1350   : > { %5872 = vmatprep.mubr.msk.bf16.mxu0 %vm1190_vm3, %v4629_v8  ;;  %5879 = vmatpush3.bf16.msra.mxu0 %v6061_v19 }
0x1351   : > { %v4630_v39 = vpack.c.bf16 %v7912_v37, %v7912_v37  ;;  %5880 = vmatprep.subr.bf16.mxu0 %v6062_v45 }
0x1353   : > { %5873 = vmatmul.mubr.msk.bf16.gmra.mrb[156].mxu0 %vm1190_vm3, %v4630_v39 }
0x1354   : > { %5881 = vmatpush3.bf16.msra.mxu0 %v6062_v45 }
0x1355   : > { %5882 = vmatprep.subr.bf16.mxu0 %v6063_v49 }
0x1358   : > { %5883 = vmatpush3.bf16.msra.mxu0 %v6063_v49 }
0x141e   : > { %v5870_v35 = vpop.f32.mrb[152].mxu0 }
0x141f   : > { %v4705_v44 = vadd.f32 %v5870_v35, %v5375_v20  ;;  %v4696_v31 = vpop.f32.mrb[153].mxu0 }
0x1420   : > { %v4697_v11 = vadd.f32 %v5375_v20, %v4696_v31  ;;  %v5871_v17 = vpop.f32.mrb[154].mxu0 }
0x1421   : > { %v4735_v43 = vmul.f32 0.044715, %v4705_v44  ;;  %v4708_v6 = vadd.f32 %v5871_v17, %v5375_v20  ;;  %v4699_v42 = vpop.f32.mrb[155].mxu0 }
0x1422   : > { %v4733_v58 = vmul.f32 0.044715, %v4697_v11  ;;  %v4700_v54 = vadd.f32 %v5375_v20, %v4699_v42  ;;  %v4726_v17 = vmul.f32 0.5, %v4697_v11 }
0x1423   : > { %v4742_v56 = vmul.f32 %v4735_v43, %v4705_v44  ;;  %v4736_v1 = vmul.f32 0.044715, %v4708_v6  ;;  %v4729_v35 = vmul.f32 0.5, %v4708_v6 }
0x1424   : > { %v4740_v57 = vmul.f32 %v4733_v58, %v4697_v11  ;;  %v4734_v23 = vmul.f32 0.044715, %v4700_v54  ;;  %v4727_v43 = vmul.f32 0.5, %v4700_v54 }
0x1425   : > { %v4749_v28 = vmul.f32 %v4742_v56, %v4705_v44  ;;  %v4743_v26 = vmul.f32 %v4736_v1, %v4708_v6 }
0x1426   : > { %v4747_v50 = vmul.f32 %v4740_v57, %v4697_v11  ;;  %v4741_v29 = vmul.f32 %v4734_v23, %v4700_v54  ;;  %v5874_v25 = vpop.f32.mrb[156].mxu0 }
0x1427   : > { %v4756_v12 = vadd.f32 %v4749_v28, %v4705_v44  ;;  %v4750_v0 = vmul.f32 %v4743_v26, %v4708_v6  ;;  %v4721_v33 = vadd.f32 %v5874_v25, %v5375_v20  ;;  %v4712_v16 = vpop.f32.mrb[157].mxu0 }
0x1428   : > { %v4754_v14 = vadd.f32 %v4747_v50, %v4697_v11  ;;  %v4748_v34 = vmul.f32 %v4741_v29, %v4700_v54  ;;  %v4713_v48 = vadd.f32 %v5375_v20, %v4712_v16  ;;  %v5875_v62 = vpop.f32.mrb[158].mxu0 }
0x1429   : > { %v4763_v22 = vmul.f32 0.7978846, %v4756_v12  ;;  %v4757_v41 = vadd.f32 %v4750_v0, %v4708_v6  ;;  %v4739_v4 = vmul.f32 0.044715, %v4721_v33  ;;  %v4715_v53 = vpop.f32.mrb[159].mxu0  ;;  %v4732_v11 = vmul.f32 0.5, %v4721_v33 }
0x142a   : > { %v4761_v61 = vmul.f32 0.7978846, %v4754_v14  ;;  %v4755_v32 = vadd.f32 %v4748_v34, %v4700_v54  ;;  %v4737_v60 = vmul.f32 0.044715, %v4713_v48  ;;  %v4716_v18 = vadd.f32 %v5375_v20, %v4715_v53 }
0x142b   : > { %6256 = vtanh.f32 %v4763_v22  ;;  %v4764_v38 = vmul.f32 0.7978846, %v4757_v41  ;;  %v4746_v30 = vmul.f32 %v4739_v4, %v4721_v33  ;;  %v4728_v20 = vmul.f32 0.5, %v4705_v44  ;;  %v5382_v22 = vld [vmem:[%s6468_s12] ss:$0 sm:$0xff] }
0x142c   : > { %6258 = vtanh.f32 %v4761_v61  ;;  %v4762_v5 = vmul.f32 0.7978846, %v4755_v32  ;;  %v4744_v63 = vmul.f32 %v4737_v60, %v4713_v48  ;;  %v4738_v40 = vmul.f32 0.044715, %v4716_v18 }
0x142d   : > { %6260 = vtanh.f32 %v4764_v38  ;;  %v4753_v15 = vmul.f32 %v4746_v30, %v4721_v33  ;;  %v4730_v6 = vmul.f32 0.5, %v4713_v48  ;;  %v4731_v54 = vmul.f32 0.5, %v4716_v18 }
0x142e   : > { %6262 = vtanh.f32 %v4762_v5  ;;  %v4751_v36 = vmul.f32 %v4744_v63, %v4713_v48  ;;  %v4745_v47 = vmul.f32 %v4738_v40, %v4716_v18 }
0x142f   : > { %v4760_v52 = vadd.f32 %v4753_v15, %v4721_v33 }
0x1430   : > { %v4758_v21 = vadd.f32 %v4751_v36, %v4713_v48  ;;  %v4752_v2 = vmul.f32 %v4745_v47, %v4716_v18 }
0x1431   : > { %v4767_v51 = vmul.f32 0.7978846, %v4760_v52 }
0x1432   : > { %v4765_v9 = vmul.f32 0.7978846, %v4758_v21  ;;  %v4759_v27 = vadd.f32 %v4752_v2, %v4716_v18 }
0x1433   : > { %6264 = vtanh.f32 %v4767_v51 }
0x1434   : > { %6266 = vtanh.f32 %v4765_v9  ;;  %v4766_v24 = vmul.f32 0.7978846, %v4759_v27 }
0x1435   : > { %v6257_v8 = vpop.eup %6256 }
0x1436   : > { %v6259_v39 = vpop.eup %6258  ;;  %v4777_v13 = vadd.f32 1.0, %v6257_v8  ;;  %6268 = vtanh.f32 %v4766_v24 }
0x1437   : > { %v6261_v19 = vpop.eup %6260  ;;  %v4775_v45 = vadd.f32 1.0, %v6259_v39 }
0x1438   : > { %v6263_v49 = vpop.eup %6262  ;;  %v4778_v31 = vadd.f32 1.0, %v6261_v19  ;;  %v4784_v58 = vmul.f32 %v4777_v13, %v4728_v20 }
0x1439   : > { %v4776_v42 = vadd.f32 1.0, %v6263_v49  ;;  %v4782_v1 = vmul.f32 %v4775_v45, %v4726_v17 }
0x143a   : > { %v4785_v56 = vmul.f32 %v4778_v31, %v4729_v35 }
0x143b   : > { %v4783_v57 = vmul.f32 %v4776_v42, %v4727_v43 }
0x143c   : > { %v4798_v23 = vpack.c.bf16 %v4785_v56, %v4784_v58 }
0x143d   : > { %v6265_v28 = vpop.eup %6264  ;;  %v4797_v26 = vpack.c.bf16 %v4783_v57, %v4782_v1 }
0x143e   : > { %v6267_v50 = vpop.eup %6266  ;;  %v4781_v29 = vadd.f32 1.0, %v6265_v28 }
0x143f   : > { %5884 = vmatprep.mubr.msk.bf16.mxu0 %vm4832_vm15, %v4797_v26  ;;  %v4779_v25 = vadd.f32 1.0, %v6267_v50 }
0x1440   : > { %v6269_v44 = vpop.eup %6268  ;;  %5885 = vmatmul.mubr.msk.bf16.vlgmr.msra.gmra.mrb[160].mxu0 %vm4832_vm15, %v4798_v23  ;;  %v4788_v0 = vmul.f32 %v4781_v29, %v4732_v11 }
0x1441   : > { %v4780_v12 = vadd.f32 1.0, %v6269_v44  ;;  %v4786_v16 = vmul.f32 %v4779_v25, %v4730_v6 }
0x1442   : > { %v4800_v62 = vpack.c.bf16 %v4788_v0, %v4788_v0 }
0x1443   : > { %v4787_v14 = vmul.f32 %v4780_v12, %v4731_v54 }
0x1445   : > { %v4799_v34 = vpack.c.bf16 %v4787_v14, %v4786_v16 }
0x1447   : > { %5888 = vmatprep.mubr.msk.bf16.mxu0 %vm4832_vm15, %v4799_v34 }
0x1448   : > { %5889 = vmatmul.mubr.msk.bf16.gmra.mrb[164].mxu0 %vm4832_vm15, %v4800_v62 }
0x1513   : > { %v5886_v41 = vpop.f32.mrb[160].mxu0 }
0x1514   : > { %v4888_v4 = vadd.f32 %v5886_v41, %v5382_v22  ;;  %v4879_v53 = vpop.f32.mrb[161].mxu0 }
0x1515   : > { %v4880_v61 = vadd.f32 %v5382_v22, %v4879_v53  ;;  %v5887_v32 = vpop.f32.mrb[162].mxu0 }
0x1516   : > { %v4891_v60 = vadd.f32 %v5887_v32, %v5382_v22  ;;  %v4882_v33 = vpop.f32.mrb[163].mxu0  ;;  %v4911_v48 = vadd.f32 %v4888_v4, %v7896_v10 }
0x1517   : > { %v4883_v18 = vadd.f32 %v5382_v22, %v4882_v33  ;;  %v4909_v5 = vadd.f32 %v4880_v61, %v7888_v46 }
0x1518   : > { %v4924_v38 = vsel %vm1190_vm3, %v4911_v48, 0.0  ;;  %v4912_v30 = vadd.f32 %v4891_v60, %v7898_v7 }
0x1519   : > { %4925 = vadd.xlane.f32.xlu0 %v4924_v38  ;;  %v4910_v40 = vadd.f32 %v4883_v18, %v7890_v55  ;;  %v4918_v47 = vsel %vm1190_vm3, %v4909_v5, 0.0 }
0x151a   : > { %v4927_v63 = vsel %vm1190_vm3, %v4912_v30, 0.0 }
0x151b   : > { %4928 = vadd.xlane.f32.xlu1 %v4927_v63  ;;  %v5890_v15 = vpop.f32.mrb[164].mxu0  ;;  %v4921_v51 = vsel %vm1190_vm3, %v4910_v40, 0.0 }
0x151c   : > { %v4895_v36 = vpop.f32.mrb[165].mxu0  ;;  %v4904_v52 = vadd.f32 %v5890_v15, %v5382_v22 }
0x151d   : > { %v4896_v21 = vadd.f32 %v5382_v22, %v4895_v36  ;;  %4919 = vadd.xlane.f32.xlu0 %v4918_v47  ;;  %v5891_v10 = vpop.f32.mrb[166].mxu0 }
0x151e   : > { %v4898_v2 = vpop.f32.mrb[167].mxu0  ;;  %v4915_v27 = vadd.f32 %v4904_v52, %v7912_v37 }
0x151f   : > { %v4899_v7 = vadd.f32 %v5382_v22, %v4898_v2  ;;  %4922 = vadd.xlane.f32.xlu1 %v4921_v51  ;;  %v4913_v46 = vadd.f32 %v4896_v21, %v7906_v3  ;;  %v5391_v51 = vld [vmem:[%s6473_s20] ss:$0 sm:$0xff] }
0x1520   : > { %v4936_v8 = vsel %vm3313_vm10, %v4915_v27, 0.0 }
0x1521   : > { %v4930_v9 = vsel %vm1190_vm3, %v4913_v46, 0.0  ;;  %v4914_v55 = vadd.f32 %v4899_v7, %v7908_v59 }
0x1522   : > { %4931 = vadd.xlane.f32.xlu0 %v4930_v9 }
0x1523   : > { %v4933_v24 = vsel %vm1190_vm3, %v4914_v55, 0.0 }
0x1524   : > { %4934 = vadd.xlane.f32.xlu1 %v4933_v24 }
0x1526   : > { %4937 = vadd.xlane.f32.xlu0 %v4936_v8 }
0x15a6   : > { %v4926_v39 = vpop.xlane.xlu0 %4925 }
0x15a7   : > { %v4941_v13 = vmul.f32 0.03125, %v4926_v39 }
0x15a8   : > { %v4929_v19 = vpop.xlane.xlu1 %4928 }
0x15a9   : > { %v7942_v45 = vsub.f32 %v4911_v48, %v4941_v13  ;;  %v4942_v49 = vmul.f32 0.03125, %v4929_v19 }
0x15aa   : > { %v4920_v3 = vpop.xlane.xlu0 %4919 }
0x15ab   : > { %v7944_v20 = vsub.f32 %v4912_v30, %v4942_v49  ;;  %v4939_v35 = vmul.f32 0.03125, %v4920_v3  ;;  %v4955_v59 = vmul.f32 %v7942_v45, %v7942_v45 }
0x15ac   : > { %v4923_v37 = vpop.xlane.xlu1 %4922 }
0x15ad   : > { %v7948_v31 = vsub.f32 %v4909_v5, %v4939_v35  ;;  %v4940_v17 = vmul.f32 0.03125, %v4923_v37  ;;  %v4966_v43 = vsel %vm1190_vm3, %v4955_v59, 0.0  ;;  %v4956_v42 = vmul.f32 %v7944_v20, %v7944_v20 }
0x15ae   : > { %4967 = vadd.xlane.f32.xlu1 %v4966_v43 }
0x15af   : > { %v7953_v58 = vsub.f32 %v4910_v40, %v4940_v17  ;;  %v4932_v56 = vpop.xlane.xlu0 %4931  ;;  %v4969_v1 = vsel %vm1190_vm3, %v4956_v42, 0.0  ;;  %v4953_v57 = vmul.f32 %v7948_v31, %v7948_v31 }
0x15b0   : > { %v4943_v23 = vmul.f32 0.03125, %v4932_v56  ;;  %4970 = vadd.xlane.f32.xlu0 %v4969_v1 }
0x15b1   : > { %v4935_v28 = vpop.xlane.xlu1 %4934  ;;  %v4960_v26 = vsel %vm1190_vm3, %v4953_v57, 0.0  ;;  %v4954_v50 = vmul.f32 %v7953_v58, %v7953_v58 }
0x15b2   : > { %v7961_v29 = vsub.f32 %v4913_v46, %v4943_v23  ;;  %v4944_v25 = vmul.f32 0.03125, %v4935_v28  ;;  %4961 = vadd.xlane.f32.xlu1 %v4960_v26 }
0x15b3   : > { %v4938_v44 = vpop.xlane.xlu0 %4937  ;;  %v4963_v11 = vsel %vm1190_vm3, %v4954_v50, 0.0 }
0x15b4   : > { %v7964_v6 = vsub.f32 %v4914_v55, %v4944_v25  ;;  %v4945_v54 = vmul.f32 0.03125, %v4938_v44  ;;  %4964 = vadd.xlane.f32.xlu0 %v4963_v11  ;;  %v4957_v12 = vmul.f32 %v7961_v29, %v7961_v29  ;;  %v5392_v55 = vld [vmem:[%s6478_s27] ss:$0 sm:$0xff] }
0x15b6   : > { %v7968_v0 = vsub.f32 %v4915_v27, %v4945_v54  ;;  %v4972_v16 = vsel %vm1190_vm3, %v4957_v12, 0.0  ;;  %v4958_v14 = vmul.f32 %v7964_v6, %v7964_v6 }
0x15b7   : > { %4973 = vadd.xlane.f32.xlu1 %v4972_v16 }
0x15b8   : > { %v4975_v34 = vsel %vm1190_vm3, %v4958_v14, 0.0  ;;  %v4959_v62 = vmul.f32 %v7968_v0, %v7968_v0 }
0x15b9   : > { %4976 = vadd.xlane.f32.xlu0 %v4975_v34 }
0x15ba   : > { %v4978_v22 = vsel %vm3313_vm10, %v4959_v62, 0.0 }
0x15bb   : > { %4979 = vadd.xlane.f32.xlu1 %v4978_v22 }
0x163b   : > { %v4968_v41 = vpop.xlane.xlu1 %4967 }
0x163c   : > { %v4983_v4 = vmul.f32 0.03125, %v4968_v41 }
0x163d   : > { %v4971_v53 = vpop.xlane.xlu0 %4970 }
0x163e   : > { %v4990_v61 = vadd.f32 1e-05, %v4983_v4  ;;  %v4984_v32 = vmul.f32 0.03125, %v4971_v53 }
0x163f   : > { %v4962_v60 = vpop.xlane.xlu1 %4961 }
0x1640   : > { %6270 = vrsqrt.f32 %v4990_v61  ;;  %v4991_v33 = vadd.f32 1e-05, %v4984_v32  ;;  %v4981_v48 = vmul.f32 0.03125, %v4962_v60 }
0x1641   : > { %v4965_v18 = vpop.xlane.xlu0 %4964 }
0x1642   : > { %6272 = vrsqrt.f32 %v4991_v33  ;;  %v4988_v38 = vadd.f32 1e-05, %v4981_v48  ;;  %v4982_v30 = vmul.f32 0.03125, %v4965_v18 }
0x1644   : > { %6274 = vrsqrt.f32 %v4988_v38  ;;  %v4989_v5 = vadd.f32 1e-05, %v4982_v30  ;;  %v4974_v63 = vpop.xlane.xlu1 %4973 }
0x1645   : > { %v4985_v40 = vmul.f32 0.03125, %v4974_v63 }
0x1646   : > { %6276 = vrsqrt.f32 %v4989_v5  ;;  %v4977_v15 = vpop.xlane.xlu0 %4976 }
0x1647   : > { %v4992_v36 = vadd.f32 1e-05, %v4985_v40  ;;  %v4986_v47 = vmul.f32 0.03125, %v4977_v15 }
0x1648   : > { %v4980_v52 = vpop.xlane.xlu1 %4979 }
0x1649   : > { %6278 = vrsqrt.f32 %v4992_v36  ;;  %v4993_v21 = vadd.f32 1e-05, %v4986_v47  ;;  %v4987_v10 = vmul.f32 0.03125, %v4980_v52 }
0x164a   : > { %v6271_v2 = vpop.eup %6270 }
0x164b   : > { %v5004_v7 = vmul.f32 %v6271_v2, %v7942_v45  ;;  %6280 = vrsqrt.f32 %v4993_v21  ;;  %v4994_v46 = vadd.f32 1e-05, %v4987_v10 }
0x164c   : > { %v6273_v9 = vpop.eup %6272 }
0x164d   : > { %v5017_v27 = vmul.f32 %v5391_v51, %v5004_v7  ;;  %v5005_v24 = vmul.f32 %v6273_v9, %v7944_v20  ;;  %6282 = vrsqrt.f32 %v4994_v46 }
0x164e   : > { %v6275_v8 = vpop.eup %6274 }
0x164f   : > { %v5030_v39 = vadd.f32 %v5392_v55, %v5017_v27  ;;  %v5018_v13 = vmul.f32 %v5391_v51, %v5005_v24  ;;  %v5002_v19 = vmul.f32 %v6275_v8, %v7948_v31 }
0x1650   : > { %v6277_v49 = vpop.eup %6276 }
0x1651   : > { %5037 = vst.msk [vmem:[%s902_s2 + $0x10] sm:$0xff] %vm1190_vm3, %v5030_v39  ;;  %v5031_v3 = vadd.f32 %v5392_v55, %v5018_v13  ;;  %v5015_v35 = vmul.f32 %v5391_v51, %v5002_v19  ;;  %v5003_v45 = vmul.f32 %v6277_v49, %v7953_v58 }
0x1653   : > { %v6279_v59 = vpop.eup %6278  ;;  %5038 = vst.msk [vmem:[%s902_s2 + $0x18] sm:$0xff] %vm1190_vm3, %v5031_v3  ;;  %v5028_v37 = vadd.f32 %v5392_v55, %v5015_v35  ;;  %v5016_v17 = vmul.f32 %v5391_v51, %v5003_v45 }
0x1654   : > { %v5006_v20 = vmul.f32 %v6279_v59, %v7961_v29 }
0x1655   : > { %v6281_v43 = vpop.eup %6280  ;;  %5035 = vst.msk [vmem:[%s902_s2] sm:$0xff] %vm1190_vm3, %v5028_v37  ;;  %v5029_v42 = vadd.f32 %v5392_v55, %v5016_v17 }
0x1656   : > { %v5019_v56 = vmul.f32 %v5391_v51, %v5006_v20  ;;  %v5007_v31 = vmul.f32 %v6281_v43, %v7964_v6 }
0x1657   : > { %v6283_v1 = vpop.eup %6282  ;;  %5036 = vst.msk [vmem:[%s902_s2 + $0x8] sm:$0xff] %vm1190_vm3, %v5029_v42 }
0x1658   : > { %v5032_v57 = vadd.f32 %v5392_v55, %v5019_v56  ;;  %v5020_v23 = vmul.f32 %v5391_v51, %v5007_v31  ;;  %v5008_v58 = vmul.f32 %v6283_v1, %v7968_v0 }
0x165a   : > { %5039 = vst.msk [vmem:[%s902_s2 + $0x20] sm:$0xff] %vm1190_vm3, %v5032_v57  ;;  %v5033_v28 = vadd.f32 %v5392_v55, %v5020_v23  ;;  %v5021_v26 = vmul.f32 %v5391_v51, %v5008_v58 }
0x165c   : > { %5040 = vst.msk [vmem:[%s902_s2 + $0x28] sm:$0xff] %vm1190_vm3, %v5033_v28  ;;  %v5034_v50 = vadd.f32 %v5392_v55, %v5021_v26 }
0x165e   : > { %5041 = vst.msk [vmem:[%s902_s2 + $0x30] sm:$0x3] %vm3313_vm10, %v5034_v50 }
0x165f PF: > { %s69_s7 = sadd.s32 1, %s6290_s7  }
0x1660   : > { %p66_p4 = scmp.ge.s32.totalorder %s69_s7, 4  }
0x1662   :  { %68 = sbr.rel (!%p66_p4) target bundleno = 49 (0x31), region = 201 }

</bundles_post_ra>
